<compile_context>
chip_gen: v5e
topology: v5e:2x2
jax: 0.10.0
libtpu: 0.0.40
codegen_flags: <defaults>
</compile_context>

<pallas_src>
import functools

import numpy as np
import jax
import jax.numpy as jnp
from jax.experimental import pallas as pl
from jax.experimental.pallas import tpu as pltpu

PAD = 0                 # Constants.PAD
LN_EPS = 1e-5           # torch.nn.LayerNorm default eps
NEG_INF = -1e30         # stands in for masked_fill(-inf); identical softmax result
                        # for any row with >= 1 unmasked key.  Fully masked rows
                        # (all-PAD keys) give a uniform softmax instead of NaN —
                        # guard real inputs accordingly (test uses no PAD tokens).

_N_ATTN_W = 10          # wq, bq, wk, bk, wv, bv, fcw, fcb, ln_g, ln_b
_N_FFN_W = 6            # w1, b1, w2, b2, ln_g, ln_b
_N_LAYER_W = 2 * _N_ATTN_W + _N_FFN_W        # 26 stacked weight tensors
_N_DATA_IN = 4          # dec0 (HBM), enc, npm, keypad


# ----------------------------------------------------------------------------
# Helpers from the PyTorch reference code
# ----------------------------------------------------------------------------

def get_sinusoid_encoding_table(n_position, d_hid, padding_idx=None):
    def cal_angle(position, hid_idx):
        return position / np.power(10000, 2 * (hid_idx // 2) / d_hid)
    table = np.array([[cal_angle(p, j) for j in range(d_hid)]
                      for p in range(n_position)], dtype=np.float64)
    table[:, 0::2] = np.sin(table[:, 0::2])
    table[:, 1::2] = np.cos(table[:, 1::2])
    if padding_idx is not None:
        table[padding_idx] = 0.0
    return jnp.asarray(table, dtype=jnp.float32)


# ----------------------------------------------------------------------------
# In-kernel building blocks (f32 math; matmul operands cast to compute dtype)
# ----------------------------------------------------------------------------

def _layer_norm(x, gamma, beta):
    mu = jnp.mean(x, axis=-1, keepdims=True)
    var = jnp.mean(jnp.square(x - mu), axis=-1, keepdims=True)
    return (x - mu) * jax.lax.rsqrt(var + LN_EPS) * gamma + beta


def _mha(x_q, x_kv, causal, keypad_hb, wq, bq, wk, bk, wv, bv, fcw, fcb, g, b,
         *, n_batch, n_head, d_k, d_v, cdt):
    """Head- and batch-batched multi-head attention on flattened activations.

    x_q: (B*Lq, D) f32, x_kv: (B*Lk, D) f32.
    causal: optional (1, Lq, Lq) bool (True = masked out).
    keypad_hb: (H*B, 1, Lk) f32, > 0 where the key position is a PAD token.
    1/sqrt(d_k) is already folded into wq / bq (wrapper side).
    """
    lq = x_q.shape[0] // n_batch
    lk = x_kv.shape[0] // n_batch
    residual = x_q

    # Wide single QKV projections, M = B*Lq (B*Lk) rows -> good MXU fill, f32 acc.
    q2 = jnp.dot(x_q.astype(cdt), wq, preferred_element_type=jnp.float32) + bq
    k2 = jnp.dot(x_kv.astype(cdt), wk, preferred_element_type=jnp.float32) + bk
    v2 = jnp.dot(x_kv.astype(cdt), wv, preferred_element_type=jnp.float32) + bv

    def split_heads(x2, seq, width):
        # (B*seq, H*width) -> (H*B, seq, width) via leading-axis concat of per-head
        # slices (no scratch buffer / masked stores).
        x3 = x2.reshape(n_batch, seq, n_head * width)
        return jnp.concatenate(
            [x3[:, :, h * width:(h + 1) * width] for h in range(n_head)],
            axis=0).astype(cdt)
        # TODO(synk): at real configs pad d_k/d_v to a lane-aligned width wrapper
        # side so these per-head slices are full-lane; the toy widths here are
        # inherently narrow.

    q3 = split_heads(q2, lq, d_k)      # (H*B, Lq, d_k)
    k3 = split_heads(k2, lk, d_k)      # (H*B, Lk, d_k)
    v3 = split_heads(v2, lk, d_v)      # (H*B, Lk, d_v)

    # ONE batched score matmul + ONE softmax pass over all heads & batch rows.
    s = jnp.einsum('nqd,nkd->nqk', q3, k3, preferred_element_type=jnp.float32)
    if causal is not None:
        s = jnp.where(causal, NEG_INF, s)          # (1, Lq, Lq) broadcasts over H*B
    s = jnp.where(keypad_hb > 0.0, NEG_INF, s)     # (H*B, 1, Lk) broadcasts over q
    m = jnp.max(s, axis=-1, keepdims=True)
    p = jnp.exp(s - m)
    a = p * pl.reciprocal(jnp.sum(p, axis=-1, keepdims=True), approx=True)
    o3 = jnp.einsum('nqk,nkd->nqd', a.astype(cdt), v3,
                    preferred_element_type=jnp.float32)      # (H*B, Lq, d_v) f32

    # Output projection as a sum of per-head matmuls against sublane-sliced fcw
    # rows (replaces the ocat lane re-pack + masked stores; identical math).
    out = fcb                                                # (1, D) f32, broadcasts
    for h in range(n_head):
        oh = o3[h * n_batch:(h + 1) * n_batch].reshape(n_batch * lq, d_v)
        out = out + jnp.dot(oh.astype(cdt), fcw[h * d_v:(h + 1) * d_v],
                            preferred_element_type=jnp.float32)
    return _layer_norm(out + residual, g, b)


# ----------------------------------------------------------------------------
# Fused decoder-stack kernel: grid = (n_layers,), whole batch per step
# ----------------------------------------------------------------------------

def decoder_stack_kernel(*refs, n_batch, n_head, d_k, d_v, cdt):
    dec_hbm, enc_ref, npm_ref, kpad_ref = refs[:_N_DATA_IN]
    w = refs[_N_DATA_IN:_N_DATA_IN + _N_LAYER_W]
    out_ref = refs[_N_DATA_IN + _N_LAYER_W]
    x_ref, dma_sem = refs[_N_DATA_IN + _N_LAYER_W + 1:]

    layer = pl.program_id(0)
    len_q = x_ref.shape[0] // n_batch
    len_k = enc_ref.shape[0] // n_batch

    # Layer 0: DMA the embeddings HBM -> resident activation carry.  dec0 is read
    # exactly once, so it never occupies a double-buffered pipelined VMEM slot.
    @pl.when(layer == 0)
    def _():
        cp = pltpu.make_async_copy(dec_hbm, x_ref, dma_sem)
        cp.start()
        cp.wait()

    x = x_ref[...]                      # (B*Lq, D) f32 activation carry
    enc = enc_ref[...]                  # (B*Lk, D) f32 encoder output
    npm = npm_ref[...]                  # (B*Lq, 1) f32, 1.0 = non-pad query token
    kpad = kpad_ref[...]                # (B, 2, Lmax) f32 packed key-pad indicators
    tkp = kpad[:, 0:1, :len_q]          # (B, 1, Lq) 1.0 = tgt key is PAD
    skp = kpad[:, 1:2, :len_k]          # (B, 1, Lk) 1.0 = src key is PAD

    # Masks built in-kernel (no O(L^2) HBM traffic).  Key-pad vectors replicated
    # over heads along the folded (head*batch) leading axis.
    tkp_hb = jnp.concatenate([tkp] * n_head, axis=0)         # (H*B, 1, Lq)
    skp_hb = jnp.concatenate([skp] * n_head, axis=0)         # (H*B, 1, Lk)
    row = jax.lax.broadcasted_iota(jnp.int32, (len_q, len_q), 0)
    col = jax.lax.broadcasted_iota(jnp.int32, (len_q, len_q), 1)
    causal = (col > row)[None]                               # (1, Lq, Lq)

    slf_w = w[:_N_ATTN_W]
    enc_w = w[_N_ATTN_W:2 * _N_ATTN_W]
    ffn_w = w[2 * _N_ATTN_W:]
    unpack = lambda ws: [r[0] for r in ws]

    # --- masked self attention ---
    y = _mha(x, x, causal, tkp_hb, *unpack(slf_w),
             n_batch=n_batch, n_head=n_head, d_k=d_k, d_v=d_v, cdt=cdt)
    y = y * npm
    # --- encoder-decoder attention ---
    y = _mha(y, enc, None, skp_hb, *unpack(enc_w),
             n_batch=n_batch, n_head=n_head, d_k=d_k, d_v=d_v, cdt=cdt)
    y = y * npm
    # --- position-wise FFN (Conv1d kernel_size=1 == matmul) ---
    w1, b1, w2, b2, fg, fb = unpack(ffn_w)
    residual = y
    h1 = jnp.maximum(
        jnp.dot(y.astype(cdt), w1, preferred_element_type=jnp.float32) + b1, 0.0)
    z = jnp.dot(h1.astype(cdt), w2, preferred_element_type=jnp.float32) + b2
    z = _layer_norm(z + residual, fg, fb)
    z = z * npm

    x_ref[...] = z                       # carry to the next layer

    @pl.when(layer == pl.num_programs(0) - 1)
    def _():
        out_ref[...] = z.astype(out_ref.dtype)


def decoder_stack_pallas(dec0_flat, enc_flat, npm_flat, keypad, stacked_w,
                         *, n_batch, n_head, d_k, d_v, compute_dtype):
    T, D = dec0_flat.shape               # T = B*Lq
    n_layers = stacked_w[0].shape[0]

    data_specs = [
        pl.BlockSpec(memory_space=pl.ANY),                    # dec0: stays in HBM
        pl.BlockSpec(enc_flat.shape, lambda l: (0, 0)),       # encoder output
        pl.BlockSpec(npm_flat.shape, lambda l: (0, 0)),       # non-pad mask
        pl.BlockSpec(keypad.shape, lambda l: (0, 0, 0)),      # packed key-pad vecs
    ]
    # Per-layer weights: leading layer axis indexed by the grid coordinate, so the
    # default double-buffering prefetches layer l+1's weights while layer l runs.
    # With batch folded, each weight tensor is streamed from HBM once per layer.
    w_specs = [pl.BlockSpec((1,) + tuple(wt.shape[1:]), lambda l: (l, 0, 0))
               for wt in stacked_w]

    kernel = functools.partial(decoder_stack_kernel, n_batch=n_batch,
                               n_head=n_head, d_k=d_k, d_v=d_v, cdt=compute_dtype)

    return pl.pallas_call(
        kernel,
        out_shape=jax.ShapeDtypeStruct((T, D), jnp.float32),
        grid_spec=pltpu.PrefetchScalarGridSpec(
            num_scalar_prefetch=0,
            grid=(n_layers,),                    # layer loop only; batch is folded
            in_specs=data_specs + w_specs,
            out_specs=pl.BlockSpec((T, D), lambda l: (0, 0)),
            scratch_shapes=[
                pltpu.VMEM((T, D), jnp.float32),     # resident activation carry
                pltpu.SemaphoreType.DMA(()),          # layer-0 dec0 -> carry DMA
            ],
        ),
        compiler_params=pltpu.CompilerParams(
            dimension_semantics=("arbitrary",),
            # 32 MiB: above v5e's 16 MiB scoped default, well within v7x's 64 MiB
            # physical.  Re-derive if a batch tile is enlarged for real configs.
            vmem_limit_bytes=32 * 1024 * 1024,
        ),
    )(dec0_flat, enc_flat, npm_flat, keypad, *stacked_w)


# ----------------------------------------------------------------------------
# Parameter initialization (deterministic, synthetic) + weight preparation
# ----------------------------------------------------------------------------

def init_mha_params(key, d_model, n_head, d_k, d_v, scale=0.1):
    ks = jax.random.split(key, 8)
    return dict(
        wq=jax.random.normal(ks[0], (d_model, n_head * d_k), jnp.float32) * scale,
        bq=jax.random.normal(ks[1], (1, n_head * d_k), jnp.float32) * scale,
        wk=jax.random.normal(ks[2], (d_model, n_head * d_k), jnp.float32) * scale,
        bk=jax.random.normal(ks[3], (1, n_head * d_k), jnp.float32) * scale,
        wv=jax.random.normal(ks[4], (d_model, n_head * d_v), jnp.float32) * scale,
        bv=jax.random.normal(ks[5], (1, n_head * d_v), jnp.float32) * scale,
        fcw=jax.random.normal(ks[6], (n_head * d_v, d_model), jnp.float32) * scale,
        fcb=jax.random.normal(ks[7], (1, d_model), jnp.float32) * scale,
        g=jnp.ones((1, d_model), jnp.float32),
        b=jnp.zeros((1, d_model), jnp.float32),
    )


def init_ffn_params(key, d_model, d_inner, scale=0.1):
    ks = jax.random.split(key, 4)
    return dict(
        w1=jax.random.normal(ks[0], (d_model, d_inner), jnp.float32) * scale,
        b1=jax.random.normal(ks[1], (1, d_inner), jnp.float32) * scale,
        w2=jax.random.normal(ks[2], (d_inner, d_model), jnp.float32) * scale,
        b2=jax.random.normal(ks[3], (1, d_model), jnp.float32) * scale,
        g=jnp.ones((1, d_model), jnp.float32),
        b=jnp.zeros((1, d_model), jnp.float32),
    )


def init_decoder_params(key, *, n_tgt_vocab, emb_dim, d_model, d_inner,
                        n_head, d_k, d_v, n_dec_layers, n_position=300):
    keys = jax.random.split(key, 1 + 2 * n_dec_layers)
    emb = jax.random.normal(keys[0], (n_tgt_vocab, emb_dim), jnp.float32) * 0.1
    emb = emb.at[PAD].set(0.0)   # padding_idx=PAD
    pos_table = get_sinusoid_encoding_table(n_position, emb_dim, padding_idx=0)

    layers = []
    for k in range(n_dec_layers):
        group = []
        for j in range(2):       # layer_stack[k] holds two DecoderLayers (share_dec=0)
            lk = jax.random.split(keys[1 + 2 * k + j], 3)
            group.append(dict(
                slf=init_mha_params(lk[0], d_model, n_head, d_k, d_v),
                enc=init_mha_params(lk[1], d_model, n_head, d_k, d_v),
                ffn=init_ffn_params(lk[2], d_model, d_inner),
            ))
        layers.append(group)
    return dict(embedding=emb, pos_table=pos_table, layers=layers)


def prepare_stacked_weights(layers, input_id, d_k, compute_dtype):
    """Select layer_stack[k][input_id], fold 1/sqrt(d_k) into the Q projection
    (mathematically identical to dividing the scores), cast the matmul weight
    matrices to the compute dtype (biases / LayerNorm params stay f32), and stack
    every tensor along a leading layer axis."""
    inv_temp = 1.0 / float(np.power(d_k, 0.5))
    per_layer = []
    for group in layers:
        lp = group[input_id]
        arrs = []
        for attn in (lp["slf"], lp["enc"]):
            arrs += [(attn["wq"] * inv_temp).astype(compute_dtype),
                     attn["bq"] * inv_temp,
                     attn["wk"].astype(compute_dtype), attn["bk"],
                     attn["wv"].astype(compute_dtype), attn["bv"],
                     attn["fcw"].astype(compute_dtype), attn["fcb"],
                     attn["g"], attn["b"]]
        f = lp["ffn"]
        arrs += [f["w1"].astype(compute_dtype), f["b1"],
                 f["w2"].astype(compute_dtype), f["b2"], f["g"], f["b"]]
        per_layer.append(arrs)
    return [jnp.stack([lw[i] for lw in per_layer], axis=0)
            for i in range(_N_LAYER_W)]


# ----------------------------------------------------------------------------
# Decoder forward (glue in JAX, full stack in one Pallas kernel)
# ----------------------------------------------------------------------------

def decoder_forward(params, tgt_seq, tgt_pos, src_seq, enc_output, input_id,
                    *, n_head, d_k, d_v, compute_dtype=jnp.bfloat16):
    B, Lq = tgt_seq.shape
    Lk = src_seq.shape[1]
    D = params["embedding"].shape[1]
    Lmax = max(Lq, Lk)

    npm = (tgt_seq != PAD).astype(jnp.float32).reshape(B * Lq, 1)   # (B*Lq, 1)
    keypad = jnp.zeros((B, 2, Lmax), jnp.float32)
    keypad = keypad.at[:, 0, :Lq].set((tgt_seq == PAD).astype(jnp.float32))
    keypad = keypad.at[:, 1, :Lk].set((src_seq == PAD).astype(jnp.float32))

    dec0 = (params["embedding"][tgt_seq]
            + params["pos_table"][tgt_pos]).reshape(B * Lq, D)      # (B*Lq, D) f32
    enc_flat = enc_output.astype(jnp.float32).reshape(B * Lk, D)    # (B*Lk, D) f32

    stacked_w = prepare_stacked_weights(params["layers"], input_id, d_k,
                                        compute_dtype)
    out_flat = decoder_stack_pallas(dec0, enc_flat, npm, keypad, stacked_w,
                                    n_batch=B, n_head=n_head, d_k=d_k, d_v=d_v,
                                    compute_dtype=compute_dtype)
    return (out_flat.reshape(B, Lq, D),)
    # TODO(synk): dropout layers are identity (inference / dropout=0); pretrained
    # embedding loading & encoder/decoder embedding sharing are checkpoint concerns,
    # not compute; return_attns=True attention maps are not materialized.


# ----------------------------------------------------------------------------
# Pure-JAX reference (same weights / same matmul precision, math as in PyTorch)
# ----------------------------------------------------------------------------

def ref_decoder_forward(params, tgt_seq, tgt_pos, src_seq, enc_output, input_id,
                        *, n_head, d_k, d_v, compute_dtype=jnp.bfloat16):
    cdt = compute_dtype
    sw = prepare_stacked_weights(params["layers"], input_id, d_k, cdt)
    (swq, sbq, swk, sbk, swv, sbv, sfw, sfb, sg, sb,
     ewq, ebq, ewk, ebk, ewv, ebv, efw, efb, eg, eb,
     w1, b1, w2, b2, fg, fb) = sw
    n_layers = swq.shape[0]

    B, Lq = tgt_seq.shape
    npm = (tgt_seq != PAD).astype(jnp.float32)[..., None]
    causal = (jnp.triu(jnp.ones((Lq, Lq), jnp.int32), 1) > 0)[None]
    slf_mask = (tgt_seq == PAD)[:, None, :] | causal           # (B, Lq, Lq)
    de_mask = (src_seq == PAD)[:, None, :]                     # (B, 1, Lk)

    def mha(x_q, x_kv, mask, wq, bq, wk, bk, wv, bv, fcw, fcb, g, b):
        residual = x_q
        q = jnp.einsum('bqd,dc->bqc', x_q.astype(cdt), wq,
                       preferred_element_type=jnp.float32) + bq
        k = jnp.einsum('bkd,dc->bkc', x_kv.astype(cdt), wk,
                       preferred_element_type=jnp.float32) + bk
        v = jnp.einsum('bkd,dc->bkc', x_kv.astype(cdt), wv,
                       preferred_element_type=jnp.float32) + bv
        q = q.reshape(B, Lq, n_head, d_k).astype(cdt)
        k = k.reshape(B, -1, n_head, d_k).astype(cdt)
        v = v.reshape(B, -1, n_head, d_v).astype(cdt)
        s = jnp.einsum('bqhd,bkhd->bhqk', q, k, preferred_element_type=jnp.float32)
        s = jnp.where(mask[:, None], NEG_INF, s)
        a = jax.nn.softmax(s, axis=-1)
        o = jnp.einsum('bhqk,bkhd->bqhd', a.astype(cdt), v,
                       preferred_element_type=jnp.float32)
        o = o.reshape(B, Lq, n_head * d_v)
        out = jnp.einsum('bqc,cd->bqd', o.astype(cdt), fcw,
                         preferred_element_type=jnp.float32) + fcb
        return _layer_norm(out + residual, g, b)

    x = (params["embedding"][tgt_seq] + params["pos_table"][tgt_pos]).astype(jnp.float32)
    enc = enc_output.astype(jnp.float32)
    for l in range(n_layers):
        y = mha(x, x, slf_mask, swq[l], sbq[l], swk[l], sbk[l], swv[l], sbv[l],
                sfw[l], sfb[l], sg[l], sb[l]) * npm
        y = mha(y, enc, de_mask, ewq[l], ebq[l], ewk[l], ebk[l], ewv[l], ebv[l],
                efw[l], efb[l], eg[l], eb[l]) * npm
        residual = y
        h = jnp.maximum(jnp.einsum('bqd,dc->bqc', y.astype(cdt), w1[l],
                                   preferred_element_type=jnp.float32) + b1[l], 0.0)
        z = jnp.einsum('bqc,cd->bqd', h.astype(cdt), w2[l],
                       preferred_element_type=jnp.float32) + b2[l]
        x = _layer_norm(z + residual, fg[l], fb[l]) * npm
    return x


# ----------------------------------------------------------------------------

if __name__ == "__main__":
    # small config
    B, L_TGT, L_SRC = 2, 8, 8
    N_VOCAB, EMB_DIM = 50, 32
    D_MODEL, D_INNER = 32, 64
    N_HEAD, D_K, D_V = 4, 8, 8
    N_DEC_LAYERS = 2
    INPUT_ID = 1
    COMPUTE_DTYPE = jnp.bfloat16     # jnp.float32 reproduces exact PyTorch math

    root = jax.random.PRNGKey(0)
    k_par, k_tgt, k_src, k_enc = jax.random.split(root, 4)

    params = init_decoder_params(
        k_par, n_tgt_vocab=N_VOCAB, emb_dim=EMB_DIM, d_model=D_MODEL,
        d_inner=D_INNER, n_head=N_HEAD, d_k=D_K, d_v=D_V,
        n_dec_layers=N_DEC_LAYERS)

    # no PAD tokens (avoids fully-masked softmax rows, same as PyTorch behavior)
    tgt_seq = jax.random.randint(k_tgt, (B, L_TGT), 1, N_VOCAB, dtype=jnp.int32)
    src_seq = jax.random.randint(k_src, (B, L_SRC), 1, N_VOCAB, dtype=jnp.int32)
    tgt_pos = jnp.broadcast_to(jnp.arange(1, L_TGT + 1, dtype=jnp.int32)[None], (B, L_TGT))
    enc_output = jax.random.normal(k_enc, (B, L_SRC, D_MODEL), jnp.float32)

    (out,) = decoder_forward(params, tgt_seq, tgt_pos, src_seq, enc_output, INPUT_ID,
                             n_head=N_HEAD, d_k=D_K, d_v=D_V,
                             compute_dtype=COMPUTE_DTYPE)
    out = jax.block_until_ready(out)

    ref = ref_decoder_forward(params, tgt_seq, tgt_pos, src_seq, enc_output, INPUT_ID,
                              n_head=N_HEAD, d_k=D_K, d_v=D_V,
                              compute_dtype=COMPUTE_DTYPE)
    np.testing.assert_allclose(np.asarray(out), np.asarray(ref), rtol=1e-2, atol=1e-2)

    print("KERNEL_OK")
</pallas_src>

<mosaic_0001>
module attributes {stable_mosaic.version = 11 : i64} {
  func.func @decoder_stack_kernel(%arg0: i32, %arg1: memref<16x32xf32, #tpu.memory_space<any>>, %arg2: memref<16x32xf32, #tpu.memory_space<vmem>>, %arg3: memref<16x1xf32, #tpu.memory_space<vmem>>, %arg4: memref<2x2x8xf32, #tpu.memory_space<vmem>>, %arg5: memref<1x32x32xbf16, #tpu.memory_space<vmem>>, %arg6: memref<1x1x32xf32, #tpu.memory_space<vmem>>, %arg7: memref<1x32x32xbf16, #tpu.memory_space<vmem>>, %arg8: memref<1x1x32xf32, #tpu.memory_space<vmem>>, %arg9: memref<1x32x32xbf16, #tpu.memory_space<vmem>>, %arg10: memref<1x1x32xf32, #tpu.memory_space<vmem>>, %arg11: memref<1x32x32xbf16, #tpu.memory_space<vmem>>, %arg12: memref<1x1x32xf32, #tpu.memory_space<vmem>>, %arg13: memref<1x1x32xf32, #tpu.memory_space<vmem>>, %arg14: memref<1x1x32xf32, #tpu.memory_space<vmem>>, %arg15: memref<1x32x32xbf16, #tpu.memory_space<vmem>>, %arg16: memref<1x1x32xf32, #tpu.memory_space<vmem>>, %arg17: memref<1x32x32xbf16, #tpu.memory_space<vmem>>, %arg18: memref<1x1x32xf32, #tpu.memory_space<vmem>>, %arg19: memref<1x32x32xbf16, #tpu.memory_space<vmem>>, %arg20: memref<1x1x32xf32, #tpu.memory_space<vmem>>, %arg21: memref<1x32x32xbf16, #tpu.memory_space<vmem>>, %arg22: memref<1x1x32xf32, #tpu.memory_space<vmem>>, %arg23: memref<1x1x32xf32, #tpu.memory_space<vmem>>, %arg24: memref<1x1x32xf32, #tpu.memory_space<vmem>>, %arg25: memref<1x32x64xbf16, #tpu.memory_space<vmem>>, %arg26: memref<1x1x64xf32, #tpu.memory_space<vmem>>, %arg27: memref<1x64x32xbf16, #tpu.memory_space<vmem>>, %arg28: memref<1x1x32xf32, #tpu.memory_space<vmem>>, %arg29: memref<1x1x32xf32, #tpu.memory_space<vmem>>, %arg30: memref<1x1x32xf32, #tpu.memory_space<vmem>>, %arg31: memref<16x32xf32, #tpu.memory_space<vmem>>, %arg32: memref<16x32xf32, #tpu.memory_space<vmem>>, %arg33: memref<!tpu.dma_semaphore, #tpu.memory_space<semaphore_mem>>) attributes {dimension_semantics = [#tpu.dimension_semantics<arbitrary>], iteration_bounds = array<i64: 2>, scalar_prefetch = 0 : i64, scratch_operands = 2 : i64, tpu.core_type = #tpu.core_type<tc>, window_params = [{}, {pipeline_mode = #tpu.pipeline_mode<synchronous>, transform_indices = @transform_1, window_bounds = array<i64: 16, 32>}, {pipeline_mode = #tpu.pipeline_mode<synchronous>, transform_indices = @transform_2, window_bounds = array<i64: 16, 1>}, {pipeline_mode = #tpu.pipeline_mode<synchronous>, transform_indices = @transform_3, window_bounds = array<i64: 2, 2, 8>}, {transform_indices = @transform_4, window_bounds = array<i64: 1, 32, 32>}, {transform_indices = @transform_5, window_bounds = array<i64: 1, 1, 32>}, {transform_indices = @transform_6, window_bounds = array<i64: 1, 32, 32>}, {transform_indices = @transform_7, window_bounds = array<i64: 1, 1, 32>}, {transform_indices = @transform_8, window_bounds = array<i64: 1, 32, 32>}, {transform_indices = @transform_9, window_bounds = array<i64: 1, 1, 32>}, {transform_indices = @transform_10, window_bounds = array<i64: 1, 32, 32>}, {transform_indices = @transform_11, window_bounds = array<i64: 1, 1, 32>}, {transform_indices = @transform_12, window_bounds = array<i64: 1, 1, 32>}, {transform_indices = @transform_13, window_bounds = array<i64: 1, 1, 32>}, {transform_indices = @transform_14, window_bounds = array<i64: 1, 32, 32>}, {transform_indices = @transform_15, window_bounds = array<i64: 1, 1, 32>}, {transform_indices = @transform_16, window_bounds = array<i64: 1, 32, 32>}, {transform_indices = @transform_17, window_bounds = array<i64: 1, 1, 32>}, {transform_indices = @transform_18, window_bounds = array<i64: 1, 32, 32>}, {transform_indices = @transform_19, window_bounds = array<i64: 1, 1, 32>}, {transform_indices = @transform_20, window_bounds = array<i64: 1, 32, 32>}, {transform_indices = @transform_21, window_bounds = array<i64: 1, 1, 32>}, {transform_indices = @transform_22, window_bounds = array<i64: 1, 1, 32>}, {transform_indices = @transform_23, window_bounds = array<i64: 1, 1, 32>}, {transform_indices = @transform_24, window_bounds = array<i64: 1, 32, 64>}, {transform_indices = @transform_25, window_bounds = array<i64: 1, 1, 64>}, {transform_indices = @transform_26, window_bounds = array<i64: 1, 64, 32>}, {transform_indices = @transform_27, window_bounds = array<i64: 1, 1, 32>}, {transform_indices = @transform_28, window_bounds = array<i64: 1, 1, 32>}, {transform_indices = @transform_29, window_bounds = array<i64: 1, 1, 32>}, {pipeline_mode = #tpu.pipeline_mode<synchronous>, transform_indices = @transform_30, window_bounds = array<i64: 16, 32>}]} {
    %c0_i32 = arith.constant 0 : i32
    %0 = arith.cmpi eq, %arg0, %c0_i32 : i32
    %1 = arith.extui %0 : i1 to i32
    %c0_i32_0 = arith.constant 0 : i32
    %2 = arith.cmpi ne, %1, %c0_i32_0 : i32
    scf.if %2 {
      tpu.enqueue_dma source(%arg1 : memref<16x32xf32, #tpu.memory_space<any>>) target(%arg32 : memref<16x32xf32, #tpu.memory_space<vmem>>) target_semaphore(%arg33 : memref<!tpu.dma_semaphore, #tpu.memory_space<semaphore_mem>>)
      tpu.wait_dma2 semaphore(%arg33 : memref<!tpu.dma_semaphore, #tpu.memory_space<semaphore_mem>>) src(%arg1 : memref<16x32xf32, #tpu.memory_space<any>>) dst(%arg32 : memref<16x32xf32, #tpu.memory_space<vmem>>)
    } else {
    }
    %c0 = arith.constant 0 : index
    %c0_1 = arith.constant 0 : index
    %3 = vector.load %arg32[%c0, %c0_1] : memref<16x32xf32, #tpu.memory_space<vmem>>, vector<16x32xf32>
    %c0_2 = arith.constant 0 : index
    %c0_3 = arith.constant 0 : index
    %4 = vector.load %arg2[%c0_2, %c0_3] : memref<16x32xf32, #tpu.memory_space<vmem>>, vector<16x32xf32>
    %c0_4 = arith.constant 0 : index
    %c0_5 = arith.constant 0 : index
    %5 = vector.load %arg3[%c0_4, %c0_5] : memref<16x1xf32, #tpu.memory_space<vmem>>, vector<16x1xf32>
    %c0_6 = arith.constant 0 : index
    %c0_7 = arith.constant 0 : index
    %c0_8 = arith.constant 0 : index
    %6 = vector.load %arg4[%c0_6, %c0_7, %c0_8] : memref<2x2x8xf32, #tpu.memory_space<vmem>>, vector<2x2x8xf32>
    %7 = vector.extract_strided_slice %6 {offsets = [0, 0, 0], sizes = [2, 1, 8], strides = [1, 1, 1]} : vector<2x2x8xf32> to vector<2x1x8xf32>
    %8 = vector.extract_strided_slice %6 {offsets = [0, 1, 0], sizes = [2, 1, 8], strides = [1, 1, 1]} : vector<2x2x8xf32> to vector<2x1x8xf32>
    %9 = tpu.concatenate %7, %7, %7, %7 in 0 : vector<2x1x8xf32>, vector<2x1x8xf32>, vector<2x1x8xf32>, vector<2x1x8xf32> -> vector<8x1x8xf32>
    %10 = tpu.concatenate %8, %8, %8, %8 in 0 : vector<2x1x8xf32>, vector<2x1x8xf32>, vector<2x1x8xf32>, vector<2x1x8xf32> -> vector<8x1x8xf32>
    %11 = tpu.iota {dimensions = array<i32: 0>} : vector<8x8xi32>
    %12 = tpu.iota {dimensions = array<i32: 1>} : vector<8x8xi32>
    %13 = arith.cmpi sgt, %12, %11 : vector<8x8xi32>
    %14 = vector.shape_cast %13 : vector<8x8xi1> to vector<1x8x8xi1>
    %c0_9 = arith.constant 0 : index
    %c0_10 = arith.constant 0 : index
    %c0_11 = arith.constant 0 : index
    %15 = vector.load %arg5[%c0_9, %c0_10, %c0_11] : memref<1x32x32xbf16, #tpu.memory_space<vmem>>, vector<1x32x32xbf16>
    %16 = vector.shape_cast %15 : vector<1x32x32xbf16> to vector<32x32xbf16>
    %c0_12 = arith.constant 0 : index
    %c0_13 = arith.constant 0 : index
    %c0_14 = arith.constant 0 : index
    %17 = vector.load %arg6[%c0_12, %c0_13, %c0_14] : memref<1x1x32xf32, #tpu.memory_space<vmem>>, vector<1x1x32xf32>
    %18 = vector.shape_cast %17 : vector<1x1x32xf32> to vector<1x32xf32>
    %c0_15 = arith.constant 0 : index
    %c0_16 = arith.constant 0 : index
    %c0_17 = arith.constant 0 : index
    %19 = vector.load %arg7[%c0_15, %c0_16, %c0_17] : memref<1x32x32xbf16, #tpu.memory_space<vmem>>, vector<1x32x32xbf16>
    %20 = vector.shape_cast %19 : vector<1x32x32xbf16> to vector<32x32xbf16>
    %c0_18 = arith.constant 0 : index
    %c0_19 = arith.constant 0 : index
    %c0_20 = arith.constant 0 : index
    %21 = vector.load %arg8[%c0_18, %c0_19, %c0_20] : memref<1x1x32xf32, #tpu.memory_space<vmem>>, vector<1x1x32xf32>
    %22 = vector.shape_cast %21 : vector<1x1x32xf32> to vector<1x32xf32>
    %c0_21 = arith.constant 0 : index
    %c0_22 = arith.constant 0 : index
    %c0_23 = arith.constant 0 : index
    %23 = vector.load %arg9[%c0_21, %c0_22, %c0_23] : memref<1x32x32xbf16, #tpu.memory_space<vmem>>, vector<1x32x32xbf16>
    %24 = vector.shape_cast %23 : vector<1x32x32xbf16> to vector<32x32xbf16>
    %c0_24 = arith.constant 0 : index
    %c0_25 = arith.constant 0 : index
    %c0_26 = arith.constant 0 : index
    %25 = vector.load %arg10[%c0_24, %c0_25, %c0_26] : memref<1x1x32xf32, #tpu.memory_space<vmem>>, vector<1x1x32xf32>
    %26 = vector.shape_cast %25 : vector<1x1x32xf32> to vector<1x32xf32>
    %c0_27 = arith.constant 0 : index
    %c0_28 = arith.constant 0 : index
    %c0_29 = arith.constant 0 : index
    %27 = vector.load %arg11[%c0_27, %c0_28, %c0_29] : memref<1x32x32xbf16, #tpu.memory_space<vmem>>, vector<1x32x32xbf16>
    %28 = vector.shape_cast %27 : vector<1x32x32xbf16> to vector<32x32xbf16>
    %c0_30 = arith.constant 0 : index
    %c0_31 = arith.constant 0 : index
    %c0_32 = arith.constant 0 : index
    %29 = vector.load %arg12[%c0_30, %c0_31, %c0_32] : memref<1x1x32xf32, #tpu.memory_space<vmem>>, vector<1x1x32xf32>
    %30 = vector.shape_cast %29 : vector<1x1x32xf32> to vector<1x32xf32>
    %c0_33 = arith.constant 0 : index
    %c0_34 = arith.constant 0 : index
    %c0_35 = arith.constant 0 : index
    %31 = vector.load %arg13[%c0_33, %c0_34, %c0_35] : memref<1x1x32xf32, #tpu.memory_space<vmem>>, vector<1x1x32xf32>
    %32 = vector.shape_cast %31 : vector<1x1x32xf32> to vector<1x32xf32>
    %c0_36 = arith.constant 0 : index
    %c0_37 = arith.constant 0 : index
    %c0_38 = arith.constant 0 : index
    %33 = vector.load %arg14[%c0_36, %c0_37, %c0_38] : memref<1x1x32xf32, #tpu.memory_space<vmem>>, vector<1x1x32xf32>
    %34 = vector.shape_cast %33 : vector<1x1x32xf32> to vector<1x32xf32>
    %35 = arith.truncf %3 : vector<16x32xf32> to vector<16x32xbf16>
    %cst = arith.constant dense<0.000000e+00> : vector<16x32xf32>
    %36 = tpu.matmul %35, %16, %cst {dimension_numbers = #tpu.dot_dimension_numbers<[1], [0], [0], [1], [0, 0, 1, 1], [], []>} : vector<16x32xbf16>, vector<32x32xbf16>, vector<16x32xf32> -> vector<16x32xf32>
    %37 = vector.broadcast %18 : vector<1x32xf32> to vector<16x32xf32>
    %38 = arith.addf %36, %37 : vector<16x32xf32>
    %39 = arith.truncf %3 : vector<16x32xf32> to vector<16x32xbf16>
    %cst_39 = arith.constant dense<0.000000e+00> : vector<16x32xf32>
    %40 = tpu.matmul %39, %20, %cst_39 {dimension_numbers = #tpu.dot_dimension_numbers<[1], [0], [0], [1], [0, 0, 1, 1], [], []>} : vector<16x32xbf16>, vector<32x32xbf16>, vector<16x32xf32> -> vector<16x32xf32>
    %41 = vector.broadcast %22 : vector<1x32xf32> to vector<16x32xf32>
    %42 = arith.addf %40, %41 : vector<16x32xf32>
    %43 = arith.truncf %3 : vector<16x32xf32> to vector<16x32xbf16>
    %cst_40 = arith.constant dense<0.000000e+00> : vector<16x32xf32>
    %44 = tpu.matmul %43, %24, %cst_40 {dimension_numbers = #tpu.dot_dimension_numbers<[1], [0], [0], [1], [0, 0, 1, 1], [], []>} : vector<16x32xbf16>, vector<32x32xbf16>, vector<16x32xf32> -> vector<16x32xf32>
    %45 = vector.broadcast %26 : vector<1x32xf32> to vector<16x32xf32>
    %46 = arith.addf %44, %45 : vector<16x32xf32>
    %47 = vector.shape_cast %38 : vector<16x32xf32> to vector<2x8x32xf32>
    %48 = vector.extract_strided_slice %47 {offsets = [0, 0, 0], sizes = [2, 8, 8], strides = [1, 1, 1]} : vector<2x8x32xf32> to vector<2x8x8xf32>
    %49 = vector.extract_strided_slice %47 {offsets = [0, 0, 8], sizes = [2, 8, 8], strides = [1, 1, 1]} : vector<2x8x32xf32> to vector<2x8x8xf32>
    %50 = vector.extract_strided_slice %47 {offsets = [0, 0, 16], sizes = [2, 8, 8], strides = [1, 1, 1]} : vector<2x8x32xf32> to vector<2x8x8xf32>
    %51 = vector.extract_strided_slice %47 {offsets = [0, 0, 24], sizes = [2, 8, 8], strides = [1, 1, 1]} : vector<2x8x32xf32> to vector<2x8x8xf32>
    %52 = tpu.concatenate %48, %49, %50, %51 in 0 : vector<2x8x8xf32>, vector<2x8x8xf32>, vector<2x8x8xf32>, vector<2x8x8xf32> -> vector<8x8x8xf32>
    %53 = arith.truncf %52 : vector<8x8x8xf32> to vector<8x8x8xbf16>
    %54 = vector.shape_cast %42 : vector<16x32xf32> to vector<2x8x32xf32>
    %55 = vector.extract_strided_slice %54 {offsets = [0, 0, 0], sizes = [2, 8, 8], strides = [1, 1, 1]} : vector<2x8x32xf32> to vector<2x8x8xf32>
    %56 = vector.extract_strided_slice %54 {offsets = [0, 0, 8], sizes = [2, 8, 8], strides = [1, 1, 1]} : vector<2x8x32xf32> to vector<2x8x8xf32>
    %57 = vector.extract_strided_slice %54 {offsets = [0, 0, 16], sizes = [2, 8, 8], strides = [1, 1, 1]} : vector<2x8x32xf32> to vector<2x8x8xf32>
    %58 = vector.extract_strided_slice %54 {offsets = [0, 0, 24], sizes = [2, 8, 8], strides = [1, 1, 1]} : vector<2x8x32xf32> to vector<2x8x8xf32>
    %59 = tpu.concatenate %55, %56, %57, %58 in 0 : vector<2x8x8xf32>, vector<2x8x8xf32>, vector<2x8x8xf32>, vector<2x8x8xf32> -> vector<8x8x8xf32>
    %60 = arith.truncf %59 : vector<8x8x8xf32> to vector<8x8x8xbf16>
    %61 = vector.shape_cast %46 : vector<16x32xf32> to vector<2x8x32xf32>
    %62 = vector.extract_strided_slice %61 {offsets = [0, 0, 0], sizes = [2, 8, 8], strides = [1, 1, 1]} : vector<2x8x32xf32> to vector<2x8x8xf32>
    %63 = vector.extract_strided_slice %61 {offsets = [0, 0, 8], sizes = [2, 8, 8], strides = [1, 1, 1]} : vector<2x8x32xf32> to vector<2x8x8xf32>
    %64 = vector.extract_strided_slice %61 {offsets = [0, 0, 16], sizes = [2, 8, 8], strides = [1, 1, 1]} : vector<2x8x32xf32> to vector<2x8x8xf32>
    %65 = vector.extract_strided_slice %61 {offsets = [0, 0, 24], sizes = [2, 8, 8], strides = [1, 1, 1]} : vector<2x8x32xf32> to vector<2x8x8xf32>
    %66 = tpu.concatenate %62, %63, %64, %65 in 0 : vector<2x8x8xf32>, vector<2x8x8xf32>, vector<2x8x8xf32>, vector<2x8x8xf32> -> vector<8x8x8xf32>
    %67 = arith.truncf %66 : vector<8x8x8xf32> to vector<8x8x8xbf16>
    "tpu.trace_start"() <{level = 10 : i32, message = "nqd,nkd->nqk"}> : () -> ()
    %cst_41 = arith.constant dense<0.000000e+00> : vector<8x8x8xf32>
    %68 = tpu.matmul %53, %60, %cst_41 {dimension_numbers = #tpu.dot_dimension_numbers<[2], [2], [1], [1], [0, 0, 0, 1, 1, 1], [0], [0]>} : vector<8x8x8xbf16>, vector<8x8x8xbf16>, vector<8x8x8xf32> -> vector<8x8x8xf32>
    %cst_42 = arith.constant -1.000000e+30 : f32
    "tpu.trace_stop"() : () -> ()
    %69 = vector.shape_cast %14 : vector<1x8x8xi1> to vector<1x8x8xi1>
    %70 = vector.broadcast %69 : vector<1x8x8xi1> to vector<8x8x8xi1>
    %71 = vector.broadcast %cst_42 : f32 to vector<8x8x8xf32>
    %72 = arith.select %70, %71, %68 : vector<8x8x8xi1>, vector<8x8x8xf32>
    %cst_43 = arith.constant 0.000000e+00 : f32
    %73 = vector.broadcast %cst_43 : f32 to vector<8x1x8xf32>
    %74 = arith.cmpf ogt, %9, %73 : vector<8x1x8xf32>
    %cst_44 = arith.constant -1.000000e+30 : f32
    %75 = vector.shape_cast %74 : vector<8x1x8xi1> to vector<8x1x8xi1>
    %76 = vector.broadcast %75 : vector<8x1x8xi1> to vector<8x8x8xi1>
    %77 = vector.broadcast %cst_44 : f32 to vector<8x8x8xf32>
    %78 = arith.select %76, %77, %72 : vector<8x8x8xi1>, vector<8x8x8xf32>
    %cst_45 = arith.constant dense<0xFF800000> : vector<8x8xf32>
    %79 = vector.multi_reduction <maximumf>, %78, %cst_45 [2] : vector<8x8x8xf32> to vector<8x8xf32>
    %80 = vector.shape_cast %79 : vector<8x8xf32> to vector<8x8x1xf32>
    %81 = vector.broadcast %80 : vector<8x8x1xf32> to vector<8x8x8xf32>
    %82 = arith.subf %78, %81 : vector<8x8x8xf32>
    %83 = math.exp %82 : vector<8x8x8xf32>
    %cst_46 = arith.constant dense<0.000000e+00> : vector<8x8xf32>
    %84 = vector.multi_reduction <add>, %83, %cst_46 [2] : vector<8x8x8xf32> to vector<8x8xf32>
    %85 = vector.shape_cast %84 : vector<8x8xf32> to vector<8x8x1xf32>
    %86 = tpu.reciprocal %85 {approx = true} : vector<8x8x1xf32> -> vector<8x8x1xf32>
    %87 = vector.broadcast %86 : vector<8x8x1xf32> to vector<8x8x8xf32>
    %88 = arith.mulf %83, %87 : vector<8x8x8xf32>
    %89 = arith.truncf %88 : vector<8x8x8xf32> to vector<8x8x8xbf16>
    "tpu.trace_start"() <{level = 10 : i32, message = "nqk,nkd->nqd"}> : () -> ()
    %cst_47 = arith.constant dense<0.000000e+00> : vector<8x8x8xf32>
    %90 = tpu.matmul %89, %67, %cst_47 {dimension_numbers = #tpu.dot_dimension_numbers<[2], [1], [1], [2], [0, 0, 0, 1, 1, 2], [0], [0]>} : vector<8x8x8xbf16>, vector<8x8x8xbf16>, vector<8x8x8xf32> -> vector<8x8x8xf32>
    "tpu.trace_stop"() : () -> ()
    %91 = vector.extract_strided_slice %90 {offsets = [0, 0, 0], sizes = [2, 8, 8], strides = [1, 1, 1]} : vector<8x8x8xf32> to vector<2x8x8xf32>
    %92 = vector.shape_cast %91 : vector<2x8x8xf32> to vector<16x8xf32>
    %93 = arith.truncf %92 : vector<16x8xf32> to vector<16x8xbf16>
    %94 = vector.extract_strided_slice %28 {offsets = [0, 0], sizes = [8, 32], strides = [1, 1]} : vector<32x32xbf16> to vector<8x32xbf16>
    %cst_48 = arith.constant dense<0.000000e+00> : vector<16x32xf32>
    %95 = tpu.matmul %93, %94, %cst_48 {dimension_numbers = #tpu.dot_dimension_numbers<[1], [0], [0], [1], [0, 0, 1, 1], [], []>} : vector<16x8xbf16>, vector<8x32xbf16>, vector<16x32xf32> -> vector<16x32xf32>
    %96 = vector.broadcast %30 : vector<1x32xf32> to vector<16x32xf32>
    %97 = arith.addf %96, %95 : vector<16x32xf32>
    %98 = vector.extract_strided_slice %90 {offsets = [2, 0, 0], sizes = [2, 8, 8], strides = [1, 1, 1]} : vector<8x8x8xf32> to vector<2x8x8xf32>
    %99 = vector.shape_cast %98 : vector<2x8x8xf32> to vector<16x8xf32>
    %100 = arith.truncf %99 : vector<16x8xf32> to vector<16x8xbf16>
    %101 = vector.extract_strided_slice %28 {offsets = [8, 0], sizes = [8, 32], strides = [1, 1]} : vector<32x32xbf16> to vector<8x32xbf16>
    %cst_49 = arith.constant dense<0.000000e+00> : vector<16x32xf32>
    %102 = tpu.matmul %100, %101, %cst_49 {dimension_numbers = #tpu.dot_dimension_numbers<[1], [0], [0], [1], [0, 0, 1, 1], [], []>} : vector<16x8xbf16>, vector<8x32xbf16>, vector<16x32xf32> -> vector<16x32xf32>
    %103 = arith.addf %97, %102 : vector<16x32xf32>
    %104 = vector.extract_strided_slice %90 {offsets = [4, 0, 0], sizes = [2, 8, 8], strides = [1, 1, 1]} : vector<8x8x8xf32> to vector<2x8x8xf32>
    %105 = vector.shape_cast %104 : vector<2x8x8xf32> to vector<16x8xf32>
    %106 = arith.truncf %105 : vector<16x8xf32> to vector<16x8xbf16>
    %107 = vector.extract_strided_slice %28 {offsets = [16, 0], sizes = [8, 32], strides = [1, 1]} : vector<32x32xbf16> to vector<8x32xbf16>
    %cst_50 = arith.constant dense<0.000000e+00> : vector<16x32xf32>
    %108 = tpu.matmul %106, %107, %cst_50 {dimension_numbers = #tpu.dot_dimension_numbers<[1], [0], [0], [1], [0, 0, 1, 1], [], []>} : vector<16x8xbf16>, vector<8x32xbf16>, vector<16x32xf32> -> vector<16x32xf32>
    %109 = arith.addf %103, %108 : vector<16x32xf32>
    %110 = vector.extract_strided_slice %90 {offsets = [6, 0, 0], sizes = [2, 8, 8], strides = [1, 1, 1]} : vector<8x8x8xf32> to vector<2x8x8xf32>
    %111 = vector.shape_cast %110 : vector<2x8x8xf32> to vector<16x8xf32>
    %112 = arith.truncf %111 : vector<16x8xf32> to vector<16x8xbf16>
    %113 = vector.extract_strided_slice %28 {offsets = [24, 0], sizes = [8, 32], strides = [1, 1]} : vector<32x32xbf16> to vector<8x32xbf16>
    %cst_51 = arith.constant dense<0.000000e+00> : vector<16x32xf32>
    %114 = tpu.matmul %112, %113, %cst_51 {dimension_numbers = #tpu.dot_dimension_numbers<[1], [0], [0], [1], [0, 0, 1, 1], [], []>} : vector<16x8xbf16>, vector<8x32xbf16>, vector<16x32xf32> -> vector<16x32xf32>
    %115 = arith.addf %109, %114 : vector<16x32xf32>
    %116 = arith.addf %115, %3 : vector<16x32xf32>
    %cst_52 = arith.constant dense<0.000000e+00> : vector<16xf32>
    %117 = vector.multi_reduction <add>, %116, %cst_52 [1] : vector<16x32xf32> to vector<16xf32>
    %118 = vector.shape_cast %117 : vector<16xf32> to vector<16x1xf32>
    %cst_53 = arith.constant 3.200000e+01 : f32
    %119 = vector.broadcast %cst_53 : f32 to vector<16x1xf32>
    %120 = arith.divf %118, %119 : vector<16x1xf32>
    %121 = vector.broadcast %120 : vector<16x1xf32> to vector<16x32xf32>
    %122 = arith.subf %116, %121 : vector<16x32xf32>
    %123 = arith.mulf %122, %122 : vector<16x32xf32>
    %cst_54 = arith.constant dense<0.000000e+00> : vector<16xf32>
    %124 = vector.multi_reduction <add>, %123, %cst_54 [1] : vector<16x32xf32> to vector<16xf32>
    %125 = vector.shape_cast %124 : vector<16xf32> to vector<16x1xf32>
    %cst_55 = arith.constant 3.200000e+01 : f32
    %126 = vector.broadcast %cst_55 : f32 to vector<16x1xf32>
    %127 = arith.divf %125, %126 : vector<16x1xf32>
    %128 = vector.broadcast %120 : vector<16x1xf32> to vector<16x32xf32>
    %129 = arith.subf %116, %128 : vector<16x32xf32>
    %cst_56 = arith.constant 9.99999974E-6 : f32
    %130 = vector.broadcast %cst_56 : f32 to vector<16x1xf32>
    %131 = arith.addf %127, %130 : vector<16x1xf32>
    %132 = math.rsqrt %131 : vector<16x1xf32>
    %133 = vector.broadcast %132 : vector<16x1xf32> to vector<16x32xf32>
    %134 = arith.mulf %129, %133 : vector<16x32xf32>
    %135 = vector.broadcast %32 : vector<1x32xf32> to vector<16x32xf32>
    %136 = arith.mulf %134, %135 : vector<16x32xf32>
    %137 = vector.broadcast %34 : vector<1x32xf32> to vector<16x32xf32>
    %138 = arith.addf %136, %137 : vector<16x32xf32>
    %139 = vector.broadcast %5 : vector<16x1xf32> to vector<16x32xf32>
    %140 = arith.mulf %138, %139 : vector<16x32xf32>
    %c0_57 = arith.constant 0 : index
    %c0_58 = arith.constant 0 : index
    %c0_59 = arith.constant 0 : index
    %141 = vector.load %arg15[%c0_57, %c0_58, %c0_59] : memref<1x32x32xbf16, #tpu.memory_space<vmem>>, vector<1x32x32xbf16>
    %142 = vector.shape_cast %141 : vector<1x32x32xbf16> to vector<32x32xbf16>
    %c0_60 = arith.constant 0 : index
    %c0_61 = arith.constant 0 : index
    %c0_62 = arith.constant 0 : index
    %143 = vector.load %arg16[%c0_60, %c0_61, %c0_62] : memref<1x1x32xf32, #tpu.memory_space<vmem>>, vector<1x1x32xf32>
    %144 = vector.shape_cast %143 : vector<1x1x32xf32> to vector<1x32xf32>
    %c0_63 = arith.constant 0 : index
    %c0_64 = arith.constant 0 : index
    %c0_65 = arith.constant 0 : index
    %145 = vector.load %arg17[%c0_63, %c0_64, %c0_65] : memref<1x32x32xbf16, #tpu.memory_space<vmem>>, vector<1x32x32xbf16>
    %146 = vector.shape_cast %145 : vector<1x32x32xbf16> to vector<32x32xbf16>
    %c0_66 = arith.constant 0 : index
    %c0_67 = arith.constant 0 : index
    %c0_68 = arith.constant 0 : index
    %147 = vector.load %arg18[%c0_66, %c0_67, %c0_68] : memref<1x1x32xf32, #tpu.memory_space<vmem>>, vector<1x1x32xf32>
    %148 = vector.shape_cast %147 : vector<1x1x32xf32> to vector<1x32xf32>
    %c0_69 = arith.constant 0 : index
    %c0_70 = arith.constant 0 : index
    %c0_71 = arith.constant 0 : index
    %149 = vector.load %arg19[%c0_69, %c0_70, %c0_71] : memref<1x32x32xbf16, #tpu.memory_space<vmem>>, vector<1x32x32xbf16>
    %150 = vector.shape_cast %149 : vector<1x32x32xbf16> to vector<32x32xbf16>
    %c0_72 = arith.constant 0 : index
    %c0_73 = arith.constant 0 : index
    %c0_74 = arith.constant 0 : index
    %151 = vector.load %arg20[%c0_72, %c0_73, %c0_74] : memref<1x1x32xf32, #tpu.memory_space<vmem>>, vector<1x1x32xf32>
    %152 = vector.shape_cast %151 : vector<1x1x32xf32> to vector<1x32xf32>
    %c0_75 = arith.constant 0 : index
    %c0_76 = arith.constant 0 : index
    %c0_77 = arith.constant 0 : index
    %153 = vector.load %arg21[%c0_75, %c0_76, %c0_77] : memref<1x32x32xbf16, #tpu.memory_space<vmem>>, vector<1x32x32xbf16>
    %154 = vector.shape_cast %153 : vector<1x32x32xbf16> to vector<32x32xbf16>
    %c0_78 = arith.constant 0 : index
    %c0_79 = arith.constant 0 : index
    %c0_80 = arith.constant 0 : index
    %155 = vector.load %arg22[%c0_78, %c0_79, %c0_80] : memref<1x1x32xf32, #tpu.memory_space<vmem>>, vector<1x1x32xf32>
    %156 = vector.shape_cast %155 : vector<1x1x32xf32> to vector<1x32xf32>
    %c0_81 = arith.constant 0 : index
    %c0_82 = arith.constant 0 : index
    %c0_83 = arith.constant 0 : index
    %157 = vector.load %arg23[%c0_81, %c0_82, %c0_83] : memref<1x1x32xf32, #tpu.memory_space<vmem>>, vector<1x1x32xf32>
    %158 = vector.shape_cast %157 : vector<1x1x32xf32> to vector<1x32xf32>
    %c0_84 = arith.constant 0 : index
    %c0_85 = arith.constant 0 : index
    %c0_86 = arith.constant 0 : index
    %159 = vector.load %arg24[%c0_84, %c0_85, %c0_86] : memref<1x1x32xf32, #tpu.memory_space<vmem>>, vector<1x1x32xf32>
    %160 = vector.shape_cast %159 : vector<1x1x32xf32> to vector<1x32xf32>
    %161 = arith.truncf %140 : vector<16x32xf32> to vector<16x32xbf16>
    %cst_87 = arith.constant dense<0.000000e+00> : vector<16x32xf32>
    %162 = tpu.matmul %161, %142, %cst_87 {dimension_numbers = #tpu.dot_dimension_numbers<[1], [0], [0], [1], [0, 0, 1, 1], [], []>} : vector<16x32xbf16>, vector<32x32xbf16>, vector<16x32xf32> -> vector<16x32xf32>
    %163 = vector.broadcast %144 : vector<1x32xf32> to vector<16x32xf32>
    %164 = arith.addf %162, %163 : vector<16x32xf32>
    %165 = arith.truncf %4 : vector<16x32xf32> to vector<16x32xbf16>
    %cst_88 = arith.constant dense<0.000000e+00> : vector<16x32xf32>
    %166 = tpu.matmul %165, %146, %cst_88 {dimension_numbers = #tpu.dot_dimension_numbers<[1], [0], [0], [1], [0, 0, 1, 1], [], []>} : vector<16x32xbf16>, vector<32x32xbf16>, vector<16x32xf32> -> vector<16x32xf32>
    %167 = vector.broadcast %148 : vector<1x32xf32> to vector<16x32xf32>
    %168 = arith.addf %166, %167 : vector<16x32xf32>
    %169 = arith.truncf %4 : vector<16x32xf32> to vector<16x32xbf16>
    %cst_89 = arith.constant dense<0.000000e+00> : vector<16x32xf32>
    %170 = tpu.matmul %169, %150, %cst_89 {dimension_numbers = #tpu.dot_dimension_numbers<[1], [0], [0], [1], [0, 0, 1, 1], [], []>} : vector<16x32xbf16>, vector<32x32xbf16>, vector<16x32xf32> -> vector<16x32xf32>
    %171 = vector.broadcast %152 : vector<1x32xf32> to vector<16x32xf32>
    %172 = arith.addf %170, %171 : vector<16x32xf32>
    %173 = vector.shape_cast %164 : vector<16x32xf32> to vector<2x8x32xf32>
    %174 = vector.extract_strided_slice %173 {offsets = [0, 0, 0], sizes = [2, 8, 8], strides = [1, 1, 1]} : vector<2x8x32xf32> to vector<2x8x8xf32>
    %175 = vector.extract_strided_slice %173 {offsets = [0, 0, 8], sizes = [2, 8, 8], strides = [1, 1, 1]} : vector<2x8x32xf32> to vector<2x8x8xf32>
    %176 = vector.extract_strided_slice %173 {offsets = [0, 0, 16], sizes = [2, 8, 8], strides = [1, 1, 1]} : vector<2x8x32xf32> to vector<2x8x8xf32>
    %177 = vector.extract_strided_slice %173 {offsets = [0, 0, 24], sizes = [2, 8, 8], strides = [1, 1, 1]} : vector<2x8x32xf32> to vector<2x8x8xf32>
    %178 = tpu.concatenate %174, %175, %176, %177 in 0 : vector<2x8x8xf32>, vector<2x8x8xf32>, vector<2x8x8xf32>, vector<2x8x8xf32> -> vector<8x8x8xf32>
    %179 = arith.truncf %178 : vector<8x8x8xf32> to vector<8x8x8xbf16>
    %180 = vector.shape_cast %168 : vector<16x32xf32> to vector<2x8x32xf32>
    %181 = vector.extract_strided_slice %180 {offsets = [0, 0, 0], sizes = [2, 8, 8], strides = [1, 1, 1]} : vector<2x8x32xf32> to vector<2x8x8xf32>
    %182 = vector.extract_strided_slice %180 {offsets = [0, 0, 8], sizes = [2, 8, 8], strides = [1, 1, 1]} : vector<2x8x32xf32> to vector<2x8x8xf32>
    %183 = vector.extract_strided_slice %180 {offsets = [0, 0, 16], sizes = [2, 8, 8], strides = [1, 1, 1]} : vector<2x8x32xf32> to vector<2x8x8xf32>
    %184 = vector.extract_strided_slice %180 {offsets = [0, 0, 24], sizes = [2, 8, 8], strides = [1, 1, 1]} : vector<2x8x32xf32> to vector<2x8x8xf32>
    %185 = tpu.concatenate %181, %182, %183, %184 in 0 : vector<2x8x8xf32>, vector<2x8x8xf32>, vector<2x8x8xf32>, vector<2x8x8xf32> -> vector<8x8x8xf32>
    %186 = arith.truncf %185 : vector<8x8x8xf32> to vector<8x8x8xbf16>
    %187 = vector.shape_cast %172 : vector<16x32xf32> to vector<2x8x32xf32>
    %188 = vector.extract_strided_slice %187 {offsets = [0, 0, 0], sizes = [2, 8, 8], strides = [1, 1, 1]} : vector<2x8x32xf32> to vector<2x8x8xf32>
    %189 = vector.extract_strided_slice %187 {offsets = [0, 0, 8], sizes = [2, 8, 8], strides = [1, 1, 1]} : vector<2x8x32xf32> to vector<2x8x8xf32>
    %190 = vector.extract_strided_slice %187 {offsets = [0, 0, 16], sizes = [2, 8, 8], strides = [1, 1, 1]} : vector<2x8x32xf32> to vector<2x8x8xf32>
    %191 = vector.extract_strided_slice %187 {offsets = [0, 0, 24], sizes = [2, 8, 8], strides = [1, 1, 1]} : vector<2x8x32xf32> to vector<2x8x8xf32>
    %192 = tpu.concatenate %188, %189, %190, %191 in 0 : vector<2x8x8xf32>, vector<2x8x8xf32>, vector<2x8x8xf32>, vector<2x8x8xf32> -> vector<8x8x8xf32>
    %193 = arith.truncf %192 : vector<8x8x8xf32> to vector<8x8x8xbf16>
    "tpu.trace_start"() <{level = 10 : i32, message = "nqd,nkd->nqk"}> : () -> ()
    %cst_90 = arith.constant dense<0.000000e+00> : vector<8x8x8xf32>
    %194 = tpu.matmul %179, %186, %cst_90 {dimension_numbers = #tpu.dot_dimension_numbers<[2], [2], [1], [1], [0, 0, 0, 1, 1, 1], [0], [0]>} : vector<8x8x8xbf16>, vector<8x8x8xbf16>, vector<8x8x8xf32> -> vector<8x8x8xf32>
    %cst_91 = arith.constant 0.000000e+00 : f32
    "tpu.trace_stop"() : () -> ()
    %195 = vector.broadcast %cst_91 : f32 to vector<8x1x8xf32>
    %196 = arith.cmpf ogt, %10, %195 : vector<8x1x8xf32>
    %cst_92 = arith.constant -1.000000e+30 : f32
    %197 = vector.shape_cast %196 : vector<8x1x8xi1> to vector<8x1x8xi1>
    %198 = vector.broadcast %197 : vector<8x1x8xi1> to vector<8x8x8xi1>
    %199 = vector.broadcast %cst_92 : f32 to vector<8x8x8xf32>
    %200 = arith.select %198, %199, %194 : vector<8x8x8xi1>, vector<8x8x8xf32>
    %cst_93 = arith.constant dense<0xFF800000> : vector<8x8xf32>
    %201 = vector.multi_reduction <maximumf>, %200, %cst_93 [2] : vector<8x8x8xf32> to vector<8x8xf32>
    %202 = vector.shape_cast %201 : vector<8x8xf32> to vector<8x8x1xf32>
    %203 = vector.broadcast %202 : vector<8x8x1xf32> to vector<8x8x8xf32>
    %204 = arith.subf %200, %203 : vector<8x8x8xf32>
    %205 = math.exp %204 : vector<8x8x8xf32>
    %cst_94 = arith.constant dense<0.000000e+00> : vector<8x8xf32>
    %206 = vector.multi_reduction <add>, %205, %cst_94 [2] : vector<8x8x8xf32> to vector<8x8xf32>
    %207 = vector.shape_cast %206 : vector<8x8xf32> to vector<8x8x1xf32>
    %208 = tpu.reciprocal %207 {approx = true} : vector<8x8x1xf32> -> vector<8x8x1xf32>
    %209 = vector.broadcast %208 : vector<8x8x1xf32> to vector<8x8x8xf32>
    %210 = arith.mulf %205, %209 : vector<8x8x8xf32>
    %211 = arith.truncf %210 : vector<8x8x8xf32> to vector<8x8x8xbf16>
    "tpu.trace_start"() <{level = 10 : i32, message = "nqk,nkd->nqd"}> : () -> ()
    %cst_95 = arith.constant dense<0.000000e+00> : vector<8x8x8xf32>
    %212 = tpu.matmul %211, %193, %cst_95 {dimension_numbers = #tpu.dot_dimension_numbers<[2], [1], [1], [2], [0, 0, 0, 1, 1, 2], [0], [0]>} : vector<8x8x8xbf16>, vector<8x8x8xbf16>, vector<8x8x8xf32> -> vector<8x8x8xf32>
    "tpu.trace_stop"() : () -> ()
    %213 = vector.extract_strided_slice %212 {offsets = [0, 0, 0], sizes = [2, 8, 8], strides = [1, 1, 1]} : vector<8x8x8xf32> to vector<2x8x8xf32>
    %214 = vector.shape_cast %213 : vector<2x8x8xf32> to vector<16x8xf32>
    %215 = arith.truncf %214 : vector<16x8xf32> to vector<16x8xbf16>
    %216 = vector.extract_strided_slice %154 {offsets = [0, 0], sizes = [8, 32], strides = [1, 1]} : vector<32x32xbf16> to vector<8x32xbf16>
    %cst_96 = arith.constant dense<0.000000e+00> : vector<16x32xf32>
    %217 = tpu.matmul %215, %216, %cst_96 {dimension_numbers = #tpu.dot_dimension_numbers<[1], [0], [0], [1], [0, 0, 1, 1], [], []>} : vector<16x8xbf16>, vector<8x32xbf16>, vector<16x32xf32> -> vector<16x32xf32>
    %218 = vector.broadcast %156 : vector<1x32xf32> to vector<16x32xf32>
    %219 = arith.addf %218, %217 : vector<16x32xf32>
    %220 = vector.extract_strided_slice %212 {offsets = [2, 0, 0], sizes = [2, 8, 8], strides = [1, 1, 1]} : vector<8x8x8xf32> to vector<2x8x8xf32>
    %221 = vector.shape_cast %220 : vector<2x8x8xf32> to vector<16x8xf32>
    %222 = arith.truncf %221 : vector<16x8xf32> to vector<16x8xbf16>
    %223 = vector.extract_strided_slice %154 {offsets = [8, 0], sizes = [8, 32], strides = [1, 1]} : vector<32x32xbf16> to vector<8x32xbf16>
    %cst_97 = arith.constant dense<0.000000e+00> : vector<16x32xf32>
    %224 = tpu.matmul %222, %223, %cst_97 {dimension_numbers = #tpu.dot_dimension_numbers<[1], [0], [0], [1], [0, 0, 1, 1], [], []>} : vector<16x8xbf16>, vector<8x32xbf16>, vector<16x32xf32> -> vector<16x32xf32>
    %225 = arith.addf %219, %224 : vector<16x32xf32>
    %226 = vector.extract_strided_slice %212 {offsets = [4, 0, 0], sizes = [2, 8, 8], strides = [1, 1, 1]} : vector<8x8x8xf32> to vector<2x8x8xf32>
    %227 = vector.shape_cast %226 : vector<2x8x8xf32> to vector<16x8xf32>
    %228 = arith.truncf %227 : vector<16x8xf32> to vector<16x8xbf16>
    %229 = vector.extract_strided_slice %154 {offsets = [16, 0], sizes = [8, 32], strides = [1, 1]} : vector<32x32xbf16> to vector<8x32xbf16>
    %cst_98 = arith.constant dense<0.000000e+00> : vector<16x32xf32>
    %230 = tpu.matmul %228, %229, %cst_98 {dimension_numbers = #tpu.dot_dimension_numbers<[1], [0], [0], [1], [0, 0, 1, 1], [], []>} : vector<16x8xbf16>, vector<8x32xbf16>, vector<16x32xf32> -> vector<16x32xf32>
    %231 = arith.addf %225, %230 : vector<16x32xf32>
    %232 = vector.extract_strided_slice %212 {offsets = [6, 0, 0], sizes = [2, 8, 8], strides = [1, 1, 1]} : vector<8x8x8xf32> to vector<2x8x8xf32>
    %233 = vector.shape_cast %232 : vector<2x8x8xf32> to vector<16x8xf32>
    %234 = arith.truncf %233 : vector<16x8xf32> to vector<16x8xbf16>
    %235 = vector.extract_strided_slice %154 {offsets = [24, 0], sizes = [8, 32], strides = [1, 1]} : vector<32x32xbf16> to vector<8x32xbf16>
    %cst_99 = arith.constant dense<0.000000e+00> : vector<16x32xf32>
    %236 = tpu.matmul %234, %235, %cst_99 {dimension_numbers = #tpu.dot_dimension_numbers<[1], [0], [0], [1], [0, 0, 1, 1], [], []>} : vector<16x8xbf16>, vector<8x32xbf16>, vector<16x32xf32> -> vector<16x32xf32>
    %237 = arith.addf %231, %236 : vector<16x32xf32>
    %238 = arith.addf %237, %140 : vector<16x32xf32>
    %cst_100 = arith.constant dense<0.000000e+00> : vector<16xf32>
    %239 = vector.multi_reduction <add>, %238, %cst_100 [1] : vector<16x32xf32> to vector<16xf32>
    %240 = vector.shape_cast %239 : vector<16xf32> to vector<16x1xf32>
    %cst_101 = arith.constant 3.200000e+01 : f32
    %241 = vector.broadcast %cst_101 : f32 to vector<16x1xf32>
    %242 = arith.divf %240, %241 : vector<16x1xf32>
    %243 = vector.broadcast %242 : vector<16x1xf32> to vector<16x32xf32>
    %244 = arith.subf %238, %243 : vector<16x32xf32>
    %245 = arith.mulf %244, %244 : vector<16x32xf32>
    %cst_102 = arith.constant dense<0.000000e+00> : vector<16xf32>
    %246 = vector.multi_reduction <add>, %245, %cst_102 [1] : vector<16x32xf32> to vector<16xf32>
    %247 = vector.shape_cast %246 : vector<16xf32> to vector<16x1xf32>
    %cst_103 = arith.constant 3.200000e+01 : f32
    %248 = vector.broadcast %cst_103 : f32 to vector<16x1xf32>
    %249 = arith.divf %247, %248 : vector<16x1xf32>
    %250 = vector.broadcast %242 : vector<16x1xf32> to vector<16x32xf32>
    %251 = arith.subf %238, %250 : vector<16x32xf32>
    %cst_104 = arith.constant 9.99999974E-6 : f32
    %252 = vector.broadcast %cst_104 : f32 to vector<16x1xf32>
    %253 = arith.addf %249, %252 : vector<16x1xf32>
    %254 = math.rsqrt %253 : vector<16x1xf32>
    %255 = vector.broadcast %254 : vector<16x1xf32> to vector<16x32xf32>
    %256 = arith.mulf %251, %255 : vector<16x32xf32>
    %257 = vector.broadcast %158 : vector<1x32xf32> to vector<16x32xf32>
    %258 = arith.mulf %256, %257 : vector<16x32xf32>
    %259 = vector.broadcast %160 : vector<1x32xf32> to vector<16x32xf32>
    %260 = arith.addf %258, %259 : vector<16x32xf32>
    %261 = vector.broadcast %5 : vector<16x1xf32> to vector<16x32xf32>
    %262 = arith.mulf %260, %261 : vector<16x32xf32>
    %c0_105 = arith.constant 0 : index
    %c0_106 = arith.constant 0 : index
    %c0_107 = arith.constant 0 : index
    %263 = vector.load %arg25[%c0_105, %c0_106, %c0_107] : memref<1x32x64xbf16, #tpu.memory_space<vmem>>, vector<1x32x64xbf16>
    %264 = vector.shape_cast %263 : vector<1x32x64xbf16> to vector<32x64xbf16>
    %c0_108 = arith.constant 0 : index
    %c0_109 = arith.constant 0 : index
    %c0_110 = arith.constant 0 : index
    %265 = vector.load %arg26[%c0_108, %c0_109, %c0_110] : memref<1x1x64xf32, #tpu.memory_space<vmem>>, vector<1x1x64xf32>
    %266 = vector.shape_cast %265 : vector<1x1x64xf32> to vector<1x64xf32>
    %c0_111 = arith.constant 0 : index
    %c0_112 = arith.constant 0 : index
    %c0_113 = arith.constant 0 : index
    %267 = vector.load %arg27[%c0_111, %c0_112, %c0_113] : memref<1x64x32xbf16, #tpu.memory_space<vmem>>, vector<1x64x32xbf16>
    %268 = vector.shape_cast %267 : vector<1x64x32xbf16> to vector<64x32xbf16>
    %c0_114 = arith.constant 0 : index
    %c0_115 = arith.constant 0 : index
    %c0_116 = arith.constant 0 : index
    %269 = vector.load %arg28[%c0_114, %c0_115, %c0_116] : memref<1x1x32xf32, #tpu.memory_space<vmem>>, vector<1x1x32xf32>
    %270 = vector.shape_cast %269 : vector<1x1x32xf32> to vector<1x32xf32>
    %c0_117 = arith.constant 0 : index
    %c0_118 = arith.constant 0 : index
    %c0_119 = arith.constant 0 : index
    %271 = vector.load %arg29[%c0_117, %c0_118, %c0_119] : memref<1x1x32xf32, #tpu.memory_space<vmem>>, vector<1x1x32xf32>
    %272 = vector.shape_cast %271 : vector<1x1x32xf32> to vector<1x32xf32>
    %c0_120 = arith.constant 0 : index
    %c0_121 = arith.constant 0 : index
    %c0_122 = arith.constant 0 : index
    %273 = vector.load %arg30[%c0_120, %c0_121, %c0_122] : memref<1x1x32xf32, #tpu.memory_space<vmem>>, vector<1x1x32xf32>
    %274 = vector.shape_cast %273 : vector<1x1x32xf32> to vector<1x32xf32>
    %275 = arith.truncf %262 : vector<16x32xf32> to vector<16x32xbf16>
    %cst_123 = arith.constant dense<0.000000e+00> : vector<16x64xf32>
    %276 = tpu.matmul %275, %264, %cst_123 {dimension_numbers = #tpu.dot_dimension_numbers<[1], [0], [0], [1], [0, 0, 1, 1], [], []>} : vector<16x32xbf16>, vector<32x64xbf16>, vector<16x64xf32> -> vector<16x64xf32>
    %277 = vector.broadcast %266 : vector<1x64xf32> to vector<16x64xf32>
    %278 = arith.addf %276, %277 : vector<16x64xf32>
    %cst_124 = arith.constant 0.000000e+00 : f32
    %279 = vector.broadcast %cst_124 : f32 to vector<16x64xf32>
    %280 = arith.maximumf %278, %279 : vector<16x64xf32>
    %281 = arith.truncf %280 : vector<16x64xf32> to vector<16x64xbf16>
    %cst_125 = arith.constant dense<0.000000e+00> : vector<16x32xf32>
    %282 = tpu.matmul %281, %268, %cst_125 {dimension_numbers = #tpu.dot_dimension_numbers<[1], [0], [0], [1], [0, 0, 1, 1], [], []>} : vector<16x64xbf16>, vector<64x32xbf16>, vector<16x32xf32> -> vector<16x32xf32>
    %283 = vector.broadcast %270 : vector<1x32xf32> to vector<16x32xf32>
    %284 = arith.addf %282, %283 : vector<16x32xf32>
    %285 = arith.addf %284, %262 : vector<16x32xf32>
    %cst_126 = arith.constant dense<0.000000e+00> : vector<16xf32>
    %286 = vector.multi_reduction <add>, %285, %cst_126 [1] : vector<16x32xf32> to vector<16xf32>
    %287 = vector.shape_cast %286 : vector<16xf32> to vector<16x1xf32>
    %cst_127 = arith.constant 3.200000e+01 : f32
    %288 = vector.broadcast %cst_127 : f32 to vector<16x1xf32>
    %289 = arith.divf %287, %288 : vector<16x1xf32>
    %290 = vector.broadcast %289 : vector<16x1xf32> to vector<16x32xf32>
    %291 = arith.subf %285, %290 : vector<16x32xf32>
    %292 = arith.mulf %291, %291 : vector<16x32xf32>
    %cst_128 = arith.constant dense<0.000000e+00> : vector<16xf32>
    %293 = vector.multi_reduction <add>, %292, %cst_128 [1] : vector<16x32xf32> to vector<16xf32>
    %294 = vector.shape_cast %293 : vector<16xf32> to vector<16x1xf32>
    %cst_129 = arith.constant 3.200000e+01 : f32
    %295 = vector.broadcast %cst_129 : f32 to vector<16x1xf32>
    %296 = arith.divf %294, %295 : vector<16x1xf32>
    %297 = vector.broadcast %289 : vector<16x1xf32> to vector<16x32xf32>
    %298 = arith.subf %285, %297 : vector<16x32xf32>
    %cst_130 = arith.constant 9.99999974E-6 : f32
    %299 = vector.broadcast %cst_130 : f32 to vector<16x1xf32>
    %300 = arith.addf %296, %299 : vector<16x1xf32>
    %301 = math.rsqrt %300 : vector<16x1xf32>
    %302 = vector.broadcast %301 : vector<16x1xf32> to vector<16x32xf32>
    %303 = arith.mulf %298, %302 : vector<16x32xf32>
    %304 = vector.broadcast %272 : vector<1x32xf32> to vector<16x32xf32>
    %305 = arith.mulf %303, %304 : vector<16x32xf32>
    %306 = vector.broadcast %274 : vector<1x32xf32> to vector<16x32xf32>
    %307 = arith.addf %305, %306 : vector<16x32xf32>
    %308 = vector.broadcast %5 : vector<16x1xf32> to vector<16x32xf32>
    %309 = arith.mulf %307, %308 : vector<16x32xf32>
    %c0_131 = arith.constant 0 : index
    %c0_132 = arith.constant 0 : index
    %310 = vector.load %arg32[%c0_131, %c0_132] : memref<16x32xf32, #tpu.memory_space<vmem>>, vector<16x32xf32>
    tpu.vector_store %arg32[%c0_131, %c0_132], %309 {strides = array<i32>} : memref<16x32xf32, #tpu.memory_space<vmem>>, vector<16x32xf32>,
    %c1_i32 = arith.constant 1 : i32
    %311 = arith.cmpi eq, %arg0, %c1_i32 : i32
    %312 = arith.extui %311 : i1 to i32
    %c0_i32_133 = arith.constant 0 : i32
    %313 = arith.cmpi ne, %312, %c0_i32_133 : i32
    scf.if %313 {
      %c0_134 = arith.constant 0 : index
      %c0_135 = arith.constant 0 : index
      %314 = vector.load %arg31[%c0_134, %c0_135] : memref<16x32xf32, #tpu.memory_space<vmem>>, vector<16x32xf32>
      tpu.vector_store %arg31[%c0_134, %c0_135], %309 {strides = array<i32>} : memref<16x32xf32, #tpu.memory_space<vmem>>, vector<16x32xf32>,
    } else {
    }
    return
  }
  func.func @transform_1(%arg0: i32) -> (i32, i32) {
    %c0_i32 = arith.constant 0 : i32
    %c0_i32_0 = arith.constant 0 : i32
    %c0_i32_1 = arith.constant 0 : i32
    return %c0_i32, %c0_i32_0 : i32, i32
  }
  func.func @transform_2(%arg0: i32) -> (i32, i32) {
    %c0_i32 = arith.constant 0 : i32
    %c0_i32_0 = arith.constant 0 : i32
    %c0_i32_1 = arith.constant 0 : i32
    return %c0_i32, %c0_i32_0 : i32, i32
  }
  func.func @transform_3(%arg0: i32) -> (i32, i32, i32) {
    %c0_i32 = arith.constant 0 : i32
    %c0_i32_0 = arith.constant 0 : i32
    %c0_i32_1 = arith.constant 0 : i32
    %c0_i32_2 = arith.constant 0 : i32
    return %c0_i32, %c0_i32_0, %c0_i32_1 : i32, i32, i32
  }
  func.func @transform_4(%arg0: i32) -> (i32, i32, i32) {
    %c0_i32 = arith.constant 0 : i32
    %c0_i32_0 = arith.constant 0 : i32
    %c0_i32_1 = arith.constant 0 : i32
    return %arg0, %c0_i32, %c0_i32_0 : i32, i32, i32
  }
  func.func @transform_5(%arg0: i32) -> (i32, i32, i32) {
    %c0_i32 = arith.constant 0 : i32
    %c0_i32_0 = arith.constant 0 : i32
    %c0_i32_1 = arith.constant 0 : i32
    return %arg0, %c0_i32, %c0_i32_0 : i32, i32, i32
  }
  func.func @transform_6(%arg0: i32) -> (i32, i32, i32) {
    %c0_i32 = arith.constant 0 : i32
    %c0_i32_0 = arith.constant 0 : i32
    %c0_i32_1 = arith.constant 0 : i32
    return %arg0, %c0_i32, %c0_i32_0 : i32, i32, i32
  }
  func.func @transform_7(%arg0: i32) -> (i32, i32, i32) {
    %c0_i32 = arith.constant 0 : i32
    %c0_i32_0 = arith.constant 0 : i32
    %c0_i32_1 = arith.constant 0 : i32
    return %arg0, %c0_i32, %c0_i32_0 : i32, i32, i32
  }
  func.func @transform_8(%arg0: i32) -> (i32, i32, i32) {
    %c0_i32 = arith.constant 0 : i32
    %c0_i32_0 = arith.constant 0 : i32
    %c0_i32_1 = arith.constant 0 : i32
    return %arg0, %c0_i32, %c0_i32_0 : i32, i32, i32
  }
  func.func @transform_9(%arg0: i32) -> (i32, i32, i32) {
    %c0_i32 = arith.constant 0 : i32
    %c0_i32_0 = arith.constant 0 : i32
    %c0_i32_1 = arith.constant 0 : i32
    return %arg0, %c0_i32, %c0_i32_0 : i32, i32, i32
  }
  func.func @transform_10(%arg0: i32) -> (i32, i32, i32) {
    %c0_i32 = arith.constant 0 : i32
    %c0_i32_0 = arith.constant 0 : i32
    %c0_i32_1 = arith.constant 0 : i32
    return %arg0, %c0_i32, %c0_i32_0 : i32, i32, i32
  }
  func.func @transform_11(%arg0: i32) -> (i32, i32, i32) {
    %c0_i32 = arith.constant 0 : i32
    %c0_i32_0 = arith.constant 0 : i32
    %c0_i32_1 = arith.constant 0 : i32
    return %arg0, %c0_i32, %c0_i32_0 : i32, i32, i32
  }
  func.func @transform_12(%arg0: i32) -> (i32, i32, i32) {
    %c0_i32 = arith.constant 0 : i32
    %c0_i32_0 = arith.constant 0 : i32
    %c0_i32_1 = arith.constant 0 : i32
    return %arg0, %c0_i32, %c0_i32_0 : i32, i32, i32
  }
  func.func @transform_13(%arg0: i32) -> (i32, i32, i32) {
    %c0_i32 = arith.constant 0 : i32
    %c0_i32_0 = arith.constant 0 : i32
    %c0_i32_1 = arith.constant 0 : i32
    return %arg0, %c0_i32, %c0_i32_0 : i32, i32, i32
  }
  func.func @transform_14(%arg0: i32) -> (i32, i32, i32) {
    %c0_i32 = arith.constant 0 : i32
    %c0_i32_0 = arith.constant 0 : i32
    %c0_i32_1 = arith.constant 0 : i32
    return %arg0, %c0_i32, %c0_i32_0 : i32, i32, i32
  }
  func.func @transform_15(%arg0: i32) -> (i32, i32, i32) {
    %c0_i32 = arith.constant 0 : i32
    %c0_i32_0 = arith.constant 0 : i32
    %c0_i32_1 = arith.constant 0 : i32
    return %arg0, %c0_i32, %c0_i32_0 : i32, i32, i32
  }
  func.func @transform_16(%arg0: i32) -> (i32, i32, i32) {
    %c0_i32 = arith.constant 0 : i32
    %c0_i32_0 = arith.constant 0 : i32
    %c0_i32_1 = arith.constant 0 : i32
    return %arg0, %c0_i32, %c0_i32_0 : i32, i32, i32
  }
  func.func @transform_17(%arg0: i32) -> (i32, i32, i32) {
    %c0_i32 = arith.constant 0 : i32
    %c0_i32_0 = arith.constant 0 : i32
    %c0_i32_1 = arith.constant 0 : i32
    return %arg0, %c0_i32, %c0_i32_0 : i32, i32, i32
  }
  func.func @transform_18(%arg0: i32) -> (i32, i32, i32) {
    %c0_i32 = arith.constant 0 : i32
    %c0_i32_0 = arith.constant 0 : i32
    %c0_i32_1 = arith.constant 0 : i32
    return %arg0, %c0_i32, %c0_i32_0 : i32, i32, i32
  }
  func.func @transform_19(%arg0: i32) -> (i32, i32, i32) {
    %c0_i32 = arith.constant 0 : i32
    %c0_i32_0 = arith.constant 0 : i32
    %c0_i32_1 = arith.constant 0 : i32
    return %arg0, %c0_i32, %c0_i32_0 : i32, i32, i32
  }
  func.func @transform_20(%arg0: i32) -> (i32, i32, i32) {
    %c0_i32 = arith.constant 0 : i32
    %c0_i32_0 = arith.constant 0 : i32
    %c0_i32_1 = arith.constant 0 : i32
    return %arg0, %c0_i32, %c0_i32_0 : i32, i32, i32
  }
  func.func @transform_21(%arg0: i32) -> (i32, i32, i32) {
    %c0_i32 = arith.constant 0 : i32
    %c0_i32_0 = arith.constant 0 : i32
    %c0_i32_1 = arith.constant 0 : i32
    return %arg0, %c0_i32, %c0_i32_0 : i32, i32, i32
  }
  func.func @transform_22(%arg0: i32) -> (i32, i32, i32) {
    %c0_i32 = arith.constant 0 : i32
    %c0_i32_0 = arith.constant 0 : i32
    %c0_i32_1 = arith.constant 0 : i32
    return %arg0, %c0_i32, %c0_i32_0 : i32, i32, i32
  }
  func.func @transform_23(%arg0: i32) -> (i32, i32, i32) {
    %c0_i32 = arith.constant 0 : i32
    %c0_i32_0 = arith.constant 0 : i32
    %c0_i32_1 = arith.constant 0 : i32
    return %arg0, %c0_i32, %c0_i32_0 : i32, i32, i32
  }
  func.func @transform_24(%arg0: i32) -> (i32, i32, i32) {
    %c0_i32 = arith.constant 0 : i32
    %c0_i32_0 = arith.constant 0 : i32
    %c0_i32_1 = arith.constant 0 : i32
    return %arg0, %c0_i32, %c0_i32_0 : i32, i32, i32
  }
  func.func @transform_25(%arg0: i32) -> (i32, i32, i32) {
    %c0_i32 = arith.constant 0 : i32
    %c0_i32_0 = arith.constant 0 : i32
    %c0_i32_1 = arith.constant 0 : i32
    return %arg0, %c0_i32, %c0_i32_0 : i32, i32, i32
  }
  func.func @transform_26(%arg0: i32) -> (i32, i32, i32) {
    %c0_i32 = arith.constant 0 : i32
    %c0_i32_0 = arith.constant 0 : i32
    %c0_i32_1 = arith.constant 0 : i32
    return %arg0, %c0_i32, %c0_i32_0 : i32, i32, i32
  }
  func.func @transform_27(%arg0: i32) -> (i32, i32, i32) {
    %c0_i32 = arith.constant 0 : i32
    %c0_i32_0 = arith.constant 0 : i32
    %c0_i32_1 = arith.constant 0 : i32
    return %arg0, %c0_i32, %c0_i32_0 : i32, i32, i32
  }
  func.func @transform_28(%arg0: i32) -> (i32, i32, i32) {
    %c0_i32 = arith.constant 0 : i32
    %c0_i32_0 = arith.constant 0 : i32
    %c0_i32_1 = arith.constant 0 : i32
    return %arg0, %c0_i32, %c0_i32_0 : i32, i32, i32
  }
  func.func @transform_29(%arg0: i32) -> (i32, i32, i32) {
    %c0_i32 = arith.constant 0 : i32
    %c0_i32_0 = arith.constant 0 : i32
    %c0_i32_1 = arith.constant 0 : i32
    return %arg0, %c0_i32, %c0_i32_0 : i32, i32, i32
  }
  func.func @transform_30(%arg0: i32) -> (i32, i32) {
    %c0_i32 = arith.constant 0 : i32
    %c0_i32_0 = arith.constant 0 : i32
    %c0_i32_1 = arith.constant 0 : i32
    return %c0_i32, %c0_i32_0 : i32, i32
  }
}

</mosaic_0001>

<bundles_post_ra>
// kernel: tpu_custom_call.1
= control target key start
LH: loop header
LB: loop body
LE: loop exit
PB: predicated region body
PF: predicated region fallthrough
CT: control target
= control target key end

     0   :  { %s5153_s6 = smov 1   ;;  %s5154_s10 = smov 2   ;;  %s6223_s0 = inlined_call_operand.smem [shape: u32[31], index: -1, kind: input, shape index: {}] }
   0x1   :  { %s5205_s5 = sld [smem:[%s6223_s0]]   ;;  %s5155_s14 = smov 3  }
   0x2   :  { %s5210_s9 = sld [smem:[%s6223_s0 + %s5153_s6]]   ;;  %s5156_s18 = smov 4  }
   0x3   :  { %s5215_s13 = sld [smem:[%s6223_s0 + %s5154_s10]]   ;;  %s5157_s22 = smov 5  }
   0x4   :  { %s5220_s17 = sld [smem:[%s6223_s0 + %s5155_s14]]   ;;  %s5158_s26 = smov 6  }
   0x5   :  { %s5225_s21 = sld [smem:[%s6223_s0 + %s5156_s18]]   ;;  %s5159_s30 = smov 7  }
   0x6   :  { %s5230_s25 = sld [smem:[%s6223_s0 + %s5157_s22]]   ;;  %s5160_s4 = smov 8  }
   0x7   :  { %6268 = sst [smem:[#allocation54_spill]] %s5205_s5  ;;  %s5161_s10 = smov 9  }
   0x8   :  { %6269 = sst [smem:[#allocation55_spill]] %s5210_s9  ;;  %s5162_s15 = smov 10  }
   0x9   :  { %6270 = sst [smem:[#allocation56_spill]] %s5215_s13  ;;  %s5163_s20 = smov 11  }
   0xa   :  { %6271 = sst [smem:[#allocation57_spill]] %s5220_s17  ;;  %s5165_s1 = smov 13  }
   0xb   :  { %6272 = sst [smem:[#allocation58_spill]] %s5225_s21  ;;  %s5166_s7 = smov 14  }
   0xc   :  { %6273 = sst [smem:[#allocation59_spill]] %s5230_s25  ;;  %s5168_s22 = smov 16  }
   0xd   :  { %s5235_s29 = sld [smem:[%s6223_s0 + %s5158_s26]]   ;;  %s5164_s26 = smov 12  }
   0xe   :  { %s5240_s3 = sld [smem:[%s6223_s0 + %s5159_s30]]   ;;  %s5169_s28 = smov 17  }
   0xf   :  { %s5245_s8 = sld [smem:[%s6223_s0 + %s5160_s4]]  }
  0x10   :  { %s5250_s14 = sld [smem:[%s6223_s0 + %s5161_s10]]  }
  0x11   :  { %s5255_s19 = sld [smem:[%s6223_s0 + %s5162_s15]]   ;;  %s5167_s15 = smov 15  }
  0x12   :  { %s5260_s24 = sld [smem:[%s6223_s0 + %s5163_s20]]  }
  0x13   :  { %6274 = sst [smem:[#allocation60_spill]] %s5235_s29 }
  0x14   :  { %6275 = sst [smem:[#allocation61_spill]] %s5240_s3 }
  0x15   :  { %6276 = sst [smem:[#allocation62_spill]] %s5245_s8 }
  0x16   :  { %6277 = sst [smem:[#allocation63_spill]] %s5250_s14 }
  0x17   :  { %6278 = sst [smem:[#allocation64_spill]] %s5255_s19 }
  0x18   :  { %6279 = sst [smem:[#allocation65_spill]] %s5260_s24 }
  0x19   :  { %s5265_s30 = sld [smem:[%s6223_s0 + %s5164_s26]]  }
  0x1a   :  { %s5270_s6 = sld [smem:[%s6223_s0 + %s5165_s1]]  }
  0x1b   :  { %s5275_s12 = sld [smem:[%s6223_s0 + %s5166_s7]]   ;;  %s5170_s7 = smov 18  }
  0x1c   :  { %s5280_s20 = sld [smem:[%s6223_s0 + %s5167_s15]]   ;;  %s5171_s15 = smov 19  }
  0x1d   :  { %s5285_s27 = sld [smem:[%s6223_s0 + %s5168_s22]]   ;;  %s5172_s22 = smov 20  }
  0x1e   :  { %s5290_s4 = sld [smem:[%s6223_s0 + %s5169_s28]]   ;;  %s5173_s28 = smov 21  }
  0x1f   :  { %s5295_s13 = sld [smem:[%s6223_s0 + %s5170_s7]]   ;;  %s5174_s7 = smov 22  }
  0x20   :  { %6280 = sst [smem:[#allocation66_spill]] %s5270_s6 }
  0x21   :  { %6281 = sst [smem:[#allocation67_spill]] %s5275_s12 }
  0x22   :  { %6282 = sst [smem:[#allocation68_spill]] %s5280_s20 }
  0x23   :  { %s5300_s17 = sld [smem:[%s6223_s0 + %s5171_s15]]   ;;  %s5175_s15 = smov 23  }
  0x24   :  { %6283 = sst [smem:[#allocation69_spill]] %s5290_s4 }
  0x25   :  { %6284 = sst [smem:[#allocation70_spill]] %s5295_s13 }
  0x26   :  { %s5305_s8 = sld [smem:[%s6223_s0 + %s5172_s22]]   ;;  %s5176_s22 = smov 24  }
  0x27   :  { %s5310_s3 = sld [smem:[%s6223_s0 + %s5173_s28]]   ;;  %s5177_s28 = smov 25  }
  0x28   :  { %s5315_s29 = sld [smem:[%s6223_s0 + %s5174_s7]]   ;;  %s5178_s7 = smov 26  }
  0x29   :  { %6285 = sst [smem:[#allocation71_spill]] %s5300_s17 }
  0x2a   :  { %s5320_s21 = sld [smem:[%s6223_s0 + %s5175_s15]]   ;;  %s5179_s15 = smov 27  }
  0x2b   :  { %s5325_s25 = sld [smem:[%s6223_s0 + %s5176_s22]]   ;;  %s5180_s22 = smov 28  }
  0x2c   :  { %6286 = sst [smem:[#allocation72_spill]] %s5305_s8 }
  0x2d   :  { %6287 = sst [smem:[#allocation73_spill]] %s5310_s3 }
  0x2e   :  { %6288 = sst [smem:[#allocation74_spill]] %s5315_s29 }
  0x2f   :  { %s5330_s5 = sld [smem:[%s6223_s0 + %s5177_s28]]   ;;  %s5181_s28 = smov 29  }
  0x30   :  { %6289 = sst [smem:[#allocation75_spill]] %s5320_s21 }
  0x31   :  { %6290 = sst [smem:[#allocation76_spill]] %s5325_s25 }
  0x32   :  { %s5335_s29 = sld [smem:[%s6223_s0 + %s5178_s7]]   ;;  %s5182_s7 = smov 30  }
  0x33   :  { %s5340_s8 = sld [smem:[%s6223_s0 + %s5179_s15]]  }
  0x34   :  { %s5345_s25 = sld [smem:[%s6223_s0 + %s5180_s22]]  }
  0x35   :  { %6291 = sst [smem:[#allocation77_spill]] %s5330_s5 }
  0x36   :  { %s5350_s13 = sld [smem:[%s6223_s0 + %s5181_s28]]  }
  0x38   :  { %6292 = sst [smem:[#allocation78_spill]] %s5335_s29 }
  0x39   :  { %6293 = sst [smem:[#allocation79_spill]] %s5340_s8 }
  0x3a   :  { %6294 = sst [smem:[#allocation80_spill]] %s5345_s25 }
  0x3b   :  { %s5355_s29 = sld [smem:[%s6223_s0 + %s5182_s7]]  }
  0x3c   :  { %6295 = sst [smem:[#allocation81_spill]] %s5350_s13 }
  0x41   :  { %6296 = sst [smem:[#allocation82_spill]] %s5355_s29 }
  0x42   :  { %66 = vsyncpa [#allocation5], 0 }
  0x43   :  { %67 = vsyncpa [#allocation8], 0 }
  0x44   :  { %69 = vsyncpa [#allocation8 + $0x1], 0 }
  0x45   :  { %70 = vsyncpa [#allocation11], 0 }
  0x46   :  { %72 = vsyncpa [#allocation11 + $0x1], 0 }
  0x47   :  { %73 = vsyncpa [#allocation14], 0 }
  0x48   :  { %75 = vsyncpa [#allocation14 + $0x1], 0 }
  0x49   :  { %76 = vsyncpa [#allocation17], 0 }
  0x4a   :  { %78 = vsyncpa [#allocation17 + $0x1], 0 }
  0x4b   :  { %79 = vsyncpa [#allocation20], 0 }
  0x4c   :  { %81 = vsyncpa [#allocation20 + $0x1], 0 }
  0x4d   :  { %82 = vsyncpa [#allocation23], 0 }
  0x4e   :  { %84 = vsyncpa [#allocation23 + $0x1], 0 }
  0x4f   :  { %85 = vsyncpa [#allocation26], 0 }
  0x50   :  { %87 = vsyncpa [#allocation26 + $0x1], 0 }
  0x51   :  { %88 = vsyncpa [#allocation29], 0 }
  0x52   :  { %90 = vsyncpa [#allocation29 + $0x1], 0 }
  0x53   :  { %91 = vsyncpa [#allocation32], 0 }
  0x54   :  { %93 = vsyncpa [#allocation32 + $0x1], 0 }
  0x55   :  { %94 = vsyncpa [#allocation35], 0 }
  0x56   :  { %96 = vsyncpa [#allocation35 + $0x1], 0 }
  0x57   :  { %97 = vsyncpa [#allocation6], 0  ;;  %s5357_s0 = smov 0   ;;  %s5359_s15 = smov 0  }
  0x58   :  { %s5361_s16 = smov 0   ;;  %s5363_s18 = smov 0  }
  0x59 LB: > { %s6297_s24 = sld [smem:[#allocation65_spill]]  ;;  %s5376_s22 = sadd.s32 4294967295, %s5151_s18   ;;  %s5143_s15 = sphi %s5359_s15, %s6381_s15   ;;  %s5139_s0 = sphi %s5357_s0, %s6380_s0   ;;  %s5151_s18 = sphi %s5363_s18, %s6379_s18   ;;  %s5147_s16 = sphi %s5361_s16, %s6382_s16  }
  0x5a   : > { %s6298_s21 = sld [smem:[#allocation75_spill]]  ;;  %s5379_s23 = sadd.s32 1, %s5151_s18  }
  0x5b   : > { %s6299_s20 = sld [smem:[#allocation68_spill]]  ;;  %s300_s26 = ssub.s32 %s5151_s18, %s5379_s23 }
  0x5c   : > { %s6300_s19 = sld [smem:[#allocation64_spill]]  ;;  %s303_s28 = sadd.s32 1, %s5147_s16 }
  0x5d   : > { %s6301_s13 = sld [smem:[#allocation81_spill]]  ;;  %p301_p0 = scmp.eq.s32.totalorder %s300_s26, 0 }
  0x5e   : > { %s6302_s8 = sld [smem:[#allocation79_spill]]  ;;  %p310_p1 = scmp.ne.s32.totalorder %s5147_s16, %s5143_s15 }
  0x5f   : > { %s6303_s17 = sld [smem:[#allocation71_spill]]  ;;  %p311_p2 = scmp.eq.s32.totalorder %s5151_s18, 0 }
  0x60   : > { %s6304_s12 = sld [smem:[#allocation67_spill]]  ;;  %p316_p3 = scmp.ne.s32.totalorder %s5143_s15, %s5139_s0 }
  0x61   : > { %s6305_s6 = sld [smem:[#allocation66_spill]]  ;;  %p5391_p4 = por %p311_p2, %p310_p1 }
  0x62   : > { %s6306_s5 = sld [smem:[#allocation77_spill]]  ;;  %p317_p5 = scmp.eq.s32.totalorder %s5376_s22, 0 }
  0x63   : > { %s6307_s4 = sld [smem:[#allocation69_spill]]  ;;  %p3969_p6 = scmp.ge.s32.totalorder %s5151_s18, 1 }
  0x64   : > { %s6308_s3 = sld [smem:[#allocation73_spill]]  ;;  %p868_p7 = scmp.lt.s32.totalorder %s5151_s18, 3 }
  0x65   : > { %s6309_s14 = sld [smem:[#allocation63_spill]]  ;;  %p5400_p8 = por %p317_p5, %p316_p3 }
  0x66   : > { %s6310_s9 = sld [smem:[#allocation55_spill]]  ;;  %p5404_p9 = pnand %p3969_p6, %p868_p7 }
  0x67   : > { %6311 = sst [smem:[#allocation83_spill]] %s5143_s15  ;;  %s5183_s0 = smov [#allocation4]  }
  0x68   : > { %6312 = sst [smem:[#allocation84_spill]] %s5147_s16  ;;  %p4210_p10 = pneg %p5404_p9 }
  0x69   : > { %6313 = sst [smem:[#allocation85_spill]] %s5379_s23  ;;  %s881_s26 = sshll.u32 %s5183_s0, 4  ;;  %s882_s26 = int_to_ptr.vmem [resolvable:$true] %s881_s26 }
  0x6a   : > { %s5389_s1 = scalar_select %p301_p0, %s5147_s16, %s303_s28  }
  0x6b   : > { %s6316_s7 = scalar_select %p5400_p8, 1, 0 }
  0x6c   : > { %6314 = sst [smem:[#allocation86_spill]] %s5389_s1  ;;  %s879_s11 = sshll.u32 %s6310_s9, 4  ;;  %s880_s11 = int_to_ptr.hbm [resolvable:$true] %s879_s11 }
  0x6d   : > { %6317 = sst [smem:[#allocation87_spill]] %s6316_s7  ;;  %p5413_p11 = pnand %p4210_p10, %p317_p5 }
  0x6e   : > { %s4451_s1 = sshra.s32 %s880_s11, 4  ;;  %s4458_s29 = scalar_lea.hbm %s6310_s9, 16  ;;  %s4452_s1 = int_to_ptr.hbm [resolvable:$true] %s4451_s1 }
  0x6f   : > { %s4453_s23 = scalar_lea.hbm %s4452_s1, 16  ;;  %p4455_p13 = pneg %p5413_p11 }
  0x70   : > { %p4454_p12 = scmp.ne.s32.totalorder %s4452_s1, %s4453_s23  ;;  %p4459_p2 = scmp.lt.s32.totalorder %s4452_s1, %s6310_s9 }
  0x71   : > { %p4460_p3 = scmp.lt.s32.totalorder %s4458_s29, %s4453_s23 }
  0x72   : > { %p4456_p0 = pnand %p4455_p13, %p4454_p12 }
  0x73   : > { %p4461_p6 = por %p4460_p3, %p4459_p2 }
  0x74   : > { %p4457_p1 = pneg %p4456_p0 }
  0x76   : > { %p4462_p7 = pnand %p4461_p6, %p4457_p1 }
  0x78   : > { %4465 = shalt.err (!%p4462_p7)
}
  0x79   : > { %s5184_s0 = smov 128   ;;  %s5185_s25 = smov 8  }
  0x7a   : > { %4213 = dma.hbm_to_vmem [thread:$0]  (!%p5413_p11), %s880_s11, 256, %s882_s26, [#allocation5], %s5184_s0, %s5184_s0, %s5185_s25  }
  0x7b   : > { %p3971_p10 = scmp.ge.s32.totalorder %s5151_s18, 2 }
  0x7c   : > { %s5425_s7 = sand.u32 (!%p3971_p10), 1, %s5151_s18   ;;  %s5428_s29 = sand.u32 (!%p3971_p10), 1, %s5147_s16  }
  0x7d   : > { %897 = sbr.rel (%p3971_p10) target bundleno = 417 (0x1a1), region = 28  ;;  %s943_s23 = scalar_lea.hbm (!%p3971_p10), %s6309_s14, %s5151_s18 }
  0x7e   : > { %s940_s1 = scalar_lea.vmem (!%p3971_p10), [#allocation7], %s5428_s29  ;;  %s945_s25 = sshll.u32 (!%p3971_p10), %s943_s23, 4  ;;  %s946_s25 = int_to_ptr.hbm [resolvable:$true] %s945_s25 }
  0x7f   : > { %s947_s28 = sshll.u32 (!%p3971_p10), %s940_s1, 4  ;;  %s6243_s11 = scalar_lea.sflag (!%p3971_p10), [#allocation8], %s5425_s7  ;;  %s948_s28 = int_to_ptr.vmem [resolvable:$true] %s947_s28 }
  0x80   : > { %s4481_s26 = sshra.s32 (!%p3971_p10), %s946_s25, 4  ;;  %s4487_s9 = scalar_lea.hbm (!%p3971_p10), %s6309_s14, 2  ;;  %s4482_s26 = int_to_ptr.hbm [resolvable:$true] %s4481_s26 }
  0x81   : > { %s4483_s0 = scalar_lea.hbm (!%p3971_p10), %s4482_s26, 1  ;;  %p4488_p0 = scmp.lt.s32.totalorder (!%p3971_p10), %s4482_s26, %s6309_s14 }
  0x82   : > { %p4484_p11 = scmp.ne.s32.totalorder %s4482_s26, %s4483_s0  ;;  %p4489_p1 = scmp.lt.s32.totalorder %s4487_s9, %s4483_s0 }
  0x84   : > { %p4485_p12 = pnand %p4484_p11, %p5391_p4  ;;  %p4490_p2 = por %p4489_p1, %p4488_p0 }
  0x86   : > { %p4486_p13 = pneg %p4485_p12 }
  0x88   : > { %p4491_p3 = pnand %p4490_p2, %p4486_p13 }
  0x8a   : > { %4494 = shalt.err (!%p4491_p3)
}
  0x8b   : > { %4163 = dma.hbm_to_vmem [thread:$0]  (%p5391_p4), %s946_s25, 16, %s948_s28, %s6243_s11  }
  0x8c   : > { %s982_s23 = scalar_lea.hbm %s6297_s24, %s5151_s18  ;;  %s979_s16 = scalar_lea.vmem [#allocation10], %s5428_s29 }
  0x8d   : > { %s984_s1 = sshll.u32 %s982_s23, 4  ;;  %s986_s26 = sshll.u32 %s979_s16, 4  ;;  %s985_s1 = int_to_ptr.hbm [resolvable:$true] %s984_s1  ;;  %s987_s26 = int_to_ptr.vmem [resolvable:$true] %s986_s26 }
  0x8e   : > { %s6244_s9 = scalar_lea.sflag [#allocation11], %s5425_s7  ;;  %s4509_s0 = sshra.s32 %s985_s1, 4  ;;  %s4510_s0 = int_to_ptr.hbm [resolvable:$true] %s4509_s0 }
  0x8f   : > { %s4511_s14 = scalar_lea.hbm %s4510_s0, 1  ;;  %s4515_s15 = scalar_lea.hbm %s6297_s24, 2 }
  0x90   : > { %p4512_p6 = scmp.ne.s32.totalorder %s4510_s0, %s4511_s14  ;;  %p4516_p11 = scmp.lt.s32.totalorder %s4510_s0, %s6297_s24 }
  0x91   : > { %p4517_p12 = scmp.lt.s32.totalorder %s4515_s15, %s4511_s14 }
  0x92   : > { %p4513_p7 = pnand %p4512_p6, %p5391_p4 }
  0x93   : > { %p4518_p13 = por %p4517_p12, %p4516_p11 }
  0x94   : > { %p4514_p10 = pneg %p4513_p7 }
  0x96   : > { %p4519_p0 = pnand %p4518_p13, %p4514_p10 }
  0x98   : > { %4522 = shalt.err (!%p4519_p0)
}
  0x99   : > { %4165 = dma.hbm_to_vmem [thread:$0]  (%p5391_p4), %s985_s1, 16, %s987_s26, %s6244_s9  }
  0x9a   : > { %s1016_s16 = scalar_lea.hbm %s6305_s6, %s5151_s18  ;;  %s1013_s28 = scalar_lea.vmem [#allocation13], %s5428_s29 }
  0x9b   : > { %s1020_s25 = sshll.u32 %s1013_s28, 4  ;;  %s1018_s23 = sshll.u32 %s1016_s16, 4  ;;  %s1021_s25 = int_to_ptr.vmem [resolvable:$true] %s1020_s25  ;;  %s1019_s23 = int_to_ptr.hbm [resolvable:$true] %s1018_s23 }
  0x9c   : > { %s6245_s14 = scalar_lea.sflag [#allocation14], %s5425_s7  ;;  %s4537_s15 = sshra.s32 %s1019_s23, 4  ;;  %s4538_s15 = int_to_ptr.hbm [resolvable:$true] %s4537_s15 }
  0x9d   : > { %s4539_s0 = scalar_lea.hbm %s4538_s15, 1  ;;  %s4543_s11 = scalar_lea.hbm %s6305_s6, 2 }
  0x9e   : > { %p4540_p1 = scmp.ne.s32.totalorder %s4538_s15, %s4539_s0  ;;  %p4544_p6 = scmp.lt.s32.totalorder %s4538_s15, %s6305_s6 }
  0x9f   : > { %p4545_p7 = scmp.lt.s32.totalorder %s4543_s11, %s4539_s0 }
  0xa0   : > { %p4541_p2 = pnand %p4540_p1, %p5391_p4 }
  0xa1   : > { %p4546_p10 = por %p4545_p7, %p4544_p6 }
  0xa2   : > { %p4542_p3 = pneg %p4541_p2 }
  0xa4   : > { %p4547_p11 = pnand %p4546_p10, %p4542_p3 }
  0xa6   : > { %4550 = shalt.err (!%p4547_p11)
}
  0xa7   : > { %4167 = dma.hbm_to_vmem [thread:$0]  (%p5391_p4), %s1019_s23, 16, %s1021_s25, %s6245_s14  }
  0xa8   : > { %s1055_s1 = scalar_lea.hbm %s6299_s20, %s5151_s18  ;;  %s1052_s16 = scalar_lea.vmem [#allocation16], %s5428_s29 }
  0xa9   : > { %s1057_s26 = sshll.u32 %s1055_s1, 4  ;;  %s1059_s28 = sshll.u32 %s1052_s16, 4  ;;  %s1058_s26 = int_to_ptr.hbm [resolvable:$true] %s1057_s26  ;;  %s1060_s28 = int_to_ptr.vmem [resolvable:$true] %s1059_s28 }
  0xaa   : > { %s6246_s11 = scalar_lea.sflag [#allocation17], %s5425_s7  ;;  %s4565_s15 = sshra.s32 %s1058_s26, 4  ;;  %s4566_s15 = int_to_ptr.hbm [resolvable:$true] %s4565_s15 }
  0xab   : > { %s4567_s0 = scalar_lea.hbm %s4566_s15, 1  ;;  %s4571_s9 = scalar_lea.hbm %s6299_s20, 2 }
  0xac   : > { %p4568_p12 = scmp.ne.s32.totalorder %s4566_s15, %s4567_s0  ;;  %p4572_p1 = scmp.lt.s32.totalorder %s4566_s15, %s6299_s20 }
  0xad   : > { %p4573_p2 = scmp.lt.s32.totalorder %s4571_s9, %s4567_s0 }
  0xae   : > { %p4569_p13 = pnand %p4568_p12, %p5391_p4 }
  0xaf   : > { %p4574_p3 = por %p4573_p2, %p4572_p1 }
  0xb0   : > { %p4570_p0 = pneg %p4569_p13 }
  0xb2   : > { %p4575_p6 = pnand %p4574_p3, %p4570_p0 }
  0xb4   : > { %4578 = shalt.err (!%p4575_p6)
}
  0xb5   : > { %4169 = dma.hbm_to_vmem [thread:$0]  (%p5391_p4), %s1058_s26, 16, %s1060_s28, %s6246_s11  }
  0xb6   : > { %s1094_s25 = scalar_lea.hbm %s6307_s4, %s5151_s18  ;;  %s1091_s23 = scalar_lea.vmem [#allocation19], %s5428_s29 }
  0xb7   : > { %s1098_s1 = sshll.u32 %s1091_s23, 4  ;;  %s1096_s16 = sshll.u32 %s1094_s25, 4  ;;  %s1099_s1 = int_to_ptr.vmem [resolvable:$true] %s1098_s1  ;;  %s1097_s16 = int_to_ptr.hbm [resolvable:$true] %s1096_s16 }
  0xb8   : > { %s6247_s9 = scalar_lea.sflag [#allocation20], %s5425_s7  ;;  %s4593_s15 = sshra.s32 %s1097_s16, 4  ;;  %s4594_s15 = int_to_ptr.hbm [resolvable:$true] %s4593_s15 }
  0xb9   : > { %s4595_s0 = scalar_lea.hbm %s4594_s15, 1  ;;  %s4599_s14 = scalar_lea.hbm %s6307_s4, 2 }
  0xba   : > { %p4596_p7 = scmp.ne.s32.totalorder %s4594_s15, %s4595_s0  ;;  %p4600_p12 = scmp.lt.s32.totalorder %s4594_s15, %s6307_s4 }
  0xbb   : > { %p4601_p13 = scmp.lt.s32.totalorder %s4599_s14, %s4595_s0 }
  0xbc   : > { %p4597_p10 = pnand %p4596_p7, %p5391_p4 }
  0xbd   : > { %p4602_p0 = por %p4601_p13, %p4600_p12 }
  0xbe   : > { %p4598_p11 = pneg %p4597_p10 }
  0xc0   : > { %p4603_p1 = pnand %p4602_p0, %p4598_p11 }
  0xc2   : > { %4606 = shalt.err (!%p4603_p1)
}
  0xc3   : > { %4171 = dma.hbm_to_vmem [thread:$0]  (%p5391_p4), %s1097_s16, 16, %s1099_s1, %s6247_s9  }
  0xc4   : > { %s1133_s26 = scalar_lea.hbm %s6303_s17, %s5151_s18  ;;  %s1130_s25 = scalar_lea.vmem [#allocation22], %s5428_s29 }
  0xc5   : > { %s1135_s28 = sshll.u32 %s1133_s26, 4  ;;  %s1137_s23 = sshll.u32 %s1130_s25, 4  ;;  %s1136_s28 = int_to_ptr.hbm [resolvable:$true] %s1135_s28  ;;  %s1138_s23 = int_to_ptr.vmem [resolvable:$true] %s1137_s23 }
  0xc6   : > { %s6248_s14 = scalar_lea.sflag [#allocation23], %s5425_s7  ;;  %s4621_s15 = sshra.s32 %s1136_s28, 4  ;;  %s4622_s15 = int_to_ptr.hbm [resolvable:$true] %s4621_s15 }
  0xc7   : > { %s4623_s0 = scalar_lea.hbm %s4622_s15, 1  ;;  %s4627_s11 = scalar_lea.hbm %s6303_s17, 2 }
  0xc8   : > { %p4624_p2 = scmp.ne.s32.totalorder %s4622_s15, %s4623_s0  ;;  %p4628_p7 = scmp.lt.s32.totalorder %s4622_s15, %s6303_s17 }
  0xc9   : > { %p4629_p10 = scmp.lt.s32.totalorder %s4627_s11, %s4623_s0 }
  0xca   : > { %p4625_p3 = pnand %p4624_p2, %p5391_p4 }
  0xcb   : > { %p4630_p11 = por %p4629_p10, %p4628_p7 }
  0xcc   : > { %p4626_p6 = pneg %p4625_p3 }
  0xce   : > { %p4631_p12 = pnand %p4630_p11, %p4626_p6 }
  0xd0   : > { %4634 = shalt.err (!%p4631_p12)
}
  0xd1   : > { %4173 = dma.hbm_to_vmem [thread:$0]  (%p5391_p4), %s1136_s28, 16, %s1138_s23, %s6248_s14  }
  0xd2   : > { %s1172_s1 = scalar_lea.hbm %s6308_s3, %s5151_s18  ;;  %s1169_s16 = scalar_lea.vmem [#allocation25], %s5428_s29 }
  0xd3   : > { %s1176_s26 = sshll.u32 %s1169_s16, 4  ;;  %s1174_s25 = sshll.u32 %s1172_s1, 4  ;;  %s1177_s26 = int_to_ptr.vmem [resolvable:$true] %s1176_s26  ;;  %s1175_s25 = int_to_ptr.hbm [resolvable:$true] %s1174_s25 }
  0xd4   : > { %s6249_s11 = scalar_lea.sflag [#allocation26], %s5425_s7  ;;  %s4649_s15 = sshra.s32 %s1175_s25, 4  ;;  %s4650_s15 = int_to_ptr.hbm [resolvable:$true] %s4649_s15 }
  0xd5   : > { %s4651_s0 = scalar_lea.hbm %s4650_s15, 1  ;;  %s4655_s9 = scalar_lea.hbm %s6308_s3, 2 }
  0xd6   : > { %p4652_p13 = scmp.ne.s32.totalorder %s4650_s15, %s4651_s0  ;;  %p4656_p2 = scmp.lt.s32.totalorder %s4650_s15, %s6308_s3 }
  0xd7   : > { %p4657_p3 = scmp.lt.s32.totalorder %s4655_s9, %s4651_s0 }
  0xd8   : > { %p4653_p0 = pnand %p4652_p13, %p5391_p4 }
  0xd9   : > { %p4658_p6 = por %p4657_p3, %p4656_p2 }
  0xda   : > { %p4654_p1 = pneg %p4653_p0 }
  0xdc   : > { %p4659_p7 = pnand %p4658_p6, %p4654_p1 }
  0xde   : > { %4662 = shalt.err (!%p4659_p7)
}
  0xdf   : > { %4175 = dma.hbm_to_vmem [thread:$0]  (%p5391_p4), %s1175_s25, 16, %s1177_s26, %s6249_s11  }
  0xe0   : > { %s1206_s28 = scalar_lea.hbm %s6298_s21, %s5151_s18  ;;  %s1203_s1 = scalar_lea.vmem [#allocation28], %s5428_s29 }
  0xe1   : > { %s1208_s23 = sshll.u32 %s1206_s28, 4  ;;  %s1210_s16 = sshll.u32 %s1203_s1, 4  ;;  %s1209_s23 = int_to_ptr.hbm [resolvable:$true] %s1208_s23  ;;  %s1211_s16 = int_to_ptr.vmem [resolvable:$true] %s1210_s16 }
  0xe2   : > { %s6251_s9 = scalar_lea.sflag [#allocation29], %s5425_s7  ;;  %s4677_s15 = sshra.s32 %s1209_s23, 4  ;;  %s4678_s15 = int_to_ptr.hbm [resolvable:$true] %s4677_s15 }
  0xe3   : > { %s4679_s0 = scalar_lea.hbm %s4678_s15, 1  ;;  %s4683_s14 = scalar_lea.hbm %s6298_s21, 2 }
  0xe4   : > { %p4680_p10 = scmp.ne.s32.totalorder %s4678_s15, %s4679_s0  ;;  %p4684_p13 = scmp.lt.s32.totalorder %s4678_s15, %s6298_s21 }
  0xe5   : > { %p4685_p0 = scmp.lt.s32.totalorder %s4683_s14, %s4679_s0 }
  0xe6   : > { %p4681_p11 = pnand %p4680_p10, %p5391_p4 }
  0xe7   : > { %p4686_p1 = por %p4685_p0, %p4684_p13 }
  0xe8   : > { %p4682_p12 = pneg %p4681_p11 }
  0xea   : > { %p4687_p2 = pnand %p4686_p1, %p4682_p12 }
  0xec   : > { %4690 = shalt.err (!%p4687_p2)
}
  0xed   : > { %4177 = dma.hbm_to_vmem [thread:$0]  (%p5391_p4), %s1209_s23, 16, %s1211_s16, %s6251_s9  }
  0xee   : > { %s1245_s26 = scalar_lea.hbm %s6306_s5, %s5151_s18  ;;  %s1242_s25 = scalar_lea.vmem [#allocation31], %s5428_s29 }
  0xef   : > { %s1249_s28 = sshll.u32 %s1242_s25, 4  ;;  %s1247_s14 = sshll.u32 %s1245_s26, 4  ;;  %s1250_s28 = int_to_ptr.vmem [resolvable:$true] %s1249_s28  ;;  %s1248_s14 = int_to_ptr.hbm [resolvable:$true] %s1247_s14 }
  0xf0   : > { %s5530_s1 = sshll.u32 %s5428_s29, 4  ;;  %s6252_s15 = scalar_lea.sflag [#allocation32], %s5425_s7 }
  0xf1   : > { %s4705_s0 = sshra.s32 %s1248_s14, 4  ;;  %s4711_s3 = scalar_lea.hbm %s6306_s5, 2  ;;  %s4706_s0 = int_to_ptr.hbm [resolvable:$true] %s4705_s0 }
  0xf2   : > { %s4707_s11 = scalar_lea.hbm %s4706_s0, 1  ;;  %p4712_p10 = scmp.lt.s32.totalorder %s4706_s0, %s6306_s5 }
  0xf3   : > { %p4708_p3 = scmp.ne.s32.totalorder %s4706_s0, %s4707_s11  ;;  %p4713_p11 = scmp.lt.s32.totalorder %s4711_s3, %s4707_s11 }
  0xf5   : > { %p4709_p6 = pnand %p4708_p3, %p5391_p4  ;;  %p4714_p12 = por %p4713_p11, %p4712_p10 }
  0xf7   : > { %p4710_p7 = pneg %p4709_p6 }
  0xf9   : > { %p4715_p13 = pnand %p4714_p12, %p4710_p7 }
  0xfb   : > { %4718 = shalt.err (!%p4715_p13)
}
  0xfc   : > { %4179 = dma.hbm_to_vmem [thread:$0]  (%p5391_p4), %s1248_s14, 16, %s1250_s28, %s6252_s15  }
  0xfd   : > { %s5542_s23 = sshll.u32 %s5151_s18, 4  ;;  %s958_s26 = scalar_lea.vmem [#allocation9], %s5530_s1 }
  0xfe   : > { %s963_s16 = scalar_lea.hbm %s6300_s19, %s5542_s23  ;;  %s966_s3 = sshll.u32 %s958_s26, 4  ;;  %s967_s3 = int_to_ptr.vmem [resolvable:$true] %s966_s3 }
  0xff   : > { %s964_s11 = sshll.u32 %s963_s16, 4  ;;  %s4739_s9 = scalar_lea.hbm %s6300_s19, 32  ;;  %s965_s11 = int_to_ptr.hbm [resolvable:$true] %s964_s11 }
 0x100   : > { %s4733_s25 = sshra.s32 %s965_s11, 4  ;;  %s4734_s25 = int_to_ptr.hbm [resolvable:$true] %s4733_s25 }
 0x101   : > { %s4735_s0 = scalar_lea.hbm %s4734_s25, 16  ;;  %p4740_p3 = scmp.lt.s32.totalorder %s4734_s25, %s6300_s19 }
 0x102   : > { %p4736_p0 = scmp.ne.s32.totalorder %s4734_s25, %s4735_s0  ;;  %p4741_p6 = scmp.lt.s32.totalorder %s4739_s9, %s4735_s0 }
 0x104   : > { %p4737_p1 = pnand %p4736_p0, %p5391_p4  ;;  %p4742_p7 = por %p4741_p6, %p4740_p3 }
 0x106   : > { %p4738_p2 = pneg %p4737_p1 }
 0x108   : > { %p4743_p10 = pnand %p4742_p7, %p4738_p2 }
 0x10a   : > { %4746 = shalt.err (!%p4743_p10)
}
 0x10b   : > { %s6258_s28 = smov 64   ;;  %s5187_s14 = smov 4  }
 0x10c   : > { %s6320_s16 = scalar_lea.sflag [#allocation8], %s5425_s7  ;;  %s999_s9 = scalar_lea.hbm %s5265_s30, %s5151_s18 }
 0x10d   : > { %4164 = dma.hbm_to_vmem [thread:$0]  (%p5391_p4), %s965_s11, 256, %s967_s3, %s6320_s16, %s6258_s28, %s6258_s28, %s5187_s14  }
 0x10e   : > { %s996_s26 = scalar_lea.vmem [#allocation12], %s5428_s29  ;;  %s1001_s0 = sshll.u32 %s999_s9, 4  ;;  %s1002_s0 = int_to_ptr.hbm [resolvable:$true] %s1001_s0 }
 0x10f   : > { %s1003_s25 = sshll.u32 %s996_s26, 4  ;;  %s4761_s15 = sshra.s32 %s1002_s0, 4  ;;  %s1004_s25 = int_to_ptr.vmem [resolvable:$true] %s1003_s25  ;;  %s4762_s15 = int_to_ptr.hbm [resolvable:$true] %s4761_s15 }
 0x110   : > { %s4763_s4 = scalar_lea.hbm %s4762_s15, 1  ;;  %s4767_s5 = scalar_lea.hbm %s5265_s30, 2 }
 0x111   : > { %p4764_p11 = scmp.ne.s32.totalorder %s4762_s15, %s4763_s4  ;;  %p4768_p0 = scmp.lt.s32.totalorder %s4762_s15, %s5265_s30 }
 0x112   : > { %p4769_p1 = scmp.lt.s32.totalorder %s4767_s5, %s4763_s4 }
 0x113   : > { %p4765_p12 = pnand %p4764_p11, %p5391_p4 }
 0x114   : > { %p4770_p2 = por %p4769_p1, %p4768_p0 }
 0x115   : > { %p4766_p13 = pneg %p4765_p12 }
 0x117   : > { %p4771_p3 = pnand %p4770_p2, %p4766_p13 }
 0x119   : > { %4774 = shalt.err (!%p4771_p3)
}
 0x11a   : > { %s6321_s3 = scalar_lea.sflag [#allocation11], %s5425_s7  ;;  %s1036_s11 = scalar_lea.hbm %s6304_s12, %s5542_s23 }
 0x11b   : > { %4166 = dma.hbm_to_vmem [thread:$0]  (%p5391_p4), %s1002_s0, 16, %s1004_s25, %s6321_s3  }
 0x11c   : > { %s1031_s16 = scalar_lea.vmem [#allocation15], %s5530_s1  ;;  %s1037_s26 = sshll.u32 %s1036_s11, 4  ;;  %s1038_s26 = int_to_ptr.hbm [resolvable:$true] %s1037_s26 }
 0x11d   : > { %s1039_s9 = sshll.u32 %s1031_s16, 4  ;;  %s4789_s5 = sshra.s32 %s1038_s26, 4  ;;  %s1040_s9 = int_to_ptr.vmem [resolvable:$true] %s1039_s9  ;;  %s4790_s5 = int_to_ptr.hbm [resolvable:$true] %s4789_s5 }
 0x11e   : > { %s4791_s4 = scalar_lea.hbm %s4790_s5, 16  ;;  %s4795_s15 = scalar_lea.hbm %s6304_s12, 32 }
 0x11f   : > { %p4792_p6 = scmp.ne.s32.totalorder %s4790_s5, %s4791_s4  ;;  %p4796_p11 = scmp.lt.s32.totalorder %s4790_s5, %s6304_s12 }
 0x120   : > { %p4797_p12 = scmp.lt.s32.totalorder %s4795_s15, %s4791_s4 }
 0x121   : > { %p4793_p7 = pnand %p4792_p6, %p5391_p4 }
 0x122   : > { %p4798_p13 = por %p4797_p12, %p4796_p11 }
 0x123   : > { %p4794_p10 = pneg %p4793_p7 }
 0x125   : > { %p4799_p0 = pnand %p4798_p13, %p4794_p10 }
 0x127   : > { %4802 = shalt.err (!%p4799_p0)
}
 0x128   : > { %s6322_s25 = scalar_lea.sflag [#allocation14], %s5425_s7  ;;  %s1075_s0 = scalar_lea.hbm %s5285_s27, %s5542_s23 }
 0x129   : > { %4168 = dma.hbm_to_vmem [thread:$0]  (%p5391_p4), %s1038_s26, 256, %s1040_s9, %s6322_s25, %s6258_s28, %s6258_s28, %s5187_s14  }
 0x12a   : > { %s1070_s3 = scalar_lea.vmem [#allocation18], %s5530_s1  ;;  %s1076_s16 = sshll.u32 %s1075_s0, 4  ;;  %s1077_s16 = int_to_ptr.hbm [resolvable:$true] %s1076_s16 }
 0x12b   : > { %s1078_s11 = sshll.u32 %s1070_s3, 4  ;;  %s4817_s5 = sshra.s32 %s1077_s16, 4  ;;  %s1079_s11 = int_to_ptr.vmem [resolvable:$true] %s1078_s11  ;;  %s4818_s5 = int_to_ptr.hbm [resolvable:$true] %s4817_s5 }
 0x12c   : > { %s4819_s4 = scalar_lea.hbm %s4818_s5, 16  ;;  %s4823_s15 = scalar_lea.hbm %s5285_s27, 32 }
 0x12d   : > { %p4820_p1 = scmp.ne.s32.totalorder %s4818_s5, %s4819_s4  ;;  %p4824_p6 = scmp.lt.s32.totalorder %s4818_s5, %s5285_s27 }
 0x12e   : > { %p4825_p7 = scmp.lt.s32.totalorder %s4823_s15, %s4819_s4 }
 0x12f   : > { %p4821_p2 = pnand %p4820_p1, %p5391_p4 }
 0x130   : > { %p4826_p10 = por %p4825_p7, %p4824_p6 }
 0x131   : > { %p4822_p3 = pneg %p4821_p2 }
 0x133   : > { %p4827_p11 = pnand %p4826_p10, %p4822_p3 }
 0x135   : > { %4830 = shalt.err (!%p4827_p11)
}
 0x136   : > { %s6323_s9 = scalar_lea.sflag [#allocation17], %s5425_s7  ;;  %s6324_s26 = sld [smem:[#allocation70_spill]] }
 0x137   : > { %4170 = dma.hbm_to_vmem [thread:$0]  (%p5391_p4), %s1077_s16, 256, %s1079_s11, %s6323_s9, %s6258_s28, %s6258_s28, %s5187_s14  }
 0x138   : > { %s1109_s0 = scalar_lea.vmem [#allocation21], %s5530_s1 }
 0x139   : > { %s1117_s3 = sshll.u32 %s1109_s0, 4  ;;  %s1118_s3 = int_to_ptr.vmem [resolvable:$true] %s1117_s3 }
 0x13c   : > { %s1114_s25 = scalar_lea.hbm %s6324_s26, %s5542_s23  ;;  %s4851_s6 = scalar_lea.hbm %s6324_s26, 32 }
 0x13d   : > { %s1115_s5 = sshll.u32 %s1114_s25, 4  ;;  %s1116_s5 = int_to_ptr.hbm [resolvable:$true] %s1115_s5 }
 0x13e   : > { %s4845_s4 = sshra.s32 %s1116_s5, 4  ;;  %s4846_s4 = int_to_ptr.hbm [resolvable:$true] %s4845_s4 }
 0x13f   : > { %s4847_s15 = scalar_lea.hbm %s4846_s4, 16  ;;  %p4852_p1 = scmp.lt.s32.totalorder %s4846_s4, %s6324_s26 }
 0x140   : > { %p4848_p12 = scmp.ne.s32.totalorder %s4846_s4, %s4847_s15  ;;  %p4853_p2 = scmp.lt.s32.totalorder %s4851_s6, %s4847_s15 }
 0x142   : > { %p4849_p13 = pnand %p4848_p12, %p5391_p4  ;;  %p4854_p3 = por %p4853_p2, %p4852_p1 }
 0x144   : > { %p4850_p0 = pneg %p4849_p13 }
 0x146   : > { %p4855_p6 = pnand %p4854_p3, %p4850_p0 }
 0x148   : > { %4858 = shalt.err (!%p4855_p6)
}
 0x149   : > { %s6325_s11 = scalar_lea.sflag [#allocation20], %s5425_s7  ;;  %s6326_s16 = sld [smem:[#allocation72_spill]] }
 0x14a   : > { %4172 = dma.hbm_to_vmem [thread:$0]  (%p5391_p4), %s1116_s5, 256, %s1118_s3, %s6325_s11, %s6258_s28, %s6258_s28, %s5187_s14  }
 0x14b   : > { %s1148_s0 = scalar_lea.vmem [#allocation24], %s5530_s1 }
 0x14c   : > { %s1156_s6 = sshll.u32 %s1148_s0, 4  ;;  %s1157_s6 = int_to_ptr.vmem [resolvable:$true] %s1156_s6 }
 0x14f   : > { %s6327_s9 = smov %s6326_s16  ;;  %s1153_s25 = scalar_lea.hbm %s6326_s16, %s5542_s23 }
 0x150   : > { %s1154_s4 = sshll.u32 %s1153_s25, 4  ;;  %s4879_s17 = scalar_lea.hbm %s6327_s9, 32  ;;  %s1155_s4 = int_to_ptr.hbm [resolvable:$true] %s1154_s4 }
 0x151   : > { %s4873_s15 = sshra.s32 %s1155_s4, 4  ;;  %s4874_s15 = int_to_ptr.hbm [resolvable:$true] %s4873_s15 }
 0x152   : > { %s4875_s12 = scalar_lea.hbm %s4874_s15, 16  ;;  %p4880_p12 = scmp.lt.s32.totalorder %s4874_s15, %s6327_s9 }
 0x153   : > { %p4876_p7 = scmp.ne.s32.totalorder %s4874_s15, %s4875_s12  ;;  %p4881_p13 = scmp.lt.s32.totalorder %s4879_s17, %s4875_s12 }
 0x155   : > { %p4877_p10 = pnand %p4876_p7, %p5391_p4  ;;  %p4882_p0 = por %p4881_p13, %p4880_p12 }
 0x157   : > { %p4878_p11 = pneg %p4877_p10 }
 0x159   : > { %p4883_p1 = pnand %p4882_p0, %p4878_p11 }
 0x15b   : > { %4886 = shalt.err (!%p4883_p1)
}
 0x15c   : > { %s6328_s3 = scalar_lea.sflag [#allocation23], %s5425_s7  ;;  %s6329_s5 = sld [smem:[#allocation74_spill]] }
 0x15d   : > { %4174 = dma.hbm_to_vmem [thread:$0]  (%p5391_p4), %s1155_s4, 256, %s1157_s6, %s6328_s3, %s6258_s28, %s6258_s28, %s5187_s14  }
 0x15e   : > { %s1186_s16 = scalar_lea.vmem [#allocation27], %s5428_s29 }
 0x15f   : > { %s1193_s17 = sshll.u32 %s1186_s16, 4  ;;  %s1194_s17 = int_to_ptr.vmem [resolvable:$true] %s1193_s17 }
 0x162   : > { %s1189_s11 = scalar_lea.hbm %s6329_s5, %s5151_s18  ;;  %s4907_s15 = scalar_lea.hbm %s6329_s5, 2 }
 0x163   : > { %s1191_s12 = sshll.u32 %s1189_s11, 4  ;;  %s1192_s12 = int_to_ptr.hbm [resolvable:$true] %s1191_s12 }
 0x164   : > { %s4901_s25 = sshra.s32 %s1192_s12, 4  ;;  %s4902_s25 = int_to_ptr.hbm [resolvable:$true] %s4901_s25 }
 0x165   : > { %s4903_s0 = scalar_lea.hbm %s4902_s25, 1  ;;  %p4908_p7 = scmp.lt.s32.totalorder %s4902_s25, %s6329_s5 }
 0x166   : > { %p4904_p2 = scmp.ne.s32.totalorder %s4902_s25, %s4903_s0  ;;  %p4909_p10 = scmp.lt.s32.totalorder %s4907_s15, %s4903_s0 }
 0x168   : > { %p4905_p3 = pnand %p4904_p2, %p5391_p4  ;;  %p4910_p11 = por %p4909_p10, %p4908_p7 }
 0x16a   : > { %p4906_p6 = pneg %p4905_p3 }
 0x16c   : > { %p4911_p12 = pnand %p4910_p11, %p4906_p6 }
 0x16e   : > { %4914 = shalt.err (!%p4911_p12)
}
 0x16f   : > { %s6330_s6 = scalar_lea.sflag [#allocation26], %s5425_s7  ;;  %s6331_s4 = sld [smem:[#allocation76_spill]] }
 0x170   : > { %4176 = dma.hbm_to_vmem [thread:$0]  (%p5391_p4), %s1192_s12, 16, %s1194_s17, %s6330_s6  }
 0x171   : > { %s1221_s11 = scalar_lea.vmem [#allocation30], %s5530_s1 }
 0x172   : > { %s1229_s16 = sshll.u32 %s1221_s11, 4  ;;  %s1230_s16 = int_to_ptr.vmem [resolvable:$true] %s1229_s16 }
 0x175   : > { %s1226_s3 = scalar_lea.hbm %s6331_s4, %s5542_s23  ;;  %s4935_s15 = scalar_lea.hbm %s6331_s4, 32 }
 0x176   : > { %s1227_s28 = sshll.u32 %s1226_s3, 4  ;;  %s1228_s28 = int_to_ptr.hbm [resolvable:$true] %s1227_s28 }
 0x177   : > { %s4929_s25 = sshra.s32 %s1228_s28, 4  ;;  %s4930_s25 = int_to_ptr.hbm [resolvable:$true] %s4929_s25 }
 0x178   : > { %s4931_s0 = scalar_lea.hbm %s4930_s25, 16  ;;  %p4936_p2 = scmp.lt.s32.totalorder %s4930_s25, %s6331_s4 }
 0x179   : > { %p4932_p13 = scmp.ne.s32.totalorder %s4930_s25, %s4931_s0  ;;  %p4937_p3 = scmp.lt.s32.totalorder %s4935_s15, %s4931_s0 }
 0x17b   : > { %p4933_p0 = pnand %p4932_p13, %p5391_p4  ;;  %p4938_p6 = por %p4937_p3, %p4936_p2 }
 0x17d   : > { %p4934_p1 = pneg %p4933_p0 }
 0x17f   : > { %p4939_p7 = pnand %p4938_p6, %p4934_p1 }
 0x181   : > { %4942 = shalt.err (!%p4939_p7)
}
 0x182   : > { %s6332_s1 = smov 64   ;;  %s6333_s23 = scalar_lea.sflag [#allocation29], %s5425_s7 }
 0x183   : > { %4178 = dma.hbm_to_vmem [thread:$0]  (%p5391_p4), %s1228_s28, 256, %s1230_s16, %s6333_s23, %s6332_s1, %s6332_s1, %s5187_s14  }
 0x184   : > { %s1270_s17 = scalar_lea.hbm %s6302_s8, %s5151_s18  ;;  %s1267_s12 = scalar_lea.vmem [#allocation33], %s5428_s29 }
 0x185   : > { %s1274_s6 = sshll.u32 %s1267_s12, 4  ;;  %s1272_s3 = sshll.u32 %s1270_s17, 4  ;;  %s1275_s6 = int_to_ptr.vmem [resolvable:$true] %s1274_s6  ;;  %s1273_s3 = int_to_ptr.hbm [resolvable:$true] %s1272_s3 }
 0x186   : > { %s4957_s11 = sshra.s32 %s1273_s3, 4  ;;  %s4963_s0 = scalar_lea.hbm %s6302_s8, 2  ;;  %s4958_s11 = int_to_ptr.hbm [resolvable:$true] %s4957_s11 }
 0x187   : > { %s4959_s25 = scalar_lea.hbm %s4958_s11, 1  ;;  %p4964_p13 = scmp.lt.s32.totalorder %s4958_s11, %s6302_s8 }
 0x188   : > { %p4960_p10 = scmp.ne.s32.totalorder %s4958_s11, %s4959_s25  ;;  %p4965_p0 = scmp.lt.s32.totalorder %s4963_s0, %s4959_s25 }
 0x18a   : > { %p4961_p11 = pnand %p4960_p10, %p5391_p4  ;;  %p4966_p1 = por %p4965_p0, %p4964_p13 }
 0x18c   : > { %p4962_p12 = pneg %p4961_p11 }
 0x18e   : > { %p4967_p2 = pnand %p4966_p1, %p4962_p12 }
 0x190   : > { %4970 = shalt.err (!%p4967_p2)
}
 0x191   : > { %s6334_s28 = scalar_lea.sflag [#allocation32], %s5425_s7  ;;  %s1293_s14 = scalar_lea.hbm %s6301_s13, %s5151_s18 }
 0x192   : > { %4180 = dma.hbm_to_vmem [thread:$0]  (%p5391_p4), %s1273_s3, 16, %s1275_s6, %s6334_s28  }
 0x193   : > { %s1295_s16 = sshll.u32 %s1293_s14, 4  ;;  %s1290_s15 = scalar_lea.vmem [#allocation34], %s5428_s29  ;;  %s1296_s16 = int_to_ptr.hbm [resolvable:$true] %s1295_s16 }
 0x194   : > { %s1297_s1 = sshll.u32 %s1290_s15, 4  ;;  %s1288_s23 = scalar_lea.sflag [#allocation35], %s5428_s29  ;;  %s1298_s1 = int_to_ptr.vmem [resolvable:$true] %s1297_s1 }
 0x195   : > { %s4985_s17 = sshra.s32 %s1296_s16, 4  ;;  %s4991_s7 = scalar_lea.hbm %s6301_s13, 2  ;;  %s4986_s17 = int_to_ptr.hbm [resolvable:$true] %s4985_s17 }
 0x196   : > { %s4987_s12 = scalar_lea.hbm %s4986_s17, 1  ;;  %p4992_p10 = scmp.lt.s32.totalorder %s4986_s17, %s6301_s13 }
 0x197   : > { %p4988_p3 = scmp.ne.s32.totalorder %s4986_s17, %s4987_s12  ;;  %p4993_p11 = scmp.lt.s32.totalorder %s4991_s7, %s4987_s12 }
 0x199   : > { %p4989_p6 = pnand %p4988_p3, %p5391_p4  ;;  %p4994_p12 = por %p4993_p11, %p4992_p10 }
 0x19b   : > { %p4990_p7 = pneg %p4989_p6 }
 0x19d   : > { %p4995_p13 = pnand %p4994_p12, %p4990_p7 }
 0x19f   : > { %4998 = shalt.err (!%p4995_p13)
}
 0x1a0   : > { %4181 = dma.hbm_to_vmem [thread:$0]  (%p5391_p4), %s1296_s16, 16, %s1298_s1, %s1288_s23  }
 0x1a1 PF: > { %1306 = sbr.rel (%p5404_p9) target bundleno = 3535 (0xdcf), region = 136 }
 0x1a6   : > { %5086 = dma.done.wait (%p317_p5), [#allocation5], 256  }
 0x1a7   : > { %5088 = vsyncadd (%p317_p5), [#allocation5], 4294967040  ;;  %s6335_s18 = sld [smem:[#allocation83_spill]]  ;;  %s5678_s6 = sand.u32 1, %s5376_s22  }
 0x1a8   : > { %s1314_s2 = scalar_lea.sflag [#allocation8], %s5678_s6 }
 0x1ad   : > { %s5681_s3 = sand.u32 1, %s6335_s18  }
 0x1ae   : > { %5090 = dma.done.wait (%p5400_p8), %s1314_s2, 272  }
 0x1af   : > { %5092 = vsyncadd (%p5400_p8), %s1314_s2, 4294967024  ;;  %s5690_s10 = sshll.u32 %s5681_s3, 4  ;;  %s1333_s0 = scalar_lea.sflag [#allocation11], %s5678_s6 }
 0x1b0   : > { %s5693_s25 = scalar_lea.vmem [#allocation9], %s5690_s10 }
 0x1b1   : > { %5094 = dma.done.wait (%p5400_p8), %s1333_s0, 32  }
 0x1b2   : > { %5096 = vsyncadd (%p5400_p8), %s1333_s0, 4294967264  ;;  %s1351_s16 = scalar_lea.sflag [#allocation14], %s5678_s6 }
 0x1b3   : > { %5098 = dma.done.wait (%p5400_p8), %s1351_s16, 272  }
 0x1b4   : > { %5100 = vsyncadd (%p5400_p8), %s1351_s16, 4294967024  ;;  %s1370_s23 = scalar_lea.sflag [#allocation17], %s5678_s6 }
 0x1b5   : > { %5102 = dma.done.wait (%p5400_p8), %s1370_s23, 272  }
 0x1b6   : > { %5104 = vsyncadd (%p5400_p8), %s1370_s23, 4294967024  ;;  %s1389_s7 = scalar_lea.sflag [#allocation20], %s5678_s6 }
 0x1b7   : > { %5106 = dma.done.wait (%p5400_p8), %s1389_s7, 272  }
 0x1b8   : > { %5108 = vsyncadd (%p5400_p8), %s1389_s7, 4294967024  ;;  %s1408_s0 = scalar_lea.sflag [#allocation23], %s5678_s6 }
 0x1b9   : > { %5110 = dma.done.wait (%p5400_p8), %s1408_s0, 272  }
 0x1ba   : > { %5112 = vsyncadd (%p5400_p8), %s1408_s0, 4294967024  ;;  %s5730_s23 = scalar_lea.vmem [#allocation24], %s5690_s10  ;;  %s1427_s17 = scalar_lea.sflag [#allocation26], %s5678_s6 }
 0x1bb   : > { %5114 = dma.done.wait (%p5400_p8), %s1427_s17, 32  }
 0x1bc   : > { %5116 = vsyncadd (%p5400_p8), %s1427_s17, 4294967264  ;;  %s1445_s2 = scalar_lea.sflag [#allocation29], %s5678_s6 }
 0x1bd   : > { %5118 = dma.done.wait (%p5400_p8), %s1445_s2, 272  }
 0x1be   : > { %5120 = vsyncadd (%p5400_p8), %s1445_s2, 4294967024  ;;  %s1464_s18 = scalar_lea.sflag [#allocation32], %s5678_s6 }
 0x1bf   : > { %5122 = dma.done.wait (%p5400_p8), %s1464_s18, 32  }
 0x1c0   : > { %5124 = vsyncadd (%p5400_p8), %s1464_s18, 4294967264  ;;  %s1482_s0 = scalar_lea.sflag [#allocation35], %s5681_s3 }
 0x1c1   : > { %5126 = dma.done.wait (%p5400_p8), %s1482_s0, 16  }
 0x1c2   : > { %5128 = vsyncadd (%p5400_p8), %s1482_s0, 4294967280  ;;  %s6337_s6 = sld [smem:[#allocation54_spill]]  ;;  %p1661_p4 = scmp.lt.s32.totalorder %s5376_s22, 1 }
 0x1c3   : > { %s6338_s2 = sld [smem:[#allocation59_spill]]  ;;  %s5188_s29 = smov [#allocation2]  }
 0x1c4   : > { %s6339_s15 = sld [smem:[#allocation58_spill]]  ;;  %s1704_s0 = sshll.u32 %s5188_s29, 4  ;;  %s1705_s0 = int_to_ptr.vmem [resolvable:$true] %s1704_s0 }
 0x1c5   : > { %s6340_s7 = sld [smem:[#allocation60_spill]] }
 0x1c6   : > { %s6341_s14 = sld [smem:[#allocation61_spill]] }
 0x1c7   : > { %s6342_s18 = sld [smem:[#allocation62_spill]] }
 0x1c8   : > { %s6343_s1 = sld [smem:[#allocation80_spill]]  ;;  %s1702_s28 = sshll.u32 %s6337_s6, 4  ;;  %s1703_s28 = int_to_ptr.hbm [resolvable:$true] %s1702_s28 }
 0x1c9   : > { %s6344_s12 = sld [smem:[#allocation78_spill]]  ;;  %s5013_s21 = sshra.s32 %s1703_s28, 4  ;;  %s5014_s21 = int_to_ptr.hbm [resolvable:$true] %s5013_s21 }
 0x1ca   : > { %s5762_s17 = scalar_select %p1661_p4, %s5376_s22, 1 }
 0x1cb   : > { %s5015_s24 = scalar_lea.hbm %s5014_s21, 16  ;;  %s5019_s29 = scalar_lea.hbm %s6337_s6, 16 }
 0x1cc   : > { %s4139_s16 = sshll.u32 %s5762_s17, 4  ;;  %s1668_s11 = scalar_lea.vmem %s6338_s2, %s5762_s17 }
 0x1cd   : > { %s1665_s4 = scalar_lea.vmem %s6339_s15, %s4139_s16  ;;  %s1673_s5 = scalar_lea.vmem %s6340_s7, %s4139_s16 }
 0x1ce   : > { %s1676_s8 = scalar_lea.vmem %s6341_s14, %s5762_s17  ;;  %s5772_s9 = scalar_lea.vmem %s6342_s18, %s4139_s16 }
 0x1cf   : > { %s4142_s13 = sshll.u32 %s5762_s17, 5  ;;  %s1689_s19 = scalar_lea.vmem %s6343_s1, %s5762_s17 }
 0x1d0   : > { %s5778_s20 = scalar_lea.vmem %s6344_s12, %s4142_s13  ;;  %p5016_p8 = scmp.ne.s32.totalorder %s5014_s21, %s5015_s24 }
 0x1d1   : > { %p5020_p1 = scmp.lt.s32.totalorder %s5014_s21, %s6337_s6  ;;  %p5021_p2 = scmp.lt.s32.totalorder %s5019_s29, %s5015_s24 }
 0x1d2   : > { %p5017_p9 = pnand %p5016_p8, %p317_p5 }
 0x1d3   : > { %p5022_p3 = por %p5021_p2, %p5020_p1 }
 0x1d4   : > { %p5018_p0 = pneg %p5017_p9 }
 0x1d6   : > { %p5023_p6 = pnand %p5022_p3, %p5018_p0 }
 0x1d8   : > { %5026 = shalt.err (!%p5023_p6)  }
 0x1d9   : > { %4204 = dma.hbm_to_vmem [thread:$0]  (%p317_p5), %s1703_s28, 256, %s1705_s0, [#allocation3] }
 0x1da   : > { %5130 = dma.done.wait (%p317_p5), [#allocation3], 256 }
 0x1db   : > { %5132 = vsyncadd (%p317_p5), [#allocation3], 4294967040  ;;  %v4144_v0 = vld [vmem:[%s1665_s4 + $0x8] sm:$0xff]  ;;  %v4143_v2 = vld [vmem:[%s1665_s4] sm:$0xff]  ;;  %vm1762_vm0 = vcmask 261120   ;;  %vm1922_vm1 = vcmask 64512   ;;  %v1719_v45 = vlaneseq }
 0x1dc   : > { %v4146_v1 = vld [vmem:[%s1673_s5 + $0x8] sm:$0xff]  ;;  %v4145_v3 = vld [vmem:[%s1673_s5] sm:$0xff]  ;;  %1772 = vmatpush.bf16.msra.mxu0 %v4144_v0  ;;  %s5189_s13 = smov 112   ;;  %s5190_s21 = smov 104   ;;  %v5192_v32 = vmov 0   ;;  %vm2200_vm5 = vcmask 1043456  }
 0x1dd   : > { %v5790_v4 = vld [vmem:[#allocation2] sm:$0xff]  ;;  %1801 = vmatpush.bf16.msra.mxu1 %v4146_v1  ;;  %v5792_v5 = vld [vmem:[#allocation2 + $0x8] sm:$0xff]  ;;  %s6345_s24 = sld [smem:[#allocation57_spill]]  ;;  %4310 = vset.pattern.permute.xlu1 %v5192_v32  ;;  %v1720_v50 = vshrl.u32 %v1719_v45, 7  ;;  %v1722_v51 = vand.u32 127, %v1719_v45  ;;  %s6353_s5 = scalar_lea.vmem [#allocation10], %s5681_s3 }
 0x1de   : > { %v1746_v6 = vpack.c.bf16 %v5792_v5, %v5790_v4  ;;  %v4358_v7 = vld [vmem:[%s1676_s8] ss:$0 sm:$0xff]  ;;  %s5191_s8 = smov 120   ;;  %v4148_v24 = vld [vmem:[%s5772_s9 + $0x8] sm:$0xff]  ;;  %4356 = vset.pattern.permute.xlu0 %v5192_v32  ;;  %s6354_s4 = sld [smem:[#allocation56_spill]] }
 0x1df   : > { %v4357_v11 = vld [vmem:[%s1668_s11] ss:$0 sm:$0xff]  ;;  %1830 = vmatpush.bf16.msra.mxu2 %v4148_v24  ;;  %vm5835_vm3 = vcmp.gt.s32.totalorder %v1722_v51, %v1720_v50  ;;  %s6355_s11 = scalar_lea.vmem [#allocation18], %s5690_s10  ;;  %s6359_s12 = scalar_lea.vmem [#allocation12], %s5681_s3 }
 0x1e0   : > { %1773 = vmatpush.bf16.msra.mxu0 %v4143_v2  ;;  %v4147_v25 = vld [vmem:[%s5772_s9] sm:$0xff]  ;;  %s6350_s9 = scalar_lea.vmem [#allocation7], %s5681_s3  ;;  %s6357_s28 = smov %s6355_s11 }
 0x1e1   : > { %1802 = vmatpush.bf16.msra.mxu1 %v4145_v3  ;;  %s6360_s16 = scalar_lea.vmem [#allocation13], %s5681_s3  ;;  %s6361_s7 = scalar_lea.vmem [#allocation19], %s5681_s3 }
 0x1e2   : > { %s6362_s18 = scalar_lea.vmem [#allocation16], %s5681_s3  ;;  %s6363_s0 = scalar_lea.vmem [#allocation21], %s5690_s10 }
 0x1e3   : > { %4015 = vmatmul.msk.bf16.vlgmr.msra.gmra.mxu0 %vm1762_vm0, %v1746_v6  ;;  %1831 = vmatpush.bf16.msra.mxu2 %v4147_v25  ;;  %v1717_v40 = vld [vmem:[%s6345_s24] sm:$0x3]  ;;  %s6364_s29 = smov %s6363_s0  ;;  %p4127_p5 = scmp.ne.s32.totalorder %s5376_s22, 1 }
 0x1e4   : > { %4024 = vmatmul.msk.bf16.vlgmr.msra.gmra.mxu1 %vm1762_vm0, %v1746_v6  ;;  %vm2085_vm2 = vcmp.gt.f32.partialorder %v1717_v40, 0.0 }
 0x1e5   : > { %v5830_v48 = vsel %vm2085_vm2, 1, %v5192_v32 }
 0x1e6   : > { %4033 = vmatmul.msk.bf16.vlgmr.msra.gmra.mxu2 %vm1762_vm0, %v1746_v6  ;;  %v2089_v52 = vperm.slane %v5830_v48, 0 }
 0x1e8   : > { %vm5839_vm4 = vcmp.eq.s32.totalorder %v2089_v52, 1 }
 0x260   : > { %v1775_v8 = vpop.f32.mrf.mxu0 }
 0x261   : > { %v1804_v9 = vpop.f32.mrf.mxu1  ;;  %v1776_v14 = vadd.f32 %v4357_v11, %v1775_v8 }
 0x262   : > { %v1805_v10 = vadd.f32 %v4358_v7, %v1804_v9 }
 0x263   : > { %v1858_v19 = vpack.c.bf16 %v1776_v14, %v1776_v14 }
 0x264   : > { %1874 = vrot.lane.b32.xlu2 %v1805_v10, %s5189_s13  ;;  %v1886_v12 = vpack.c.bf16 %v1805_v10, %v1805_v10 }
 0x266   : > { %v1927_v13 = vsel %vm1922_vm1, %v1886_v12, 0 }
 0x267   : > { %1936 = vmatpush.bf16.xpose.msra.mxu3 %v1927_v13 }
 0x268   : > { %v1777_v15 = vpop.f32.mrf.mxu0 }
 0x269   : > { %v1806_v16 = vpop.f32.mrf.mxu1  ;;  %v1778_v17 = vadd.f32 %v4357_v11, %v1777_v15  ;;  %v4359_v11 = vld [vmem:[%s6350_s9] ss:$0 sm:$0xff]  ;;  %v1833_v12 = vpop.f32.mrf.mxu2  ;;  %s6369_s9 = scalar_lea.vmem [#allocation22], %s5681_s3 }
 0x26a   : > { %v1807_v18 = vadd.f32 %v4358_v7, %v1806_v16  ;;  %v5856_v13 = vadd.f32 %v4359_v11, %v1833_v12 }
 0x26b   : > { %v4295_v22 = vpack.i.bf16 %v1805_v10, %v1778_v17  ;;  %v1859_v23 = vpack.c.bf16 %v1778_v17, %v1778_v17 }
 0x26c   : > { %1882 = vrot.lane.b32.xlu1 %v1807_v18, %s5190_s21  ;;  %1870 = vrot.lane.b32.xlu0 %v1807_v18, %s5191_s8  ;;  %v1887_v20 = vpack.c.bf16 %v1807_v18, %v1807_v18 }
 0x26d   : > { %1854 = vrot.lane.b32.xlu2 %v1778_v17, %s5190_s21 }
 0x26e   : > { %4034 = vmatmul.msk.bf16.vlgmr.msra.gmra.mxu3 %vm1922_vm1, %v1858_v19  ;;  %v1946_v21 = vsel %vm1922_vm1, %v1887_v20, 0  ;;  %v1718_v20 = vld [vmem:[%s6345_s24 + $0x2] sm:$0x3] }
 0x26f   : > { %1955 = vmatpush.bf16.xpose.msrb.mxu0 %v1946_v21  ;;  %vm2086_vm6 = vcmp.gt.f32.partialorder %v1718_v20, 0.0 }
 0x270   : > { %v5864_v21 = vsel %vm2086_vm6, 1, %v5192_v32 }
 0x271   : > { %v1835_v16 = vpop.f32.mrf.mxu2 }
 0x274   : > { %4296 = vrot.lane.b32.xlu0 %v4295_v22, %s5191_s8  ;;  %1840 = vrot.lane.b32.xlu1 %v1776_v14, %s5191_s8  ;;  %v2090_v22 = vperm.slane %v5864_v21, 0 }
 0x275   : > { %1876 = vrot.lane.b32.xlu2 %v1807_v18, %s5189_s13 }
 0x276   : > { %4035 = vmatmul.msk.bf16.vlgmr.msrb.gmra.mxu0 %vm1922_vm1, %v1859_v23  ;;  %vm5869_vm7 = vcmp.eq.s32.totalorder %v2090_v22, 1 }
 0x27c   : > { %1846 = vrot.lane.b32.xlu0 %v1776_v14, %s5189_s13  ;;  %1880 = vrot.lane.b32.xlu1 %v1805_v10, %s5190_s21 }
 0x284   : > { %1852 = vrot.lane.b32.xlu0 %v1776_v14, %s5190_s21  ;;  %1848 = vrot.lane.b32.xlu1 %v1778_v17, %s5189_s13  ;;  %v1914_v14 = vpack.c.bf16 %v5856_v13, %v5856_v13  ;;  %v1836_v17 = vadd.f32 %v4359_v11, %v1835_v16 }
 0x286   : > { %v2202_v15 = vsel %vm2200_vm5, %v1914_v14, 0  ;;  %v1915_v18 = vpack.c.bf16 %v1836_v17, %v1836_v17  ;;  %v5908_v58 = vpack.i.bf16 %v5856_v13, %v1836_v17 }
 0x288   : > { %v2221_v19 = vsel %vm2200_vm5, %v1915_v18, 0 }
 0x2be   : > { %v1875_v26 = vpop.permute.xlu2 %1874 }
 0x2bf   : > { %v1890_v27 = vpack.c.bf16 %v1875_v26, %v1875_v26 }
 0x2c1   : > { %v2003_v28 = vsel %vm1922_vm1, %v1890_v27, 0 }
 0x2c2   : > { %2012 = vmatpush.bf16.xpose.msrb.mxu3 %v2003_v28 }
 0x2c7   : > { %v1855_v29 = vpop.permute.xlu2 %1854 }
 0x2c8   : > { %v1865_v6 = vpack.c.bf16 %v1855_v29, %v1855_v29 }
 0x2ca   : > { %2211 = vmatpush.bf16.msra.mxu3 %v2202_v15 }
 0x2cf   : > { %v1877_v30 = vpop.permute.xlu2 %1876 }
 0x2d0   : > { %v1891_v31 = vpack.c.bf16 %v1877_v30, %v1877_v30 }
 0x2d2   : > { %v2022_v33 = vsel %vm1922_vm1, %v1891_v31, 0 }
 0x2d3   : > { %2031 = vmatpush.bf16.xpose.msra.mxu0 %v2022_v33 }
 0x2db   : > { %2230 = vmatpush.bf16.msrb.mxu0 %v2221_v19 }
 0x2de   : > { %v1883_v34 = vpop.permute.xlu1 %1882  ;;  %v1871_v35 = vpop.permute.xlu0 %1870 }
 0x2df   : > { %v1893_v36 = vpack.c.bf16 %v1883_v34, %v1883_v34  ;;  %v1889_v37 = vpack.c.bf16 %v1871_v35, %v1871_v35 }
 0x2e1   : > { %v2060_v38 = vsel %vm1922_vm1, %v1893_v36, 0  ;;  %v1984_v39 = vsel %vm1922_vm1, %v1889_v37, 0 }
 0x2e2   : > { %1993 = vmatpush.bf16.xpose.msrb.mxu2 %v1984_v39 }
 0x2e6   : > { %v4297_v41 = vpop.permute.xlu0 %4296  ;;  %v1841_v42 = vpop.permute.xlu1 %1840 }
 0x2e7   : > { %v4299_v43 = vunpack.i.h.bf16 %v4297_v41  ;;  %v4298_v44 = vunpack.i.l.bf16 %v4297_v41  ;;  %v1860_v59 = vpack.c.bf16 %v1841_v42, %v1841_v42 }
 0x2e9   : > { %v1888_v46 = vpack.c.bf16 %v4299_v43, %v4299_v43  ;;  %v1861_v47 = vpack.c.bf16 %v4298_v44, %v4298_v44 }
 0x2ea   : > { %2069 = vmatpush.bf16.xpose.msra.mxu2 %v2060_v38 }
 0x2eb   : > { %4037 = vmatmul.msk.bf16.vlgmr.msrb.gmra.mxu2 %vm1922_vm1, %v1861_v47  ;;  %v1965_v49 = vsel %vm1922_vm1, %v1888_v46, 0 }
 0x2ec   : > { %1974 = vmatpush.bf16.xpose.msrb.mxu1 %v1965_v49 }
 0x2ee   : > { %v1847_v53 = vpop.permute.xlu0 %1846  ;;  %v1881_v54 = vpop.permute.xlu1 %1880 }
 0x2ef   : > { %v1862_v55 = vpack.c.bf16 %v1847_v53, %v1847_v53  ;;  %v1892_v56 = vpack.c.bf16 %v1881_v54, %v1881_v54 }
 0x2f1   : > { %v2041_v60 = vsel %vm1922_vm1, %v1892_v56, 0  ;;  %v1938_v61 = vpop.f32.mrf.mxu3  ;;  %4038 = vmatmul.msk.bf16.vlgmr.msrb.gmra.mxu3 %vm1922_vm1, %v1862_v55 }
 0x2f2   : > { %v2077_v62 = vsel %vm5835_vm3, -1e+30, %v1938_v61 }
 0x2f3   : > { %v1957_v63 = vpop.f32.mrf.mxu0  ;;  %4036 = vmatmul.msk.bf16.vlgmr.msrb.gmra.mxu1 %vm1922_vm1, %v1860_v59  ;;  %v2093_v0 = vsel %vm5839_vm4, -1e+30, %v2077_v62 }
 0x2f4   : > { %2050 = vmatpush.bf16.xpose.msra.mxu1 %v2041_v60  ;;  %v2101_v1 = vsel %vm1922_vm1, %v2093_v0, -inf  ;;  %v2078_v31 = vsel %vm5835_vm3, -1e+30, %v1957_v63 }
 0x2f5   : > { %2102 = vmax.xlane.f32.xlu0 %v2101_v1  ;;  %v2094_v38 = vsel %vm5869_vm7, -1e+30, %v2078_v31 }
 0x2f6   : > { %v1849_v2 = vpop.permute.xlu1 %1848  ;;  %v1853_v9 = vpop.permute.xlu0 %1852  ;;  %v2104_v42 = vsel %vm1922_vm1, %v2094_v38, -inf }
 0x2f7   : > { %v1863_v3 = vpack.c.bf16 %v1849_v2, %v1849_v2  ;;  %v1864_v10 = vpack.c.bf16 %v1853_v9, %v1853_v9 }
 0x2f9   : > { %v1940_v7 = vpop.f32.mrf.mxu3  ;;  %4039 = vmatmul.msk.bf16.vlgmr.msra.gmra.mxu0 %vm1922_vm1, %v1863_v3 }
 0x2fb   : > { %v1959_v8 = vpop.f32.mrf.mxu0  ;;  %4041 = vmatmul.msk.bf16.vlgmr.msra.gmra.mxu2 %vm1922_vm1, %v1865_v6 }
 0x303   : > { %4040 = vmatmul.msk.bf16.vlgmr.msra.gmra.mxu1 %vm1922_vm1, %v1864_v10 }
 0x368   : > { %v2103_v39 = vpop.xlane.xlu0 %2102 }
 0x369   : > { %v2125_v43 = vsub.f32 %v2093_v0, %v2103_v39 }
 0x36b   : > { %v2133_v45 = vmul.f32 1.442695, %v2125_v43 }
 0x36d   : > { %4373 = vpow2.f32 %v2133_v45 }
 0x36e   : > { %v1995_v23 = vpop.f32.mrf.mxu2 }
 0x36f   : > { %v2080_v24 = vsel %vm5835_vm3, -1e+30, %v1995_v23 }
 0x370   : > { %v1976_v26 = vpop.f32.mrf.mxu1  ;;  %v2096_v27 = vsel %vm5869_vm7, -1e+30, %v2080_v24 }
 0x371   : > { %v2079_v28 = vsel %vm5835_vm3, -1e+30, %v1976_v26  ;;  %v2110_v29 = vsel %vm1922_vm1, %v2096_v27, -inf }
 0x372   : > { %2111 = vmax.xlane.f32.xlu2 %v2110_v29  ;;  %v2095_v30 = vsel %vm5839_vm4, -1e+30, %v2079_v28 }
 0x373   : > { %v2107_v32 = vsel %vm1922_vm1, %v2095_v30, -inf  ;;  %v4374_v61 = vpop.eup %4373 }
 0x374   : > { %2108 = vmax.xlane.f32.xlu1 %v2107_v32  ;;  %v2014_v33 = vpop.f32.mrf.mxu3  ;;  %v2149_v0 = vsel %vm1922_vm1, %v4374_v61, 0.0 }
 0x375   : > { %v2081_v34 = vsel %vm5835_vm3, -1e+30, %v2014_v33 }
 0x376   : > { %v1997_v35 = vpop.f32.mrf.mxu2  ;;  %v2033_v36 = vpop.f32.mrf.mxu0  ;;  %v2097_v37 = vsel %vm5839_vm4, -1e+30, %v2081_v34 }
 0x377   : > { %v2113_v40 = vsel %vm1922_vm1, %v2097_v37, -inf  ;;  %v2082_v55 = vsel %vm5835_vm3, -1e+30, %v2033_v36 }
 0x378   : > { %v1978_v41 = vpop.f32.mrf.mxu1  ;;  %2114 = vmax.xlane.f32.xlu0 %v2113_v40  ;;  %v2098_v60 = vsel %vm5869_vm7, -1e+30, %v2082_v55 }
 0x379   : > { %v2116_v63 = vsel %vm1922_vm1, %v2098_v60, -inf }
 0x37a   : > { %2105 = vmax.xlane.f32.xlu2 %v2104_v42 }
 0x37c   : > { %v2016_v44 = vpop.f32.mrf.mxu3 }
 0x37e   : > { %v2035_v46 = vpop.f32.mrf.mxu0  ;;  %v2071_v47 = vpop.f32.mrf.mxu2 }
 0x37f   : > { %v2084_v49 = vsel %vm5835_vm3, -1e+30, %v2071_v47 }
 0x380   : > { %v2052_v50 = vpop.f32.mrf.mxu1  ;;  %v2100_v51 = vsel %vm5869_vm7, -1e+30, %v2084_v49 }
 0x381   : > { %v2083_v52 = vsel %vm5835_vm3, -1e+30, %v2052_v50  ;;  %v2122_v53 = vsel %vm1922_vm1, %v2100_v51, -inf }
 0x382   : > { %2123 = vmax.xlane.f32.xlu2 %v2122_v53  ;;  %v2099_v54 = vsel %vm5839_vm4, -1e+30, %v2083_v52 }
 0x383   : > { %v2119_v56 = vsel %vm1922_vm1, %v2099_v54, -inf }
 0x384   : > { %2120 = vmax.xlane.f32.xlu1 %v2119_v56 }
 0x386   : > { %v2073_v59 = vpop.f32.mrf.mxu2 }
 0x388   : > { %v2054_v62 = vpop.f32.mrf.mxu1 }
 0x38a   : > { %2117 = vmax.xlane.f32.xlu2 %v2116_v63 }
 0x38c   : > { %2150 = vadd.xlane.f32.xlu1 %v2149_v0 }
 0x3a2   : > { %4301 = vrot.lane.b32.xlu2 %v5908_v58, %s5191_s8 }
 0x3aa   : > { %1902 = vrot.lane.b32.xlu2 %v5856_v13, %s5189_s13 }
 0x3b2   : > { %1904 = vrot.lane.b32.xlu2 %v1836_v17, %s5189_s13 }
 0x3e5   : > { %v2112_v57 = vpop.xlane.xlu2 %2111 }
 0x3e6   : > { %v2128_v3 = vsub.f32 %v2096_v27, %v2112_v57 }
 0x3e7   : > { %v2109_v1 = vpop.xlane.xlu1 %2108 }
 0x3e8   : > { %v2127_v2 = vsub.f32 %v2095_v30, %v2109_v1  ;;  %v2139_v7 = vmul.f32 1.442695, %v2128_v3 }
 0x3ea   : > { %v2137_v6 = vmul.f32 1.442695, %v2127_v2 }
 0x3eb   : > { %v2115_v8 = vpop.xlane.xlu0 %2114 }
 0x3ec   : > { %4375 = vpow2.f32 %v2137_v6  ;;  %v2129_v11 = vsub.f32 %v2097_v37, %v2115_v8 }
 0x3ed   : > { %v2106_v9 = vpop.xlane.xlu2 %2105  ;;  %4377 = vpow2.f32 %v2139_v7 }
 0x3ee   : > { %v2126_v10 = vsub.f32 %v2094_v38, %v2106_v9  ;;  %v2141_v15 = vmul.f32 1.442695, %v2129_v11 }
 0x3f0   : > { %v2135_v12 = vmul.f32 1.442695, %v2126_v10 }
 0x3f2   : > { %v5915_v14 = vpop.eup %4375  ;;  %4379 = vpow2.f32 %v2135_v12 }
 0x3f3   : > { %v2155_v13 = vsel %vm1922_vm1, %v5915_v14, 0.0  ;;  %v5919_v18 = vpop.eup %4377  ;;  %4381 = vpow2.f32 %v2141_v15 }
 0x3f4   : > { %2156 = vadd.xlane.f32.xlu0 %v2155_v13  ;;  %v2158_v26 = vsel %vm1922_vm1, %v5919_v18, 0.0 }
 0x3f5   : > { %v2124_v16 = vpop.xlane.xlu2 %2123 }
 0x3f6   : > { %v2132_v17 = vsub.f32 %v2100_v51, %v2124_v16 }
 0x3f7   : > { %v2121_v19 = vpop.xlane.xlu1 %2120 }
 0x3f8   : > { %v4380_v20 = vpop.eup %4379  ;;  %v2147_v22 = vmul.f32 1.442695, %v2132_v17  ;;  %v2131_v23 = vsub.f32 %v2099_v54, %v2121_v19 }
 0x3f9   : > { %v2152_v24 = vsel %vm1922_vm1, %v4380_v20, 0.0  ;;  %v4382_v28 = vpop.eup %4381 }
 0x3fa   : > { %4383 = vpow2.f32 %v2147_v22  ;;  %2153 = vadd.xlane.f32.xlu1 %v2152_v24  ;;  %v2145_v25 = vmul.f32 1.442695, %v2131_v23  ;;  %v2161_v32 = vsel %vm1922_vm1, %v4382_v28, 0.0 }
 0x3fc   : > { %2159 = vadd.xlane.f32.xlu0 %v2158_v26  ;;  %4385 = vpow2.f32 %v2145_v25 }
 0x3fd   : > { %v2118_v27 = vpop.xlane.xlu2 %2117 }
 0x3fe   : > { %v2130_v31 = vsub.f32 %v2098_v60, %v2118_v27 }
 0x3ff   : > { %v2151_v29 = vpop.xlane.xlu1 %2150 }
 0x400   : > { %v5924_v30 = vpop.eup %4383  ;;  %4387 = vrcp.f32 %v2151_v29  ;;  %v2143_v34 = vmul.f32 1.442695, %v2130_v31 }
 0x401   : > { %v2170_v33 = vsel %vm1922_vm1, %v5924_v30, 0.0 }
 0x402   : > { %2162 = vadd.xlane.f32.xlu1 %v2161_v32  ;;  %v5929_v35 = vpop.eup %4385  ;;  %4389 = vpow2.f32 %v2143_v34  ;;  %v1739_v32 = vld [vmem:[%s5693_s25] sm:$0xf]  ;;  %v1740_v34 = vld [vmem:[%s5693_s25 + $0x4] sm:$0xf] }
 0x403   : > { %v2167_v44 = vsel %vm1922_vm1, %v5929_v35, 0.0 }
 0x404   : > { %2171 = vadd.xlane.f32.xlu0 %v2170_v33  ;;  %v2355_v33 = vsel %vm2200_vm5, %v1739_v32, 0 }
 0x405   : > { %v4302_v36 = vpop.permute.xlu2 %4301 }
 0x406   : > { %v4388_v37 = vpop.eup %4387  ;;  %v4304_v38 = vunpack.i.h.bf16 %v4302_v36  ;;  %v4303_v39 = vunpack.i.l.bf16 %v4302_v36  ;;  %v1741_v36 = vld [vmem:[%s5693_s25 + $0x8] sm:$0xf] }
 0x407   : > { %v2181_v40 = vmul.f32 %v4388_v37, %v4374_v61  ;;  %v2404_v37 = vsel %vm2200_vm5, %v1741_v36, 0  ;;  %v4152_v36 = vld [vmem:[%s6355_s11 + $0x8] sm:$0xff]  ;;  %s6376_s11 = scalar_lea.vmem [#allocation33], %s5681_s3 }
 0x408   : > { %v1916_v41 = vpack.c.bf16 %v4304_v38, %v4304_v38  ;;  %v1917_v42 = vpack.c.bf16 %v4303_v39, %v4303_v39  ;;  %v4390_v49 = vpop.eup %4389  ;;  %v1742_v39 = vld [vmem:[%s5693_s25 + $0xc] sm:$0xf]  ;;  %s6356_s25 = scalar_lea.vmem [#allocation15], %s5690_s10 }
 0x409   : > { %v2189_v43 = vpack.c.bf16 %v2181_v40, %v2181_v40  ;;  %v2164_v52 = vsel %vm1922_vm1, %v4390_v49, 0.0  ;;  %s6358_s15 = smov %s6356_s25 }
 0x40a   : > { %2168 = vadd.xlane.f32.xlu1 %v2167_v44  ;;  %v2240_v45 = vsel %vm2200_vm5, %v1916_v41, 0  ;;  %v2259_v46 = vsel %vm2200_vm5, %v1917_v42, 0  ;;  %v2427_v41 = vsel %vm2200_vm5, %v1742_v39, 0 }
 0x40b   : > { %4042 = vmatmul.msk.bf16.vlgmr.msra.gmra.mxu3 %vm1922_vm1, %v2189_v43  ;;  %2249 = vmatpush.bf16.msrb.mxu1 %v2240_v45 }
 0x40c   : > { %2268 = vmatpush.bf16.msrb.mxu2 %v2259_v46 }
 0x40d   : > { %v1903_v47 = vpop.permute.xlu2 %1902 }
 0x40e   : > { %v1918_v50 = vpack.c.bf16 %v1903_v47, %v1903_v47 }
 0x410   : > { %v2278_v51 = vsel %vm2200_vm5, %v1918_v50, 0 }
 0x411   : > { %2287 = vmatpush.bf16.msrb.mxu3 %v2278_v51 }
 0x412   : > { %2165 = vadd.xlane.f32.xlu1 %v2164_v52 }
 0x415   : > { %v1905_v53 = vpop.permute.xlu2 %1904  ;;  %2364 = vmatpush.bf16.msra.mxu3 %v2355_v33 }
 0x416   : > { %v1919_v54 = vpack.c.bf16 %v1905_v53, %v1905_v53 }
 0x418   : > { %v2297_v55 = vsel %vm2200_vm5, %v1919_v54, 0  ;;  %4306 = vrot.lane.b32.xlu0 %v5908_v58, %s5190_s21 }
 0x419   : > { %2306 = vmatpush.bf16.msra.mxu0 %v2297_v55 }
 0x467   : > { %v2157_v56 = vpop.xlane.xlu0 %2156 }
 0x468   : > { %4391 = vrcp.f32 %v2157_v56 }
 0x46d   : > { %v2154_v59 = vpop.xlane.xlu1 %2153 }
 0x46e   : > { %v4392_v60 = vpop.eup %4391  ;;  %4393 = vrcp.f32 %v2154_v59 }
 0x46f   : > { %v2183_v61 = vmul.f32 %v4392_v60, %v5915_v14  ;;  %v2160_v62 = vpop.xlane.xlu0 %2159 }
 0x470   : > { %4395 = vrcp.f32 %v2160_v62  ;;  %v4360_v62 = vld [vmem:[%s6353_s5] ss:$0 sm:$0xff]  ;;  %s6375_s5 = scalar_lea.vmem [#allocation31], %s5681_s3 }
 0x471   : > { %v2191_v63 = vpack.c.bf16 %v2183_v61, %v2183_v61 }
 0x473   : > { %4044 = vmatmul.msk.bf16.vlgmr.msrb.gmra.mxu1 %vm1922_vm1, %v2191_v63 }
 0x474   : > { %v4394_v0 = vpop.eup %4393 }
 0x475   : > { %v2182_v57 = vmul.f32 %v4394_v0, %v4380_v20  ;;  %v2163_v1 = vpop.xlane.xlu1 %2162 }
 0x476   : > { %v4396_v2 = vpop.eup %4395  ;;  %4397 = vrcp.f32 %v2163_v1 }
 0x477   : > { %v2190_v3 = vpack.c.bf16 %v2182_v57, %v2182_v57  ;;  %v2184_v58 = vmul.f32 %v4396_v2, %v5919_v18  ;;  %v2172_v11 = vpop.xlane.xlu0 %2171 }
 0x478   : > { %4399 = vrcp.f32 %v2172_v11 }
 0x479   : > { %v2192_v6 = vpack.c.bf16 %v2184_v58, %v2184_v58  ;;  %4043 = vmatmul.msk.bf16.vlgmr.msrb.gmra.mxu0 %vm1922_vm1, %v2190_v3 }
 0x47b   : > { %4045 = vmatmul.msk.bf16.vlgmr.msrb.gmra.mxu2 %vm1922_vm1, %v2192_v6 }
 0x47c   : > { %v4398_v7 = vpop.eup %4397 }
 0x47d   : > { %v2185_v8 = vmul.f32 %v4398_v7, %v4382_v28  ;;  %v2169_v9 = vpop.xlane.xlu1 %2168 }
 0x47e   : > { %4401 = vrcp.f32 %v2169_v9  ;;  %v4400_v14 = vpop.eup %4399 }
 0x47f   : > { %v2193_v10 = vpack.c.bf16 %v2185_v8, %v2185_v8  ;;  %v2188_v19 = vmul.f32 %v4400_v14, %v5924_v30 }
 0x481   : > { %4046 = vmatmul.msk.bf16.vlgmr.msrb.gmra.mxu3 %vm1922_vm1, %v2193_v10  ;;  %v2196_v29 = vpack.c.bf16 %v2188_v19, %v2188_v19  ;;  %v5193_v19 = vmov 32.0  }
 0x484   : > { %v4402_v13 = vpop.eup %4401 }
 0x485   : > { %v2166_v12 = vpop.xlane.xlu1 %2165  ;;  %v2187_v20 = vmul.f32 %v4402_v13, %v5929_v35  ;;  %v2381_v35 = vsel %vm2200_vm5, %v1740_v34, 0 }
 0x486   : > { %4403 = vrcp.f32 %v2166_v12  ;;  %2390 = vmatpush.bf16.msrb.mxu0 %v2381_v35  ;;  %v1716_v35 = vld [vmem:[%s6354_s4 + $0x8] sm:$0xff] }
 0x487   : > { %v2195_v31 = vpack.c.bf16 %v2187_v20, %v2187_v20  ;;  %4405 = vrcp.f32 %v5193_v19 }
 0x48a   : > { %v4307_v15 = vpop.permute.xlu0 %4306 }
 0x48b   : > { %v4309_v16 = vunpack.i.h.bf16 %v4307_v15  ;;  %v4308_v17 = vunpack.i.l.bf16 %v4307_v15 }
 0x48c   : > { %v4404_v18 = vpop.eup %4403 }
 0x48d   : > { %v2186_v22 = vmul.f32 %v4404_v18, %v4390_v49  ;;  %v1920_v23 = vpack.c.bf16 %v4309_v16, %v4309_v16  ;;  %v1921_v24 = vpack.c.bf16 %v4308_v17, %v4308_v17  ;;  %v1715_v18 = vld [vmem:[%s6354_s4] sm:$0xff]  ;;  %v4406_v20 = vpop.eup %4405 }
 0x48e   : > { %v2213_v25 = vpop.f32.mrf.mxu3  ;;  %vm2458_vm8 = vweird.f32 %v4406_v20 }
 0x48f   : > { %v2194_v26 = vpack.c.bf16 %v2186_v22, %v2186_v22  ;;  %v2316_v27 = vsel %vm2200_vm5, %v1920_v23, 0  ;;  %v2335_v28 = vsel %vm2200_vm5, %v1921_v24, 0  ;;  %v2454_v22 = vmul.f32 32.0, %v4406_v20 }
 0x490   : > { %2325 = vmatpush.bf16.msra.mxu1 %v2316_v27  ;;  %2344 = vmatpush.bf16.msra.mxu2 %v2335_v28 }
 0x491   : > { %4047 = vmatmul.msk.bf16.vlgmr.msra.gmra.mxu0 %vm1922_vm1, %v2194_v26 }
 0x492   : > { %2600 = vmatpush.bf16.msra.mxu0 %v4152_v36 }
 0x493   : > { %4048 = vmatmul.msk.bf16.vlgmr.msra.gmra.mxu1 %vm1922_vm1, %v2195_v31  ;;  %4049 = vmatmul.msk.bf16.vlgmr.msra.gmra.mxu2 %vm1922_vm1, %v2196_v29 }
 0x494   : > { %2413 = vmatpush.bf16.msrb.mxu1 %v2404_v37  ;;  %2436 = vmatpush.bf16.msrb.mxu2 %v2427_v41  ;;  %v4151_v41 = vld [vmem:[%s6357_s28] sm:$0xff] }
 0x496   : > { %v2215_v30 = vpop.f32.mrf.mxu3  ;;  %2601 = vmatpush.bf16.msra.mxu0 %v4151_v41 }
 0x4f0   : > { %v2251_v38 = vpop.f32.mrf.mxu1 }
 0x4f6   : > { %v2232_v40 = vpop.f32.mrf.mxu0 }
 0x4f7   : > { %v2350_v42 = vpack.c.bf16 %v2232_v40, %v2213_v25  ;;  %v4150_v40 = vld [vmem:[%s6356_s25 + $0x8] sm:$0xff] }
 0x4f8   : > { %v2253_v43 = vpop.f32.mrf.mxu1  ;;  %2567 = vmatpush.bf16.msrb.mxu3 %v4150_v40 }
 0x4f9   : > { %4050 = vmatmul.msk.bf16.vlgmr.msra.gmra.mxu3 %vm1922_vm1, %v2350_v42  ;;  %v1713_v43 = vld [vmem:[#allocation4] sm:$0xff] }
 0x4fe   : > { %v2234_v44 = vpop.f32.mrf.mxu0  ;;  %v2270_v45 = vpop.f32.mrf.mxu2 }
 0x4ff   : > { %v2376_v46 = vpack.c.bf16 %v2270_v45, %v2251_v38  ;;  %v1714_v44 = vld [vmem:[#allocation4 + $0x8] sm:$0xff] }
 0x500   : > { %v5989_v45 = vpack.c.bf16 %v1714_v44, %v1713_v43 }
 0x501   : > { %4051 = vmatmul.msk.bf16.vlgmr.msrb.gmra.mxu0 %vm1922_vm1, %v2376_v46  ;;  %v4149_v46 = vld [vmem:[%s6358_s15] sm:$0xff] }
 0x502   : > { %2568 = vmatpush.bf16.msrb.mxu3 %v4149_v46 }
 0x504   : > { %v2289_v47 = vpop.f32.mrf.mxu3 }
 0x506   : > { %v2272_v49 = vpop.f32.mrf.mxu2 }
 0x50c   : > { %v2291_v50 = vpop.f32.mrf.mxu3 }
 0x50e   : > { %v2308_v51 = vpop.f32.mrf.mxu0 }
 0x50f   : > { %v2399_v52 = vpack.c.bf16 %v2308_v51, %v2289_v47 }
 0x510   : > { %v2327_v53 = vpop.f32.mrf.mxu1 }
 0x511   : > { %4052 = vmatmul.msk.bf16.vlgmr.msrb.gmra.mxu1 %vm1922_vm1, %v2399_v52  ;;  %4071 = vmatmul.msk.bf16.vlgmr.msra.gmra.mxu0 %vm1762_vm0, %v5989_v45 }
 0x516   : > { %v2310_v54 = vpop.f32.mrf.mxu0  ;;  %v2346_v55 = vpop.f32.mrf.mxu2 }
 0x517   : > { %v2422_v56 = vpack.c.bf16 %v2346_v55, %v2327_v53 }
 0x518   : > { %v2329_v59 = vpop.f32.mrf.mxu1 }
 0x519   : > { %4053 = vmatmul.msk.bf16.vlgmr.msrb.gmra.mxu2 %vm1922_vm1, %v2422_v56 }
 0x51e   : > { %v2348_v60 = vpop.f32.mrf.mxu2 }
 0x57c   : > { %v2366_v61 = vpop.f32.mrf.mxu3 }
 0x57d   : > { %v2374_v0 = vadd.f32 %v4360_v62, %v2366_v61 }
 0x57e   : > { %v2392_v63 = vpop.f32.mrf.mxu0 }
 0x57f   : > { %v2397_v1 = vadd.f32 %v2392_v63, %v2374_v0 }
 0x584   : > { %v2368_v2 = vpop.f32.mrf.mxu3 }
 0x585   : > { %v2375_v6 = vadd.f32 %v4360_v62, %v2368_v2 }
 0x586   : > { %v2394_v8 = vpop.f32.mrf.mxu0 }
 0x587   : > { %v2398_v11 = vadd.f32 %v2394_v8, %v2375_v6 }
 0x58e   : > { %v2415_v57 = vpop.f32.mrf.mxu1 }
 0x58f   : > { %v2420_v3 = vadd.f32 %v2415_v57, %v2397_v1  ;;  %v4361_v57 = vld [vmem:[%s6359_s12] ss:$0 sm:$0xff] }
 0x596   : > { %v2417_v10 = vpop.f32.mrf.mxu1 }
 0x597   : > { %v2421_v14 = vadd.f32 %v2417_v10, %v2398_v11 }
 0x59c   : > { %v2438_v58 = vpop.f32.mrf.mxu2 }
 0x59d   : > { %v2443_v7 = vadd.f32 %v2438_v58, %v2420_v3  ;;  %v4362_v58 = vld [vmem:[%s6360_s16] ss:$0 sm:$0xff] }
 0x59f   : > { %v2445_v9 = vadd.f32 %v2443_v7, %v5790_v4  ;;  %v2455_v4 = vsub.f32 1.0, %v2454_v22 }
 0x5a1   : > { %v2447_v12 = vsel %vm1762_vm0, %v2445_v9, 0.0  ;;  %v2456_v23 = vmul.f32 %v4406_v20, %v2455_v4 }
 0x5a2   : > { %2448 = vadd.xlane.f32.xlu1 %v2447_v12 }
 0x5a3   : > { %v2457_v24 = vadd.f32 %v4406_v20, %v2456_v23 }
 0x5a4   : > { %v2440_v13 = vpop.f32.mrf.mxu2 }
 0x5a5   : > { %v2444_v15 = vadd.f32 %v2440_v13, %v2421_v14  ;;  %v5973_v25 = vsel %vm2458_vm8, %v4406_v20, %v2457_v24  ;;  %vm3365_vm8 = vcmask 523264  }
 0x5a7   : > { %v2446_v16 = vadd.f32 %v2444_v15, %v5792_v5  ;;  %v4363_v15 = vld [vmem:[%s6361_s7] ss:$0 sm:$0xff] }
 0x5a9   : > { %v2450_v17 = vsel %vm1762_vm0, %v2446_v16, 0.0 }
 0x5aa   : > { %2451 = vadd.xlane.f32.xlu0 %v2450_v17 }
 0x5bb   : > { %2510 = vperm.xlu1 %4310, %v1715_v18  }
 0x615   : > { %v2449_v26 = vpop.xlane.xlu1 %2448 }
 0x616   : > { %v2460_v5 = vmul.f32 %v5973_v25, %v2449_v26  ;;  %v4364_v26 = vld [vmem:[%s6362_s18] ss:$0 sm:$0xff] }
 0x618   : > { %v2462_v27 = vsub.f32 %v2445_v9, %v2460_v5 }
 0x61a   : > { %v2464_v28 = vmul.f32 %v2462_v27, %v2462_v27 }
 0x61c   : > { %v2466_v29 = vsel %vm1762_vm0, %v2464_v28, 0.0 }
 0x61d   : > { %2467 = vadd.xlane.f32.xlu2 %v2466_v29  ;;  %v2452_v31 = vpop.xlane.xlu0 %2451 }
 0x61e   : > { %v2461_v30 = vmul.f32 %v5973_v25, %v2452_v31 }
 0x620   : > { %v2463_v32 = vsub.f32 %v2446_v16, %v2461_v30  ;;  %v2603_v16 = vpop.f32.mrf.mxu0 }
 0x621   : > { %v2604_v17 = vadd.f32 %v4363_v15, %v2603_v16 }
 0x622   : > { %v2465_v33 = vmul.f32 %v2463_v32, %v2463_v32 }
 0x623   : > { %v2685_v18 = vpack.c.bf16 %v2604_v17, %v2604_v17 }
 0x624   : > { %v2469_v34 = vsel %vm1762_vm0, %v2465_v33, 0.0  ;;  %v4154_v33 = vld [vmem:[%s6363_s0 + $0x8] sm:$0xff] }
 0x625   : > { %2470 = vadd.xlane.f32.xlu1 %v2469_v34  ;;  %v2725_v19 = vsel %vm1922_vm1, %v2685_v18, 0  ;;  %2629 = vmatpush.bf16.msra.mxu1 %v4154_v33  ;;  %v4153_v34 = vld [vmem:[%s6364_s29] sm:$0xff] }
 0x626   : > { %2734 = vmatpush.bf16.xpose.msra.mxu2 %v2725_v19 }
 0x628   : > { %v2605_v20 = vpop.f32.mrf.mxu0 }
 0x629   : > { %v2606_v22 = vadd.f32 %v4363_v15, %v2605_v20  ;;  %2630 = vmatpush.bf16.msra.mxu1 %v4153_v34 }
 0x62b   : > { %v4316_v4 = vpack.i.bf16 %v2606_v22, %v2604_v17  ;;  %v2686_v23 = vpack.c.bf16 %v2606_v22, %v2606_v22 }
 0x62c   : > { %4080 = vmatmul.msk.bf16.vlgmr.msra.gmra.mxu1 %vm1762_vm0, %v5989_v45 }
 0x62d   : > { %v5982_v37 = vpop.permute.xlu1 %2510  ;;  %4312 = vrot.lane.b32.xlu0 %v4316_v4, %s5191_s8  ;;  %v2744_v24 = vsel %vm1922_vm1, %v2686_v23, 0 }
 0x62e   : > { %2753 = vmatpush.bf16.xpose.msra.mxu3 %v2744_v24 }
 0x635   : > { %4317 = vrot.lane.b32.xlu2 %v4316_v4, %s5189_s13 }
 0x63e   : > { %2515 = vperm.xlu1 %4310, %v1716_v35  }
 0x690   : > { %v2468_v38 = vpop.xlane.xlu2 %2467 }
 0x691   : > { %v2472_v39 = vmul.f32 %v2468_v38, %v5973_v25 }
 0x693   : > { %v2474_v42 = vadd.f32 1e-05, %v2472_v39 }
 0x695   : > { %4407 = vrsqrt.f32 %v2474_v42  ;;  %vm2482_vm10 = vweird.f32 %v2474_v42 }
 0x698   : > { %v2471_v47 = vpop.xlane.xlu1 %2470  ;;  %v4318_v35 = vpop.permute.xlu2 %4317 }
 0x699   : > { %v2473_v49 = vmul.f32 %v2471_v47, %v5973_v25  ;;  %v4320_v36 = vunpack.i.h.bf16 %v4318_v35  ;;  %v4319_v38 = vunpack.i.l.bf16 %v4318_v35 }
 0x69b   : > { %v4408_v50 = vpop.eup %4407  ;;  %v2475_v51 = vadd.f32 1e-05, %v2473_v49  ;;  %v2690_v39 = vpack.c.bf16 %v4320_v36, %v4320_v36  ;;  %v2689_v40 = vpack.c.bf16 %v4319_v38, %v4319_v38 }
 0x69c   : > { %v2477_v52 = vmul.f32 %v4408_v50, %v2474_v42  ;;  %vm2483_vm9 = vweird.f32 %v4408_v50 }
 0x69d   : > { %4409 = vrsqrt.f32 %v2475_v51  ;;  %vm2484_vm11 = vmor %vm2482_vm10, %vm2483_vm9  ;;  %vm2492_vm13 = vweird.f32 %v2475_v51  ;;  %v2801_v41 = vsel %vm1922_vm1, %v2689_v40, 0  ;;  %v2820_v42 = vsel %vm1922_vm1, %v2690_v39, 0 }
 0x69e   : > { %v2478_v53 = vmul.f32 %v4408_v50, %v2477_v52  ;;  %2810 = vmatpush.bf16.xpose.msrb.mxu2 %v2801_v41 }
 0x69f   : > { %v4313_v43 = vpop.permute.xlu0 %4312 }
 0x6a0   : > { %v2479_v54 = vmul.f32 0.5, %v2478_v53  ;;  %v4315_v44 = vunpack.i.h.bf16 %v4313_v43  ;;  %v4314_v46 = vunpack.i.l.bf16 %v4313_v43 }
 0x6a2   : > { %v2480_v55 = vsub.f32 1.5, %v2479_v54  ;;  %v2688_v47 = vpack.c.bf16 %v4315_v44, %v4315_v44  ;;  %v2687_v49 = vpack.c.bf16 %v4314_v46, %v4314_v46  ;;  %v2873_v54 = vperm.slane %v5830_v48, 1 }
 0x6a3   : > { %v4410_v56 = vpop.eup %4409 }
 0x6a4   : > { %v2481_v59 = vmul.f32 %v4408_v50, %v2480_v55  ;;  %v2487_v60 = vmul.f32 %v4410_v56, %v2475_v51  ;;  %vm2493_vm12 = vweird.f32 %v4410_v56  ;;  %v2782_v45 = vsel %vm1922_vm1, %v2688_v47, 0 }
 0x6a5   : > { %vm2494_vm14 = vmor %vm2492_vm13, %vm2493_vm12  ;;  %2791 = vmatpush.bf16.xpose.msrb.mxu1 %v2782_v45  ;;  %vm6038_vm15 = vcmp.eq.s32.totalorder %v2873_v54, 1 }
 0x6a6   : > { %v2485_v61 = vsel %vm2484_vm11, %v4408_v50, %v2481_v59  ;;  %v2488_v62 = vmul.f32 %v4410_v56, %v2487_v60  ;;  %v2763_v50 = vsel %vm1922_vm1, %v2687_v49, 0 }
 0x6a7   : > { %v2496_v0 = vmul.f32 %v2485_v61, %v2462_v27  ;;  %2772 = vmatpush.bf16.xpose.msrb.mxu0 %v2763_v50 }
 0x6a8   : > { %v2489_v63 = vmul.f32 0.5, %v2488_v62 }
 0x6a9   : > { %v2501_v3 = vmul.f32 %v4361_v57, %v2496_v0  ;;  %v2632_v24 = vpop.f32.mrf.mxu1 }
 0x6aa   : > { %v2490_v1 = vsub.f32 1.5, %v2489_v63 }
 0x6ab   : > { %v2506_v9 = vadd.f32 %v4362_v58, %v2501_v3 }
 0x6ac   : > { %v2491_v2 = vmul.f32 %v4410_v56, %v2490_v1 }
 0x6ad   : > { %v6003_v12 = vmul.f32 %v5982_v37, %v2506_v9 }
 0x6ae   : > { %v2495_v6 = vsel %vm2494_vm14, %v4410_v56, %v2491_v2  ;;  %v2874_v2 = vperm.slane %v5864_v21, 1 }
 0x6af   : > { %v2497_v7 = vmul.f32 %v2495_v6, %v2463_v32 }
 0x6b0   : > { %v6000_v11 = vpop.permute.xlu1 %2515  ;;  %vm6048_vm2 = vcmp.eq.s32.totalorder %v2874_v2, 1 }
 0x6b1   : > { %v2502_v8 = vmul.f32 %v4361_v57, %v2497_v7 }
 0x6b3   : > { %v2507_v10 = vadd.f32 %v4362_v58, %v2502_v8 }
 0x6b5   : > { %v6006_v14 = vmul.f32 %v6000_v11, %v2507_v10 }
 0x6b7   : > { %v2542_v13 = vpack.c.bf16 %v6006_v14, %v6003_v12 }
 0x6b9   : > { %4062 = vmatmul.msk.bf16.vlgmr.msrb.gmra.mxu3 %vm1762_vm0, %v2542_v13 }
 0x6ba   : > { %2829 = vmatpush.bf16.xpose.msrb.mxu3 %v2820_v42 }
 0x73c   : > { %v2570_v5 = vpop.f32.mrf.mxu3 }
 0x73d   : > { %v2571_v27 = vadd.f32 %v4364_v26, %v2570_v5  ;;  %v2634_v5 = vpop.f32.mrf.mxu1 }
 0x73f   : > { %v2657_v28 = vpack.c.bf16 %v2571_v27, %v2571_v27 }
 0x741   : > { %4081 = vmatmul.msk.bf16.vlgmr.msra.gmra.mxu2 %vm1922_vm1, %v2657_v28 }
 0x744   : > { %v2572_v29 = vpop.f32.mrf.mxu3 }
 0x745   : > { %v2573_v31 = vadd.f32 %v4364_v26, %v2572_v29  ;;  %v4365_v26 = vld [vmem:[%s6369_s9] ss:$0 sm:$0xff] }
 0x746   : > { %v2635_v28 = vadd.f32 %v4365_v26, %v2634_v5 }
 0x747   : > { %v2658_v30 = vpack.c.bf16 %v2573_v31, %v2573_v31  ;;  %v4336_v32 = vpack.i.bf16 %v2573_v31, %v2571_v27  ;;  %v2633_v27 = vadd.f32 %v4365_v26, %v2632_v24 }
 0x748   : > { %v2714_v31 = vpack.c.bf16 %v2635_v28, %v2635_v28 }
 0x749   : > { %4082 = vmatmul.msk.bf16.vlgmr.msra.gmra.mxu3 %vm1922_vm1, %v2658_v30  ;;  %4337 = vrot.lane.b32.xlu0 %v4336_v32, %s5190_s21  ;;  %v2713_v29 = vpack.c.bf16 %v2633_v27, %v2633_v27  ;;  %v6064_v30 = vpack.i.bf16 %v2635_v28, %v2633_v27 }
 0x74a   : > { %4322 = vrot.lane.b32.xlu1 %v4336_v32, %s5191_s8  ;;  %v3004_v33 = vsel %vm2200_vm5, %v2714_v31, 0 }
 0x74b   : > { %3013 = vmatpush.bf16.msra.mxu3 %v3004_v33 }
 0x752   : > { %4327 = vrot.lane.b32.xlu1 %v4336_v32, %s5189_s13  ;;  %v2985_v32 = vsel %vm2200_vm5, %v2713_v29, 0 }
 0x753   : > { %2994 = vmatpush.bf16.msra.mxu2 %v2985_v32 }
 0x75a   : > { %4332 = vrot.lane.b32.xlu1 %v4316_v4, %s5190_s21 }
 0x7bb   : > { %v4338_v16 = vpop.permute.xlu0 %4337 }
 0x7bc   : > { %v4323_v51 = vpop.permute.xlu1 %4322  ;;  %v4340_v19 = vunpack.i.h.bf16 %v4338_v16  ;;  %v4339_v20 = vunpack.i.l.bf16 %v4338_v16 }
 0x7bd   : > { %v4325_v52 = vunpack.i.h.bf16 %v4323_v51  ;;  %v4324_v53 = vunpack.i.l.bf16 %v4323_v51 }
 0x7be   : > { %v2664_v4 = vpack.c.bf16 %v4340_v19, %v4340_v19  ;;  %v2663_v23 = vpack.c.bf16 %v4339_v20, %v4339_v20 }
 0x7bf   : > { %v2660_v55 = vpack.c.bf16 %v4325_v52, %v4325_v52  ;;  %v2659_v56 = vpack.c.bf16 %v4324_v53, %v4324_v53 }
 0x7c1   : > { %4083 = vmatmul.msk.bf16.vlgmr.msrb.gmra.mxu0 %vm1922_vm1, %v2659_v56  ;;  %4084 = vmatmul.msk.bf16.vlgmr.msrb.gmra.mxu1 %vm1922_vm1, %v2660_v55 }
 0x7c4   : > { %v4328_v60 = vpop.permute.xlu1 %4327  ;;  %v2736_v61 = vpop.f32.mrf.mxu2 }
 0x7c5   : > { %v4330_v62 = vunpack.i.h.bf16 %v4328_v60  ;;  %v4329_v63 = vunpack.i.l.bf16 %v4328_v60  ;;  %v2877_v0 = vsel %vm6038_vm15, -1e+30, %v2736_v61 }
 0x7c6   : > { %v2885_v57 = vsel %vm1922_vm1, %v2877_v0, -inf }
 0x7c7   : > { %v2662_v48 = vpack.c.bf16 %v4330_v62, %v4330_v62  ;;  %v2661_v1 = vpack.c.bf16 %v4329_v63, %v4329_v63  ;;  %2886 = vmax.xlane.f32.xlu2 %v2885_v57 }
 0x7c9   : > { %4085 = vmatmul.msk.bf16.vlgmr.msrb.gmra.mxu2 %vm1922_vm1, %v2661_v1  ;;  %4086 = vmatmul.msk.bf16.vlgmr.msrb.gmra.mxu3 %vm1922_vm1, %v2662_v48 }
 0x7cc   : > { %v4333_v58 = vpop.permute.xlu1 %4332  ;;  %v2738_v6 = vpop.f32.mrf.mxu2 }
 0x7cd   : > { %v4335_v7 = vunpack.i.h.bf16 %v4333_v58  ;;  %v4334_v8 = vunpack.i.l.bf16 %v4333_v58  ;;  %v2755_v9 = vpop.f32.mrf.mxu3 }
 0x7ce   : > { %v6054_v10 = vsel %vm6048_vm2, -1e+30, %v2755_v9 }
 0x7cf   : > { %v2692_v13 = vpack.c.bf16 %v4335_v7, %v4335_v7  ;;  %v2691_v15 = vpack.c.bf16 %v4334_v8, %v4334_v8  ;;  %v2888_v21 = vsel %vm1922_vm1, %v6054_v10, -inf }
 0x7d0   : > { %2889 = vmax.xlane.f32.xlu1 %v2888_v21 }
 0x7d1   : > { %v2839_v17 = vsel %vm1922_vm1, %v2691_v15, 0  ;;  %v2858_v18 = vsel %vm1922_vm1, %v2692_v13, 0 }
 0x7d2   : > { %2848 = vmatpush.bf16.xpose.msra.mxu0 %v2839_v17  ;;  %2867 = vmatpush.bf16.xpose.msra.mxu1 %v2858_v18 }
 0x7d5   : > { %v2757_v22 = vpop.f32.mrf.mxu3 }
 0x7d9   : > { %4087 = vmatmul.msk.bf16.vlgmr.msra.gmra.mxu0 %vm1922_vm1, %v2663_v23  ;;  %4088 = vmatmul.msk.bf16.vlgmr.msra.gmra.mxu1 %vm1922_vm1, %v2664_v4 }
 0x83a   : > { %v2887_v41 = vpop.xlane.xlu2 %2886 }
 0x83b   : > { %v2909_v42 = vsub.f32 %v2877_v0, %v2887_v41 }
 0x83d   : > { %v2917_v46 = vmul.f32 1.442695, %v2909_v42 }
 0x83e   : > { %v2774_v34 = vpop.f32.mrf.mxu0  ;;  %v2793_v35 = vpop.f32.mrf.mxu1 }
 0x83f   : > { %v2879_v36 = vsel %vm6038_vm15, -1e+30, %v2774_v34  ;;  %v2880_v38 = vsel %vm6048_vm2, -1e+30, %v2793_v35  ;;  %4411 = vpow2.f32 %v2917_v46 }
 0x840   : > { %v2894_v39 = vsel %vm1922_vm1, %v2880_v38, -inf  ;;  %v2891_v40 = vsel %vm1922_vm1, %v2879_v36, -inf }
 0x841   : > { %2895 = vmax.xlane.f32.xlu2 %v2894_v39  ;;  %2892 = vmax.xlane.f32.xlu0 %v2891_v40 }
 0x843   : > { %v2890_v2 = vpop.xlane.xlu1 %2889 }
 0x844   : > { %v2910_v58 = vsub.f32 %v6054_v10, %v2890_v2 }
 0x845   : > { %v4412_v53 = vpop.eup %4411 }
 0x846   : > { %v2776_v43 = vpop.f32.mrf.mxu0  ;;  %v2795_v44 = vpop.f32.mrf.mxu1  ;;  %v2933_v61 = vsel %vm1922_vm1, %v4412_v53, 0.0  ;;  %v2919_v59 = vmul.f32 1.442695, %v2910_v58 }
 0x848   : > { %4413 = vpow2.f32 %v2919_v59 }
 0x84c   : > { %v2812_v47 = vpop.f32.mrf.mxu2  ;;  %v2831_v49 = vpop.f32.mrf.mxu3 }
 0x84d   : > { %v2881_v50 = vsel %vm6038_vm15, -1e+30, %v2812_v47  ;;  %v2882_v45 = vsel %vm6048_vm2, -1e+30, %v2831_v49 }
 0x84e   : > { %v2897_v51 = vsel %vm1922_vm1, %v2881_v50, -inf  ;;  %v2900_v52 = vsel %vm1922_vm1, %v2882_v45, -inf  ;;  %v6090_v6 = vpop.eup %4413 }
 0x84f   : > { %2898 = vmax.xlane.f32.xlu1 %v2897_v51  ;;  %2901 = vmax.xlane.f32.xlu0 %v2900_v52  ;;  %v2936_v3 = vsel %vm1922_vm1, %v6090_v6, 0.0 }
 0x854   : > { %v2814_v54 = vpop.f32.mrf.mxu2  ;;  %v2833_v55 = vpop.f32.mrf.mxu3 }
 0x856   : > { %v2850_v56 = vpop.f32.mrf.mxu0  ;;  %v2869_v60 = vpop.f32.mrf.mxu1 }
 0x857   : > { %v2883_v62 = vsel %vm6038_vm15, -1e+30, %v2850_v56  ;;  %v2884_v63 = vsel %vm6048_vm2, -1e+30, %v2869_v60  ;;  %2934 = vadd.xlane.f32.xlu0 %v2933_v61 }
 0x858   : > { %v2906_v0 = vsel %vm1922_vm1, %v2884_v63, -inf  ;;  %v2903_v57 = vsel %vm1922_vm1, %v2883_v62, -inf }
 0x859   : > { %2907 = vmax.xlane.f32.xlu1 %v2906_v0  ;;  %2904 = vmax.xlane.f32.xlu2 %v2903_v57 }
 0x85e   : > { %v2852_v48 = vpop.f32.mrf.mxu0  ;;  %v2871_v1 = vpop.f32.mrf.mxu1 }
 0x871   : > { %4342 = vrot.lane.b32.xlu2 %v6064_v30, %s5191_s8  ;;  %s6374_s8 = scalar_lea.vmem [#allocation28], %s5681_s3 }
 0x89a   : > { %2937 = vadd.xlane.f32.xlu2 %v2936_v3 }
 0x8b2   : > { %4352 = vrot.lane.b32.xlu2 %v6064_v30, %s5190_s21 }
 0x8b4   : > { %v2896_v7 = vpop.xlane.xlu2 %2895  ;;  %v2893_v8 = vpop.xlane.xlu0 %2892 }
 0x8b5   : > { %v2912_v9 = vsub.f32 %v2880_v38, %v2896_v7  ;;  %v2911_v13 = vsub.f32 %v2879_v36, %v2893_v8 }
 0x8b7   : > { %v2923_v15 = vmul.f32 1.442695, %v2912_v9  ;;  %v2921_v21 = vmul.f32 1.442695, %v2911_v13 }
 0x8b9   : > { %4415 = vpow2.f32 %v2923_v15 }
 0x8ba   : > { %4417 = vpow2.f32 %v2921_v21 }
 0x8bf   : > { %v6096_v10 = vpop.eup %4415 }
 0x8c0   : > { %v6098_v16 = vpop.eup %4417  ;;  %v2942_v17 = vsel %vm1922_vm1, %v6096_v10, 0.0 }
 0x8c1   : > { %2943 = vadd.xlane.f32.xlu0 %v2942_v17  ;;  %v2939_v18 = vsel %vm1922_vm1, %v6098_v16, 0.0 }
 0x8c2   : > { %2940 = vadd.xlane.f32.xlu1 %v2939_v18  ;;  %v2899_v19 = vpop.xlane.xlu1 %2898  ;;  %v2902_v20 = vpop.xlane.xlu0 %2901 }
 0x8c3   : > { %v2913_v22 = vsub.f32 %v2881_v50, %v2899_v19  ;;  %v2914_v4 = vsub.f32 %v2882_v45, %v2902_v20 }
 0x8c5   : > { %v2925_v23 = vmul.f32 1.442695, %v2913_v22  ;;  %v2927_v24 = vmul.f32 1.442695, %v2914_v4 }
 0x8c7   : > { %4419 = vpow2.f32 %v2925_v23 }
 0x8c8   : > { %4421 = vpow2.f32 %v2927_v24 }
 0x8ca   : > { %v2935_v26 = vpop.xlane.xlu0 %2934 }
 0x8cb   : > { %4423 = vrcp.f32 %v2935_v26 }
 0x8cc   : > { %v2905_v5 = vpop.xlane.xlu2 %2904  ;;  %v2908_v28 = vpop.xlane.xlu1 %2907 }
 0x8cd   : > { %v6104_v27 = vpop.eup %4419  ;;  %v2915_v29 = vsub.f32 %v2883_v62, %v2905_v5  ;;  %v2916_v35 = vsub.f32 %v2884_v63, %v2908_v28 }
 0x8ce   : > { %v6106_v31 = vpop.eup %4421  ;;  %v2945_v32 = vsel %vm1922_vm1, %v6104_v27, 0.0 }
 0x8cf   : > { %v2929_v33 = vmul.f32 1.442695, %v2915_v29  ;;  %2946 = vadd.xlane.f32.xlu1 %v2945_v32  ;;  %v2948_v34 = vsel %vm1922_vm1, %v6106_v31, 0.0  ;;  %v2931_v40 = vmul.f32 1.442695, %v2916_v35 }
 0x8d0   : > { %2949 = vadd.xlane.f32.xlu0 %v2948_v34 }
 0x8d1   : > { %v4424_v36 = vpop.eup %4423  ;;  %4425 = vpow2.f32 %v2929_v33 }
 0x8d2   : > { %v2965_v38 = vmul.f32 %v4424_v36, %v4412_v53  ;;  %4427 = vpow2.f32 %v2931_v40  ;;  %v2536_v40 = vld [vmem:[%s5730_s23 + $0x4] sm:$0xf] }
 0x8d4   : > { %v2973_v39 = vpack.c.bf16 %v2965_v38, %v2965_v38  ;;  %v4343_v41 = vpop.permute.xlu2 %4342 }
 0x8d5   : > { %v4345_v42 = vunpack.i.h.bf16 %v4343_v41  ;;  %v4344_v43 = vunpack.i.l.bf16 %v4343_v41 }
 0x8d6   : > { %4089 = vmatmul.msk.bf16.vlgmr.msra.gmra.mxu2 %vm1922_vm1, %v2973_v39 }
 0x8d7   : > { %v2716_v44 = vpack.c.bf16 %v4345_v42, %v4345_v42  ;;  %v2715_v46 = vpack.c.bf16 %v4344_v43, %v4344_v43  ;;  %v4426_v47 = vpop.eup %4425  ;;  %v3164_v42 = vsel %vm2200_vm5, %v2536_v40, 0 }
 0x8d8   : > { %v2951_v49 = vsel %vm1922_vm1, %v4426_v47, 0.0  ;;  %v4428_v51 = vpop.eup %4427 }
 0x8d9   : > { %v3023_v50 = vsel %vm2200_vm5, %v2715_v46, 0  ;;  %v3042_v45 = vsel %vm2200_vm5, %v2716_v44, 0  ;;  %2952 = vadd.xlane.f32.xlu0 %v2951_v49  ;;  %v2954_v52 = vsel %vm1922_vm1, %v4428_v51, 0.0  ;;  %v2538_v44 = vld [vmem:[%s5730_s23 + $0xc] sm:$0xf] }
 0x8da   : > { %3032 = vmatpush.bf16.msrb.mxu0 %v3023_v50  ;;  %3051 = vmatpush.bf16.msrb.mxu1 %v3042_v45 }
 0x8e1   : > { %2955 = vadd.xlane.f32.xlu0 %v2954_v52 }
 0x8e8   : > { %4347 = vrot.lane.b32.xlu1 %v6064_v30, %s5189_s13  ;;  %s6371_s13 = scalar_lea.vmem [#allocation30], %s5690_s10  ;;  %s6373_s10 = scalar_lea.vmem [#allocation27], %s5681_s3 }
 0x8e9   : > { %s6372_s21 = smov %s6371_s13 }
 0x90d   : > { %v2938_v53 = vpop.xlane.xlu2 %2937 }
 0x90e   : > { %4429 = vrcp.f32 %v2938_v53 }
 0x914   : > { %v4430_v54 = vpop.eup %4429 }
 0x915   : > { %v2966_v55 = vmul.f32 %v4430_v54, %v6090_v6  ;;  %v4353_v56 = vpop.permute.xlu2 %4352 }
 0x916   : > { %v4355_v60 = vunpack.i.h.bf16 %v4353_v56  ;;  %v4354_v61 = vunpack.i.l.bf16 %v4353_v56 }
 0x917   : > { %v2974_v62 = vpack.c.bf16 %v2966_v55, %v2966_v55 }
 0x918   : > { %v2720_v63 = vpack.c.bf16 %v4355_v60, %v4355_v60  ;;  %v2719_v0 = vpack.c.bf16 %v4354_v61, %v4354_v61 }
 0x919   : > { %4090 = vmatmul.msk.bf16.vlgmr.msra.gmra.mxu3 %vm1922_vm1, %v2974_v62 }
 0x91a   : > { %v3099_v57 = vsel %vm2200_vm5, %v2719_v0, 0  ;;  %v3118_v48 = vsel %vm2200_vm5, %v2720_v63, 0 }
 0x91b   : > { %3108 = vmatpush.bf16.msra.mxu0 %v3099_v57  ;;  %3127 = vmatpush.bf16.msra.mxu1 %v3118_v48 }
 0x934   : > { %v2944_v30 = vpop.xlane.xlu0 %2943 }
 0x935   : > { %v2941_v1 = vpop.xlane.xlu1 %2940  ;;  %4431 = vrcp.f32 %v2944_v30 }
 0x936   : > { %4433 = vrcp.f32 %v2941_v1 }
 0x93b   : > { %v4432_v2 = vpop.eup %4431 }
 0x93c   : > { %v4434_v58 = vpop.eup %4433  ;;  %v2968_v59 = vmul.f32 %v4432_v2, %v6096_v10 }
 0x93d   : > { %v2967_v6 = vmul.f32 %v4434_v58, %v6098_v16 }
 0x93e   : > { %v2976_v3 = vpack.c.bf16 %v2968_v59, %v2968_v59 }
 0x93f   : > { %v2975_v7 = vpack.c.bf16 %v2967_v6, %v2967_v6 }
 0x940   : > { %4092 = vmatmul.msk.bf16.vlgmr.msrb.gmra.mxu1 %vm1922_vm1, %v2976_v3 }
 0x941   : > { %4091 = vmatmul.msk.bf16.vlgmr.msrb.gmra.mxu0 %vm1922_vm1, %v2975_v7 }
 0x942   : > { %v2947_v13 = vpop.xlane.xlu1 %2946 }
 0x943   : > { %v2950_v8 = vpop.xlane.xlu0 %2949 }
 0x94c   : > { %v2953_v9 = vpop.xlane.xlu0 %2952 }
 0x94d   : > { %4435 = vrcp.f32 %v2953_v9 }
 0x94e   : > { %4437 = vrcp.f32 %v2947_v13 }
 0x94f   : > { %4439 = vrcp.f32 %v2950_v8 }
 0x953   : > { %v4436_v15 = vpop.eup %4435 }
 0x954   : > { %v2971_v21 = vmul.f32 %v4436_v15, %v4426_v47  ;;  %v2956_v17 = vpop.xlane.xlu0 %2955  ;;  %v4438_v10 = vpop.eup %4437  ;;  %v3210_v47 = vsel %vm2200_vm5, %v2538_v44, 0 }
 0x955   : > { %4441 = vrcp.f32 %v2956_v17  ;;  %v4440_v19 = vpop.eup %4439  ;;  %v2969_v24 = vmul.f32 %v4438_v10, %v6104_v27  ;;  %3219 = vmatpush.bf16.msrb.mxu1 %v3210_v47 }
 0x956   : > { %v2979_v18 = vpack.c.bf16 %v2971_v21, %v2971_v21  ;;  %v2970_v26 = vmul.f32 %v4440_v19, %v6106_v31  ;;  %v2535_v31 = vld [vmem:[%s5730_s23] sm:$0xf] }
 0x957   : > { %v2977_v35 = vpack.c.bf16 %v2969_v24, %v2969_v24  ;;  %v3138_v38 = vsel %vm2200_vm5, %v2535_v31, 0  ;;  %v4155_v31 = vld [vmem:[%s6372_s21] sm:$0xff] }
 0x958   : > { %4095 = vmatmul.msk.bf16.vlgmr.msra.gmra.mxu0 %vm1922_vm1, %v2979_v18  ;;  %v2978_v36 = vpack.c.bf16 %v2970_v26, %v2970_v26 }
 0x959   : > { %v2996_v16 = vpop.f32.mrf.mxu2 }
 0x95a   : > { %v4348_v20 = vpop.permute.xlu1 %4347 }
 0x95b   : > { %v4350_v22 = vunpack.i.h.bf16 %v4348_v20  ;;  %v4349_v4 = vunpack.i.l.bf16 %v4348_v20  ;;  %v4442_v23 = vpop.eup %4441 }
 0x95c   : > { %v2972_v5 = vmul.f32 %v4442_v23, %v4428_v51  ;;  %v2537_v51 = vld [vmem:[%s5730_s23 + $0x8] sm:$0xf]  ;;  %s6370_s23 = scalar_lea.vmem [#allocation25], %s5681_s3 }
 0x95d   : > { %v2718_v28 = vpack.c.bf16 %v4350_v22, %v4350_v22  ;;  %v2717_v29 = vpack.c.bf16 %v4349_v4, %v4349_v4  ;;  %v3187_v53 = vsel %vm2200_vm5, %v2537_v51, 0  ;;  %v4366_v1 = vld [vmem:[%s6370_s23] ss:$0 sm:$0xff] }
 0x95e   : > { %v2980_v32 = vpack.c.bf16 %v2972_v5, %v2972_v5  ;;  %3196 = vmatpush.bf16.msrb.mxu0 %v3187_v53  ;;  %v4367_v53 = vld [vmem:[%s6373_s10] ss:$0 sm:$0xff] }
 0x95f   : > { %v3061_v33 = vsel %vm2200_vm5, %v2717_v29, 0  ;;  %v3080_v34 = vsel %vm2200_vm5, %v2718_v28, 0 }
 0x960   : > { %3070 = vmatpush.bf16.msrb.mxu2 %v3061_v33  ;;  %3089 = vmatpush.bf16.msrb.mxu3 %v3080_v34 }
 0x961   : > { %4096 = vmatmul.msk.bf16.vlgmr.msra.gmra.mxu1 %vm1922_vm1, %v2980_v32  ;;  %v2998_v27 = vpop.f32.mrf.mxu2 }
 0x963   : > { %4093 = vmatmul.msk.bf16.vlgmr.msrb.gmra.mxu2 %vm1922_vm1, %v2977_v35  ;;  %4094 = vmatmul.msk.bf16.vlgmr.msrb.gmra.mxu3 %vm1922_vm1, %v2978_v36  ;;  %v4156_v35 = vld [vmem:[%s6371_s13 + $0x8] sm:$0xff] }
 0x964   : > { %3147 = vmatpush.bf16.msra.mxu2 %v3138_v38  ;;  %3173 = vmatpush.bf16.msra.mxu3 %v3164_v42 }
 0x968   : > { %3327 = vmatpush.bf16.msrb.mxu2 %v4156_v35 }
 0x96c   : > { %3328 = vmatpush.bf16.msrb.mxu2 %v4155_v31 }
 0x99c   : > { %v3015_v39 = vpop.f32.mrf.mxu3 }
 0x99d   : > { %v3133_v41 = vpack.c.bf16 %v3015_v39, %v2996_v16 }
 0x99f   : > { %4097 = vmatmul.msk.bf16.vlgmr.msra.gmra.mxu2 %vm1922_vm1, %v3133_v41 }
 0x9a4   : > { %v3017_v43 = vpop.f32.mrf.mxu3 }
 0x9bd   : > { %v3053_v46 = vpop.f32.mrf.mxu1 }
 0x9be   : > { %v3034_v49 = vpop.f32.mrf.mxu0 }
 0x9bf   : > { %v3159_v50 = vpack.c.bf16 %v3053_v46, %v3034_v49 }
 0x9c1   : > { %4098 = vmatmul.msk.bf16.vlgmr.msra.gmra.mxu3 %vm1922_vm1, %v3159_v50 }
 0x9c5   : > { %v3055_v45 = vpop.f32.mrf.mxu1 }
 0x9c6   : > { %v3036_v52 = vpop.f32.mrf.mxu0 }
 0x9d5   : > { %v3110_v54 = vpop.f32.mrf.mxu0 }
 0x9dd   : > { %v3112_v55 = vpop.f32.mrf.mxu0 }
 0x9de   : > { %v3129_v56 = vpop.f32.mrf.mxu1 }
 0x9df   : > { %v3205_v60 = vpack.c.bf16 %v3129_v56, %v3110_v54 }
 0x9e1   : > { %4100 = vmatmul.msk.bf16.vlgmr.msrb.gmra.mxu1 %vm1922_vm1, %v3205_v60  ;;  %v4368_v60 = vld [vmem:[%s6374_s8] ss:$0 sm:$0xff] }
 0x9e6   : > { %v3131_v61 = vpop.f32.mrf.mxu1  ;;  %v3072_v62 = vpop.f32.mrf.mxu2 }
 0x9e7   : > { %v3091_v63 = vpop.f32.mrf.mxu3 }
 0x9e8   : > { %v3182_v0 = vpack.c.bf16 %v3091_v63, %v3072_v62 }
 0x9ea   : > { %4099 = vmatmul.msk.bf16.vlgmr.msrb.gmra.mxu0 %vm1922_vm1, %v3182_v0 }
 0x9ee   : > { %v3074_v57 = vpop.f32.mrf.mxu2 }
 0x9ef   : > { %v3093_v48 = vpop.f32.mrf.mxu3 }
 0xa22   : > { %v3149_v30 = vpop.f32.mrf.mxu2 }
 0xa23   : > { %v3157_v58 = vadd.f32 %v4366_v1, %v3149_v30 }
 0xa2a   : > { %v3151_v8 = vpop.f32.mrf.mxu2 }
 0xa2b   : > { %v3158_v15 = vadd.f32 %v4366_v1, %v3151_v8  ;;  %v4369_v8 = vld [vmem:[%s6375_s5] ss:$0 sm:$0xff] }
 0xa44   : > { %v3175_v2 = vpop.f32.mrf.mxu3 }
 0xa45   : > { %v3180_v59 = vadd.f32 %v3175_v2, %v3157_v58  ;;  %v4160_v58 = vld [vmem:[%s5778_s20 + $0x18] sm:$0xff] }
 0xa46   : > { %3373 = vmatpush.bf16.msrb.mxu3 %v4160_v58 }
 0xa4c   : > { %v3177_v13 = vpop.f32.mrf.mxu3 }
 0xa4d   : > { %v3181_v17 = vadd.f32 %v3177_v13, %v3158_v15 }
 0xa5e   : > { %v3221_v6 = vpop.f32.mrf.mxu1 }
 0xa66   : > { %v3223_v19 = vpop.f32.mrf.mxu1 }
 0xa67   : > { %v3198_v3 = vpop.f32.mrf.mxu0 }
 0xa68   : > { %v3203_v7 = vadd.f32 %v3198_v3, %v3180_v59  ;;  %v4159_v59 = vld [vmem:[%s5778_s20 + $0x10] sm:$0xff]  ;;  %v4157_v3 = vld [vmem:[%s5778_s20] sm:$0xff] }
 0xa69   : > { %3374 = vmatpush.bf16.msrb.mxu3 %v4159_v59 }
 0xa6a   : > { %v3226_v9 = vadd.f32 %v3221_v6, %v3203_v7  ;;  %v4158_v6 = vld [vmem:[%s5778_s20 + $0x8] sm:$0xff]  ;;  %s6377_s20 = scalar_lea.vmem [#allocation34], %s5681_s3 }
 0xa6c   : > { %v3228_v21 = vadd.f32 %v3226_v9, %v6003_v12 }
 0xa6d   : > { %3375 = vmatpush.bf16.msrb.mxu3 %v4158_v6 }
 0xa6e   : > { %v3230_v18 = vsel %vm1762_vm0, %v3228_v21, 0.0 }
 0xa6f   : > { %3231 = vadd.xlane.f32.xlu0 %v3230_v18  ;;  %v3200_v10 = vpop.f32.mrf.mxu0 }
 0xa70   : > { %v3204_v16 = vadd.f32 %v3200_v10, %v3181_v17  ;;  %v4370_v10 = vld [vmem:[%s6376_s11] ss:$0 sm:$0xff] }
 0xa71   : > { %3376 = vmatpush.bf16.msrb.mxu3 %v4157_v3 }
 0xa72   : > { %v3227_v20 = vadd.f32 %v3223_v19, %v3204_v16 }
 0xa74   : > { %v3229_v22 = vadd.f32 %v3227_v20, %v6006_v14 }
 0xa76   : > { %v3233_v4 = vsel %vm1762_vm0, %v3229_v22, 0.0 }
 0xa77   : > { %3234 = vadd.xlane.f32.xlu2 %v3233_v4 }
 0xae2   : > { %v3232_v23 = vpop.xlane.xlu0 %3231 }
 0xae3   : > { %v3236_v24 = vmul.f32 %v3232_v23, %v5973_v25 }
 0xae5   : > { %v3238_v26 = vsub.f32 %v3228_v21, %v3236_v24 }
 0xae7   : > { %v3240_v12 = vmul.f32 %v3238_v26, %v3238_v26 }
 0xae9   : > { %v3242_v5 = vsel %vm1762_vm0, %v3240_v12, 0.0 }
 0xaea   : > { %3243 = vadd.xlane.f32.xlu0 %v3242_v5  ;;  %v3235_v28 = vpop.xlane.xlu2 %3234 }
 0xaeb   : > { %v3237_v29 = vmul.f32 %v3235_v28, %v5973_v25 }
 0xaed   : > { %v3239_v32 = vsub.f32 %v3229_v22, %v3237_v29 }
 0xaef   : > { %v3241_v33 = vmul.f32 %v3239_v32, %v3239_v32 }
 0xaf1   : > { %v3245_v14 = vsel %vm1762_vm0, %v3241_v33, 0.0 }
 0xaf2   : > { %3246 = vadd.xlane.f32.xlu1 %v3245_v14 }
 0xb5d   : > { %v3244_v34 = vpop.xlane.xlu0 %3243 }
 0xb5e   : > { %v3248_v36 = vmul.f32 %v3244_v34, %v5973_v25 }
 0xb60   : > { %v3250_v27 = vadd.f32 1e-05, %v3248_v36 }
 0xb62   : > { %4443 = vrsqrt.f32 %v3250_v27  ;;  %vm3258_vm3 = vweird.f32 %v3250_v27 }
 0xb65   : > { %v3247_v38 = vpop.xlane.xlu1 %3246 }
 0xb66   : > { %v3249_v39 = vmul.f32 %v3247_v38, %v5973_v25 }
 0xb68   : > { %v4444_v40 = vpop.eup %4443  ;;  %v3251_v41 = vadd.f32 1e-05, %v3249_v39 }
 0xb69   : > { %v3253_v42 = vmul.f32 %v4444_v40, %v3250_v27  ;;  %vm3259_vm1 = vweird.f32 %v4444_v40 }
 0xb6a   : > { %4445 = vrsqrt.f32 %v3251_v41  ;;  %vm3260_vm4 = vmor %vm3258_vm3, %vm3259_vm1  ;;  %vm3268_vm6 = vweird.f32 %v3251_v41 }
 0xb6b   : > { %v3254_v43 = vmul.f32 %v4444_v40, %v3253_v42 }
 0xb6d   : > { %v3255_v44 = vmul.f32 0.5, %v3254_v43 }
 0xb6f   : > { %v3256_v46 = vsub.f32 1.5, %v3255_v44 }
 0xb70   : > { %v4446_v47 = vpop.eup %4445 }
 0xb71   : > { %v3257_v49 = vmul.f32 %v4444_v40, %v3256_v46  ;;  %v3263_v50 = vmul.f32 %v4446_v47, %v3251_v41  ;;  %vm3269_vm5 = vweird.f32 %v4446_v47 }
 0xb72   : > { %vm3270_vm7 = vmor %vm3268_vm6, %vm3269_vm5 }
 0xb73   : > { %v3261_v45 = vsel %vm3260_vm4, %v4444_v40, %v3257_v49  ;;  %v3264_v51 = vmul.f32 %v4446_v47, %v3263_v50 }
 0xb74   : > { %v3272_v54 = vmul.f32 %v3261_v45, %v3238_v26 }
 0xb75   : > { %v3265_v52 = vmul.f32 0.5, %v3264_v51  ;;  %v4371_v51 = vld [vmem:[%s1689_s19] ss:$0 sm:$0xff] }
 0xb76   : > { %v3277_v61 = vmul.f32 %v4367_v53, %v3272_v54 }
 0xb77   : > { %v3266_v55 = vsub.f32 1.5, %v3265_v52 }
 0xb78   : > { %v3282_v0 = vadd.f32 %v4368_v60, %v3277_v61 }
 0xb79   : > { %v3267_v56 = vmul.f32 %v4446_v47, %v3266_v55 }
 0xb7a   : > { %v3284_v30 = vmul.f32 %v3282_v0, %v5982_v37 }
 0xb7b   : > { %v3271_v62 = vsel %vm3270_vm7, %v4446_v47, %v3267_v56 }
 0xb7c   : > { %v3273_v63 = vmul.f32 %v3271_v62, %v3239_v32 }
 0xb7e   : > { %v3278_v57 = vmul.f32 %v4367_v53, %v3273_v63 }
 0xb80   : > { %v3283_v48 = vadd.f32 %v4368_v60, %v3278_v57 }
 0xb82   : > { %v3285_v1 = vmul.f32 %v3283_v48, %v6000_v11 }
 0xb84   : > { %v3302_v2 = vpack.c.bf16 %v3285_v1, %v3284_v30 }
 0xb86   : > { %4109 = vmatmul.msk.bf16.vlgmr.msrb.gmra.mxu2 %vm1762_vm0, %v3302_v2 }
 0xc09   : > { %v3330_v7 = vpop.f32.mrf.mxu2 }
 0xc0a   : > { %v3331_v9 = vadd.f32 %v4369_v8, %v3330_v7 }
 0xc0c   : > { %v3335_v21 = vmax.f32 %v3331_v9, 0.0 }
 0xc11   : > { %v3332_v13 = vpop.f32.mrf.mxu2 }
 0xc12   : > { %v3333_v15 = vadd.f32 %v4369_v8, %v3332_v13 }
 0xc14   : > { %v3336_v17 = vmax.f32 %v3333_v15, 0.0 }
 0xc16   : > { %v3337_v18 = vpack.c.bf16 %v3336_v17, %v3335_v21 }
 0xc18   : > { %4126 = vmatmul.msk.bf16.vlgmr.msrb.gmra.mxu3 %vm3365_vm8, %v3337_v18 }
 0xc9b   : > { %v3378_v16 = vpop.f32.mrf.mxu3 }
 0xc9c   : > { %v3379_v19 = vadd.f32 %v4370_v10, %v3378_v16 }
 0xc9e   : > { %v3383_v20 = vadd.f32 %v3379_v19, %v3284_v30 }
 0xca0   : > { %v3385_v22 = vsel %vm1762_vm0, %v3383_v20, 0.0 }
 0xca1   : > { %3386 = vadd.xlane.f32.xlu0 %v3385_v22 }
 0xca3   : > { %v3380_v4 = vpop.f32.mrf.mxu3 }
 0xca4   : > { %v3381_v23 = vadd.f32 %v4370_v10, %v3380_v4 }
 0xca6   : > { %v3384_v24 = vadd.f32 %v3381_v23, %v3285_v1 }
 0xca8   : > { %v3388_v26 = vsel %vm1762_vm0, %v3384_v24, 0.0 }
 0xca9   : > { %3389 = vadd.xlane.f32.xlu0 %v3388_v26 }
 0xd14   : > { %v3387_v12 = vpop.xlane.xlu0 %3386 }
 0xd15   : > { %v3391_v5 = vmul.f32 %v3387_v12, %v5973_v25 }
 0xd17   : > { %v3393_v28 = vsub.f32 %v3383_v20, %v3391_v5 }
 0xd19   : > { %v3395_v29 = vmul.f32 %v3393_v28, %v3393_v28 }
 0xd1b   : > { %v3397_v32 = vsel %vm1762_vm0, %v3395_v29, 0.0 }
 0xd1c   : > { %3398 = vadd.xlane.f32.xlu0 %v3397_v32  ;;  %v3390_v33 = vpop.xlane.xlu0 %3389 }
 0xd1d   : > { %v3392_v14 = vmul.f32 %v3390_v33, %v5973_v25 }
 0xd1f   : > { %v3394_v34 = vsub.f32 %v3384_v24, %v3392_v14 }
 0xd21   : > { %v3396_v35 = vmul.f32 %v3394_v34, %v3394_v34 }
 0xd23   : > { %v3400_v36 = vsel %vm1762_vm0, %v3396_v35, 0.0 }
 0xd24   : > { %3401 = vadd.xlane.f32.xlu0 %v3400_v36 }
 0xd8f   : > { %v3399_v27 = vpop.xlane.xlu0 %3398 }
 0xd90   : > { %v3403_v31 = vmul.f32 %v3399_v27, %v5973_v25 }
 0xd92   : > { %v3405_v38 = vadd.f32 1e-05, %v3403_v31 }
 0xd94   : > { %4447 = vrsqrt.f32 %v3405_v38  ;;  %vm3413_vm10 = vweird.f32 %v3405_v38 }
 0xd97   : > { %v3402_v39 = vpop.xlane.xlu0 %3401 }
 0xd98   : > { %v3404_v40 = vmul.f32 %v3402_v39, %v5973_v25  ;;  %v4372_v25 = vld [vmem:[%s6377_s20] ss:$0 sm:$0xff] }
 0xd9a   : > { %v4448_v41 = vpop.eup %4447  ;;  %v3406_v42 = vadd.f32 1e-05, %v3404_v40 }
 0xd9b   : > { %v3408_v43 = vmul.f32 %v4448_v41, %v3405_v38  ;;  %vm3414_vm9 = vweird.f32 %v4448_v41 }
 0xd9c   : > { %4449 = vrsqrt.f32 %v3406_v42  ;;  %vm3415_vm11 = vmor %vm3413_vm10, %vm3414_vm9  ;;  %vm3423_vm13 = vweird.f32 %v3406_v42 }
 0xd9d   : > { %v3409_v44 = vmul.f32 %v4448_v41, %v3408_v43 }
 0xd9f   : > { %v3410_v46 = vmul.f32 0.5, %v3409_v44 }
 0xda1   : > { %v3411_v47 = vsub.f32 1.5, %v3410_v46 }
 0xda2   : > { %v4450_v49 = vpop.eup %4449 }
 0xda3   : > { %v3412_v50 = vmul.f32 %v4448_v41, %v3411_v47  ;;  %v3418_v45 = vmul.f32 %v4450_v49, %v3406_v42  ;;  %vm3424_vm12 = vweird.f32 %v4450_v49 }
 0xda4   : > { %vm3425_vm14 = vmor %vm3423_vm13, %vm3424_vm12 }
 0xda5   : > { %v3416_v52 = vsel %vm3415_vm11, %v4448_v41, %v3412_v50  ;;  %v3419_v53 = vmul.f32 %v4450_v49, %v3418_v45 }
 0xda6   : > { %v3427_v54 = vmul.f32 %v3416_v52, %v3393_v28 }
 0xda7   : > { %v3420_v55 = vmul.f32 0.5, %v3419_v53 }
 0xda8   : > { %v3432_v56 = vmul.f32 %v4371_v51, %v3427_v54 }
 0xda9   : > { %v3421_v60 = vsub.f32 1.5, %v3420_v55 }
 0xdaa   : > { %v3437_v61 = vadd.f32 %v4372_v25, %v3432_v56 }
 0xdab   : > { %v3422_v62 = vmul.f32 %v4450_v49, %v3421_v60 }
 0xdac   : > { %v3439_v63 = vmul.f32 %v3437_v61, %v5982_v37 }
 0xdad   : > { %v3426_v0 = vsel %vm3425_vm14, %v4450_v49, %v3422_v62 }
 0xdae   : > { %3441 = vst.msk [vmem:[#allocation2] sm:$0xff] %vm1762_vm0, %v3439_v63  ;;  %v3428_v57 = vmul.f32 %v3426_v0, %v3394_v34 }
 0xdb0   : > { %v3433_v48 = vmul.f32 %v4371_v51, %v3428_v57 }
 0xdb2   : > { %v3438_v30 = vadd.f32 %v4372_v25, %v3433_v48  ;;  %3446 = sbr.rel (%p4127_p5) target bundleno = 3513 (0xdb9), region = 228 }
 0xdb4   : > { %v3440_v1 = vmul.f32 %v3438_v30, %v6000_v11 }
 0xdb6   : > { %3442 = vst.msk [vmem:[#allocation2 + $0x8] sm:$0xff] %vm1762_vm0, %v3440_v1 }
 0xdb7   : > { %3447 = vst.msk [vmem:[#allocation36] sm:$0xff] %vm1762_vm0, %v3439_v63 }
 0xdb8   : > { %3448 = vst.msk [vmem:[#allocation36 + $0x8] sm:$0xff] %vm1762_vm0, %v3440_v1 }
 0xdb9 PF: > { %s6378_s19 = sld [smem:[#allocation82_spill]]  ;;  %p4217_p7 = scmp.eq.s32.totalorder %s5376_s22, 1 }
 0xdba   : > { %s5194_s3 = smov [#allocation36]  }
 0xdbb   : > { %s3454_s17 = sshll.u32 %s5194_s3, 4  ;;  %s3455_s17 = int_to_ptr.vmem [resolvable:$true] %s3454_s17 }
 0xdbf   : > { %s3456_s25 = sshll.u32 %s6378_s19, 4  ;;  %s5061_s12 = scalar_lea.hbm %s6378_s19, 16  ;;  %s3457_s25 = int_to_ptr.hbm [resolvable:$true] %s3456_s25 }
 0xdc0   : > { %s5055_s28 = sshra.s32 %s3457_s25, 4  ;;  %s5056_s28 = int_to_ptr.hbm [resolvable:$true] %s5055_s28 }
 0xdc1   : > { %s5057_s15 = scalar_lea.hbm %s5056_s28, 16  ;;  %p5062_p13 = scmp.lt.s32.totalorder %s5056_s28, %s6378_s19 }
 0xdc2   : > { %p5058_p10 = scmp.ne.s32.totalorder %s5056_s28, %s5057_s15  ;;  %p5063_p4 = scmp.lt.s32.totalorder %s5061_s12, %s5057_s15 }
 0xdc4   : > { %p5059_p11 = pnand %p5058_p10, %p4217_p7  ;;  %p5064_p8 = por %p5063_p4, %p5062_p13 }
 0xdc6   : > { %p5060_p12 = pneg %p5059_p11 }
 0xdc8   : > { %p5065_p9 = pnand %p5064_p8, %p5060_p12 }
 0xdca   : > { %5068 = shalt.err (!%p5065_p9)
}
 0xdcb   : > { %s5195_s16 = smov 128   ;;  %s5196_s7 = smov 8  }
 0xdcc   : > { %4207 = dma.vmem_to_hbm [thread:$0]  (%p4217_p7), %s3455_s17, 256, %s3457_s25, [#allocation6], %s5195_s16, %s5195_s16, %s5196_s7  }
 0xdcd   : > { %5134 = dma.done.wait (%p4217_p7), [#allocation6], 256  }
 0xdce   : > { %5136 = vsyncadd (%p4217_p7), [#allocation6], 4294967040 }
 0xdcf PF: > { %s6379_s18 = sld [smem:[#allocation85_spill]] }
 0xdd0   : > { %s6380_s0 = sld [smem:[#allocation83_spill]] }
 0xdd1   : > { %s6381_s15 = sld [smem:[#allocation84_spill]] }
 0xdd2   : > { %s6382_s16 = sld [smem:[#allocation86_spill]] }
 0xdd5   : > { %p100_p0 = scmp.ge.s32.totalorder %s6379_s18, 4  }
 0xdd7   :  { %102 = sbr.rel (!%p100_p0) target bundleno = 89 (0x59), region = 457 }
 0xddc   :  { %3473 = vsyncpa [#allocation5], 1 }
 0xddd   :  { %3475 = vsyncpa [#allocation5 + $0x1], 1 }
 0xdde   :  { %3476 = vsyncpa [#allocation8], 1 }
 0xddf   :  { %3478 = vsyncpa [#allocation8 + $0x1], 1 }
 0xde0   :  { %3479 = vsyncpa [#allocation11], 1 }
 0xde1   :  { %3481 = vsyncpa [#allocation11 + $0x1], 1 }
 0xde2   :  { %3482 = vsyncpa [#allocation14], 1 }
 0xde3   :  { %3484 = vsyncpa [#allocation14 + $0x1], 1 }
 0xde4   :  { %3485 = vsyncpa [#allocation17], 1 }
 0xde5   :  { %3487 = vsyncpa [#allocation17 + $0x1], 1 }
 0xde6   :  { %3488 = vsyncpa [#allocation20], 1 }
 0xde7   :  { %3490 = vsyncpa [#allocation20 + $0x1], 1 }
 0xde8   :  { %3491 = vsyncpa [#allocation23], 1 }
 0xde9   :  { %3493 = vsyncpa [#allocation23 + $0x1], 1 }
 0xdea   :  { %3494 = vsyncpa [#allocation26], 1 }
 0xdeb   :  { %3496 = vsyncpa [#allocation26 + $0x1], 1 }
 0xdec   :  { %3497 = vsyncpa [#allocation29], 1 }
 0xded   :  { %3499 = vsyncpa [#allocation29 + $0x1], 1 }
 0xdee   :  { %3500 = vsyncpa [#allocation32], 1 }
 0xdef   :  { %3502 = vsyncpa [#allocation32 + $0x1], 1 }
 0xdf0   :  { %3503 = vsyncpa [#allocation35], 1 }
 0xdf1   :  { %3505 = vsyncpa [#allocation35 + $0x1], 1 }
 0xdf2   :  { %3506 = vsyncpa [#allocation6], 1 }
 0xdf3   :  { %3508 = vsyncpa [#allocation6 + $0x1], 1 }
 0xdf4   :  { %3509 = vsyncmov [#allocation3] }
 0xdf7   :  { %s3510_s30 = vpop.sfrf %3509 }
 0xdf8   :  { %p4132_p1 = scmp.ne.s32.totalorder %s3510_s30, 0 }
 0xdfa   :  { %3514 = shalt.err (%p4132_p1)  }

</bundles_post_ra>
